<compile_context>
chip_gen: v6e
topology: v6e:2x2x1
jax: 0.10.0
libtpu: 0.0.40
codegen_flags: <defaults>
</compile_context>

<pallas_src>
import functools

import jax
import jax.numpy as jnp
from jax.experimental import pallas as pl
from jax.experimental.pallas import tpu as pltpu


F_PAD = 128      # lane-padded feature width (logical C=16 lives in lanes 0..15)
CHUNK = 2048     # spatial lanes processed per in-kernel tile (1 tile at toy sizes)


def _iqa_loss_kernel(x_ref, cw_ref, cb_ref, msk_ref, w1m_ref, w1a_ref, b1_ref,
                     w2_ref, b2_ref, out_ref, *, wp, n_valid, p_total):
    # x_ref  : [Cin, (H+2)*(W+2)]  bf16  flattened 1-padded image (channel-major)
    # cw_ref : [9, F_PAD, Cin]     bf16  conv taps, transposed + lane-padded
    # cb_ref : [F_PAD, 1]          f32   conv bias
    # msk_ref: [1, p_total]        f32   1.0 on valid output pixels, 0.0 on wrap cols
    # w1m/w1a: [HD, F_PAD]  b1/w2: [HD, 1]  b2: SMEM [1, 1]
    run_max = jnp.zeros((F_PAD, 1), jnp.float32)
    run_sum = jnp.zeros((F_PAD, 1), jnp.float32)
    cb = cb_ref[...]

    # Spatial tiling with running max / running sum (bounded VMEM at any resolution).
    for q0 in range(0, p_total, CHUNK):
        lq = min(CHUNK, p_total - q0)
        acc = jnp.zeros((F_PAD, lq), jnp.float32)
        # 3x3 conv as 9 shifted dot-accumulates: tap (di, dj) is a flat lane shift
        # of di*(W+2)+dj on the padded image; bf16 operands, f32 accumulation.
        for t in range(9):
            off = (t // 3) * wp + (t % 3) + q0
            acc = acc + jnp.dot(cw_ref[t], x_ref[:, off:off + lq],
                                preferred_element_type=jnp.float32)
        # bias + ReLU, then zero the wrap-around (invalid) output columns.
        h = jnp.maximum(acc + cb, 0.0) * msk_ref[:, q0:q0 + lq]     # [F_PAD, lq]
        run_max = jnp.maximum(run_max, jnp.max(h, axis=1, keepdims=True))
        run_sum = run_sum + jnp.sum(h, axis=1, keepdims=True)

    # AdaptiveConcatPool2d (max + avg); channel-concat is folded into split fc1 halves.
    avg = run_sum * (1.0 / n_valid)                                 # [F_PAD, 1]
    z = (jnp.dot(w1m_ref[...], run_max, preferred_element_type=jnp.float32)
         + jnp.dot(w1a_ref[...], avg, preferred_element_type=jnp.float32)
         + b1_ref[...])
    z = jnp.maximum(z, 0.0)                                         # [HD, 1]
    s = jnp.sum(z * w2_ref[...], axis=0, keepdims=True) + b2_ref[0, 0]   # [1, 1]
    err = 100.0 - s
    out_ref[...] = jnp.broadcast_to(err * err, (1, F_PAD))          # lane-dense store


def iqa_loss(x_nchw, params):
    cw, cb, w1m, w1a, b1, w2, b2 = params
    B, Cin, H, W = x_nchw.shape
    Hp, Wp = H + 2, W + 2
    P = (H - 1) * Wp + W            # flat output positions (incl. masked wrap columns)
    C = cw.shape[1]
    Hd = w1m.shape[1]

    # pyiqa-style ImageNet normalization (glue) + bf16 for the DMA-dominant input.
    mean = jnp.array([0.485, 0.456, 0.406], jnp.float32).reshape(1, Cin, 1, 1)
    std = jnp.array([0.229, 0.224, 0.225], jnp.float32).reshape(1, Cin, 1, 1)
    xp = jnp.pad((x_nchw - mean) / std, ((0, 0), (0, 0), (1, 1), (1, 1)))
    x_flat = xp.reshape(B, Cin, Hp * Wp).astype(jnp.bfloat16)

    # Re-layout the (tiny) weights: transposed + zero-padded to 128 lanes.
    # Zero rows/cols keep the math identical to the un-padded model.
    k_taps = 9 * Cin
    cw_taps = (jnp.zeros((9, F_PAD, Cin), jnp.float32)
               .at[:, :C, :].set(cw[:k_taps].reshape(9, Cin, C).transpose(0, 2, 1))
               .astype(jnp.bfloat16))
    cb_t = jnp.zeros((F_PAD, 1), jnp.float32).at[:C, 0].set(cb[0])
    w1m_t = jnp.zeros((Hd, F_PAD), jnp.float32).at[:, :C].set(w1m.T)
    w1a_t = jnp.zeros((Hd, F_PAD), jnp.float32).at[:, :C].set(w1a.T)
    b1_t = b1.T                                     # [Hd, 1]
    w2_t = w2.T                                     # [Hd, 1]

    # Valid-pixel mask over the flat-shifted output positions.
    valid = (jnp.arange(P, dtype=jnp.int32) % Wp) < W
    msk = valid.astype(jnp.float32).reshape(1, P)

    kernel = functools.partial(_iqa_loss_kernel, wp=Wp, n_valid=H * W, p_total=P)

    per_image = pl.pallas_call(
        kernel,
        out_shape=jax.ShapeDtypeStruct((B, 1, F_PAD), jnp.float32),
        grid=(B,),
        in_specs=[
            pl.BlockSpec((None, Cin, Hp * Wp), lambda b: (b, 0, 0)),   # image (per b)
            pl.BlockSpec((9, F_PAD, Cin), lambda b: (0, 0, 0)),        # conv taps
            pl.BlockSpec((F_PAD, 1), lambda b: (0, 0)),                # conv bias
            pl.BlockSpec((1, P), lambda b: (0, 0)),                    # valid mask
            pl.BlockSpec((Hd, F_PAD), lambda b: (0, 0)),               # fc1 (max half)
            pl.BlockSpec((Hd, F_PAD), lambda b: (0, 0)),               # fc1 (avg half)
            pl.BlockSpec((Hd, 1), lambda b: (0, 0)),                   # fc1 bias
            pl.BlockSpec((Hd, 1), lambda b: (0, 0)),                   # fc2 weight
            pl.BlockSpec(memory_space=pltpu.MemorySpace.SMEM),         # fc2 bias scalar
        ],
        out_specs=pl.BlockSpec((None, 1, F_PAD), lambda b: (b, 0, 0)),
        compiler_params=pltpu.CompilerParams(
            dimension_semantics=("parallel",),
            vmem_limit_bytes=64 * 1024 * 1024),
    )(x_flat, cw_taps, cb_t, msk, w1m_t, w1a_t, b1_t, w2_t, b2)

    # Final mean over the (tiny) batch in plain JAX.
    return jnp.mean(per_image[:, 0, 0])


def init_params(key, cin=3, c=16, hd=32):
    ks = jax.random.split(key, 7)
    kraw = 9 * cin          # 27 taps of the 3x3xCin conv
    kp = 32                 # padded contraction dim (extra rows stay zero)
    cw = jnp.zeros((kp, c), jnp.float32).at[:kraw, :].set(
        0.1 * jax.random.normal(ks[0], (kraw, c), jnp.float32))
    cb = 0.01 * jax.random.normal(ks[1], (1, c), jnp.float32)
    w1m = 0.1 * jax.random.normal(ks[2], (c, hd), jnp.float32)
    w1a = 0.1 * jax.random.normal(ks[3], (c, hd), jnp.float32)
    b1 = 0.01 * jax.random.normal(ks[4], (1, hd), jnp.float32)
    w2 = 0.1 * jax.random.normal(ks[5], (1, hd), jnp.float32)
    b2 = jnp.full((1, 1), 50.0, jnp.float32)   # bias scores into paq2piq's ~[0,100] range
    return cw, cb, w1m, w1a, b1, w2, b2


if __name__ == "__main__":
    key = jax.random.PRNGKey(0)
    kx, kparam = jax.random.split(key)
    # NCHW, matching the PyTorch module's expected input (RGB image batch in [0,1]).
    x = jax.random.uniform(kx, (2, 3, 16, 16), dtype=jnp.float32)
    params = init_params(kparam)
    loss = jax.jit(iqa_loss)(x, params)
    jax.block_until_ready(loss)
    assert loss.shape == () and jnp.isfinite(loss)
    print("KERNEL_OK")
</pallas_src>

<mosaic_0001>
module attributes {stable_mosaic.version = 11 : i64} {
  func.func @_iqa_loss_kernel(%arg0: i32, %arg1: memref<1x3x324xbf16, #tpu.memory_space<vmem>>, %arg2: memref<9x128x3xbf16, #tpu.memory_space<vmem>>, %arg3: memref<128x1xf32, #tpu.memory_space<vmem>>, %arg4: memref<1x286xf32, #tpu.memory_space<vmem>>, %arg5: memref<32x128xf32, #tpu.memory_space<vmem>>, %arg6: memref<32x128xf32, #tpu.memory_space<vmem>>, %arg7: memref<32x1xf32, #tpu.memory_space<vmem>>, %arg8: memref<32x1xf32, #tpu.memory_space<vmem>>, %arg9: memref<1x1xf32, #tpu.memory_space<smem>>, %arg10: memref<1x1x128xf32, #tpu.memory_space<vmem>>) attributes {dimension_semantics = [#tpu.dimension_semantics<parallel>], iteration_bounds = array<i64: 2>, scalar_prefetch = 0 : i64, scratch_operands = 0 : i64, tpu.core_type = #tpu.core_type<tc>, window_params = [{transform_indices = @transform_0, window_bounds = array<i64: 1, 3, 324>}, {pipeline_mode = #tpu.pipeline_mode<synchronous>, transform_indices = @transform_1, window_bounds = array<i64: 9, 128, 3>}, {pipeline_mode = #tpu.pipeline_mode<synchronous>, transform_indices = @transform_2, window_bounds = array<i64: 128, 1>}, {pipeline_mode = #tpu.pipeline_mode<synchronous>, transform_indices = @transform_3, window_bounds = array<i64: 1, 286>}, {pipeline_mode = #tpu.pipeline_mode<synchronous>, transform_indices = @transform_4, window_bounds = array<i64: 32, 128>}, {pipeline_mode = #tpu.pipeline_mode<synchronous>, transform_indices = @transform_5, window_bounds = array<i64: 32, 128>}, {pipeline_mode = #tpu.pipeline_mode<synchronous>, transform_indices = @transform_6, window_bounds = array<i64: 32, 1>}, {pipeline_mode = #tpu.pipeline_mode<synchronous>, transform_indices = @transform_7, window_bounds = array<i64: 32, 1>}, {transform_indices = @transform_8, window_bounds = array<i64: 1, 1>}, {transform_indices = @transform_9, window_bounds = array<i64: 1, 1, 128>}]} {
    %cst = arith.constant 0.000000e+00 : f32
    %0 = vector.broadcast %cst : f32 to vector<128x1xf32>
    %cst_0 = arith.constant 0.000000e+00 : f32
    %1 = vector.broadcast %cst_0 : f32 to vector<128x1xf32>
    %c0 = arith.constant 0 : index
    %c0_1 = arith.constant 0 : index
    %2 = vector.load %arg3[%c0, %c0_1] : memref<128x1xf32, #tpu.memory_space<vmem>>, vector<128x1xf32>
    %cst_2 = arith.constant 0.000000e+00 : f32
    %3 = vector.broadcast %cst_2 : f32 to vector<128x286xf32>
    %c0_3 = arith.constant 0 : index
    %c0_4 = arith.constant 0 : index
    %c0_5 = arith.constant 0 : index
    %4 = vector.load %arg2[%c0_3, %c0_4, %c0_5] : memref<9x128x3xbf16, #tpu.memory_space<vmem>>, vector<1x128x3xbf16>
    %5 = vector.shape_cast %4 : vector<1x128x3xbf16> to vector<128x3xbf16>
    %c0_6 = arith.constant 0 : index
    %c0_7 = arith.constant 0 : index
    %c0_8 = arith.constant 0 : index
    %6 = vector.load %arg1[%c0_6, %c0_7, %c0_8] : memref<1x3x324xbf16, #tpu.memory_space<vmem>>, vector<1x3x286xbf16>
    %7 = vector.shape_cast %6 : vector<1x3x286xbf16> to vector<3x286xbf16>
    %cst_9 = arith.constant dense<0.000000e+00> : vector<128x286xf32>
    %8 = tpu.matmul %5, %7, %cst_9 {dimension_numbers = #tpu.dot_dimension_numbers<[1], [0], [0], [1], [0, 0, 1, 1], [], []>} : vector<128x3xbf16>, vector<3x286xbf16>, vector<128x286xf32> -> vector<128x286xf32>
    %9 = arith.addf %3, %8 : vector<128x286xf32>
    %c1 = arith.constant 1 : index
    %c0_10 = arith.constant 0 : index
    %c0_11 = arith.constant 0 : index
    %10 = vector.load %arg2[%c1, %c0_10, %c0_11] : memref<9x128x3xbf16, #tpu.memory_space<vmem>>, vector<1x128x3xbf16>
    %11 = vector.shape_cast %10 : vector<1x128x3xbf16> to vector<128x3xbf16>
    %c0_12 = arith.constant 0 : index
    %c0_13 = arith.constant 0 : index
    %c1_14 = arith.constant 1 : index
    %12 = vector.load %arg1[%c0_12, %c0_13, %c1_14] : memref<1x3x324xbf16, #tpu.memory_space<vmem>>, vector<1x3x286xbf16>
    %13 = vector.shape_cast %12 : vector<1x3x286xbf16> to vector<3x286xbf16>
    %cst_15 = arith.constant dense<0.000000e+00> : vector<128x286xf32>
    %14 = tpu.matmul %11, %13, %cst_15 {dimension_numbers = #tpu.dot_dimension_numbers<[1], [0], [0], [1], [0, 0, 1, 1], [], []>} : vector<128x3xbf16>, vector<3x286xbf16>, vector<128x286xf32> -> vector<128x286xf32>
    %15 = arith.addf %9, %14 : vector<128x286xf32>
    %c2 = arith.constant 2 : index
    %c0_16 = arith.constant 0 : index
    %c0_17 = arith.constant 0 : index
    %16 = vector.load %arg2[%c2, %c0_16, %c0_17] : memref<9x128x3xbf16, #tpu.memory_space<vmem>>, vector<1x128x3xbf16>
    %17 = vector.shape_cast %16 : vector<1x128x3xbf16> to vector<128x3xbf16>
    %c0_18 = arith.constant 0 : index
    %c0_19 = arith.constant 0 : index
    %c2_20 = arith.constant 2 : index
    %18 = vector.load %arg1[%c0_18, %c0_19, %c2_20] : memref<1x3x324xbf16, #tpu.memory_space<vmem>>, vector<1x3x286xbf16>
    %19 = vector.shape_cast %18 : vector<1x3x286xbf16> to vector<3x286xbf16>
    %cst_21 = arith.constant dense<0.000000e+00> : vector<128x286xf32>
    %20 = tpu.matmul %17, %19, %cst_21 {dimension_numbers = #tpu.dot_dimension_numbers<[1], [0], [0], [1], [0, 0, 1, 1], [], []>} : vector<128x3xbf16>, vector<3x286xbf16>, vector<128x286xf32> -> vector<128x286xf32>
    %21 = arith.addf %15, %20 : vector<128x286xf32>
    %c3 = arith.constant 3 : index
    %c0_22 = arith.constant 0 : index
    %c0_23 = arith.constant 0 : index
    %22 = vector.load %arg2[%c3, %c0_22, %c0_23] : memref<9x128x3xbf16, #tpu.memory_space<vmem>>, vector<1x128x3xbf16>
    %23 = vector.shape_cast %22 : vector<1x128x3xbf16> to vector<128x3xbf16>
    %c0_24 = arith.constant 0 : index
    %c0_25 = arith.constant 0 : index
    %c18 = arith.constant 18 : index
    %24 = vector.load %arg1[%c0_24, %c0_25, %c18] : memref<1x3x324xbf16, #tpu.memory_space<vmem>>, vector<1x3x286xbf16>
    %25 = vector.shape_cast %24 : vector<1x3x286xbf16> to vector<3x286xbf16>
    %cst_26 = arith.constant dense<0.000000e+00> : vector<128x286xf32>
    %26 = tpu.matmul %23, %25, %cst_26 {dimension_numbers = #tpu.dot_dimension_numbers<[1], [0], [0], [1], [0, 0, 1, 1], [], []>} : vector<128x3xbf16>, vector<3x286xbf16>, vector<128x286xf32> -> vector<128x286xf32>
    %27 = arith.addf %21, %26 : vector<128x286xf32>
    %c4 = arith.constant 4 : index
    %c0_27 = arith.constant 0 : index
    %c0_28 = arith.constant 0 : index
    %28 = vector.load %arg2[%c4, %c0_27, %c0_28] : memref<9x128x3xbf16, #tpu.memory_space<vmem>>, vector<1x128x3xbf16>
    %29 = vector.shape_cast %28 : vector<1x128x3xbf16> to vector<128x3xbf16>
    %c0_29 = arith.constant 0 : index
    %c0_30 = arith.constant 0 : index
    %c19 = arith.constant 19 : index
    %30 = vector.load %arg1[%c0_29, %c0_30, %c19] : memref<1x3x324xbf16, #tpu.memory_space<vmem>>, vector<1x3x286xbf16>
    %31 = vector.shape_cast %30 : vector<1x3x286xbf16> to vector<3x286xbf16>
    %cst_31 = arith.constant dense<0.000000e+00> : vector<128x286xf32>
    %32 = tpu.matmul %29, %31, %cst_31 {dimension_numbers = #tpu.dot_dimension_numbers<[1], [0], [0], [1], [0, 0, 1, 1], [], []>} : vector<128x3xbf16>, vector<3x286xbf16>, vector<128x286xf32> -> vector<128x286xf32>
    %33 = arith.addf %27, %32 : vector<128x286xf32>
    %c5 = arith.constant 5 : index
    %c0_32 = arith.constant 0 : index
    %c0_33 = arith.constant 0 : index
    %34 = vector.load %arg2[%c5, %c0_32, %c0_33] : memref<9x128x3xbf16, #tpu.memory_space<vmem>>, vector<1x128x3xbf16>
    %35 = vector.shape_cast %34 : vector<1x128x3xbf16> to vector<128x3xbf16>
    %c0_34 = arith.constant 0 : index
    %c0_35 = arith.constant 0 : index
    %c20 = arith.constant 20 : index
    %36 = vector.load %arg1[%c0_34, %c0_35, %c20] : memref<1x3x324xbf16, #tpu.memory_space<vmem>>, vector<1x3x286xbf16>
    %37 = vector.shape_cast %36 : vector<1x3x286xbf16> to vector<3x286xbf16>
    %cst_36 = arith.constant dense<0.000000e+00> : vector<128x286xf32>
    %38 = tpu.matmul %35, %37, %cst_36 {dimension_numbers = #tpu.dot_dimension_numbers<[1], [0], [0], [1], [0, 0, 1, 1], [], []>} : vector<128x3xbf16>, vector<3x286xbf16>, vector<128x286xf32> -> vector<128x286xf32>
    %39 = arith.addf %33, %38 : vector<128x286xf32>
    %c6 = arith.constant 6 : index
    %c0_37 = arith.constant 0 : index
    %c0_38 = arith.constant 0 : index
    %40 = vector.load %arg2[%c6, %c0_37, %c0_38] : memref<9x128x3xbf16, #tpu.memory_space<vmem>>, vector<1x128x3xbf16>
    %41 = vector.shape_cast %40 : vector<1x128x3xbf16> to vector<128x3xbf16>
    %c0_39 = arith.constant 0 : index
    %c0_40 = arith.constant 0 : index
    %c36 = arith.constant 36 : index
    %42 = vector.load %arg1[%c0_39, %c0_40, %c36] : memref<1x3x324xbf16, #tpu.memory_space<vmem>>, vector<1x3x286xbf16>
    %43 = vector.shape_cast %42 : vector<1x3x286xbf16> to vector<3x286xbf16>
    %cst_41 = arith.constant dense<0.000000e+00> : vector<128x286xf32>
    %44 = tpu.matmul %41, %43, %cst_41 {dimension_numbers = #tpu.dot_dimension_numbers<[1], [0], [0], [1], [0, 0, 1, 1], [], []>} : vector<128x3xbf16>, vector<3x286xbf16>, vector<128x286xf32> -> vector<128x286xf32>
    %45 = arith.addf %39, %44 : vector<128x286xf32>
    %c7 = arith.constant 7 : index
    %c0_42 = arith.constant 0 : index
    %c0_43 = arith.constant 0 : index
    %46 = vector.load %arg2[%c7, %c0_42, %c0_43] : memref<9x128x3xbf16, #tpu.memory_space<vmem>>, vector<1x128x3xbf16>
    %47 = vector.shape_cast %46 : vector<1x128x3xbf16> to vector<128x3xbf16>
    %c0_44 = arith.constant 0 : index
    %c0_45 = arith.constant 0 : index
    %c37 = arith.constant 37 : index
    %48 = vector.load %arg1[%c0_44, %c0_45, %c37] : memref<1x3x324xbf16, #tpu.memory_space<vmem>>, vector<1x3x286xbf16>
    %49 = vector.shape_cast %48 : vector<1x3x286xbf16> to vector<3x286xbf16>
    %cst_46 = arith.constant dense<0.000000e+00> : vector<128x286xf32>
    %50 = tpu.matmul %47, %49, %cst_46 {dimension_numbers = #tpu.dot_dimension_numbers<[1], [0], [0], [1], [0, 0, 1, 1], [], []>} : vector<128x3xbf16>, vector<3x286xbf16>, vector<128x286xf32> -> vector<128x286xf32>
    %51 = arith.addf %45, %50 : vector<128x286xf32>
    %c8 = arith.constant 8 : index
    %c0_47 = arith.constant 0 : index
    %c0_48 = arith.constant 0 : index
    %52 = vector.load %arg2[%c8, %c0_47, %c0_48] : memref<9x128x3xbf16, #tpu.memory_space<vmem>>, vector<1x128x3xbf16>
    %53 = vector.shape_cast %52 : vector<1x128x3xbf16> to vector<128x3xbf16>
    %c0_49 = arith.constant 0 : index
    %c0_50 = arith.constant 0 : index
    %c38 = arith.constant 38 : index
    %54 = vector.load %arg1[%c0_49, %c0_50, %c38] : memref<1x3x324xbf16, #tpu.memory_space<vmem>>, vector<1x3x286xbf16>
    %55 = vector.shape_cast %54 : vector<1x3x286xbf16> to vector<3x286xbf16>
    %cst_51 = arith.constant dense<0.000000e+00> : vector<128x286xf32>
    %56 = tpu.matmul %53, %55, %cst_51 {dimension_numbers = #tpu.dot_dimension_numbers<[1], [0], [0], [1], [0, 0, 1, 1], [], []>} : vector<128x3xbf16>, vector<3x286xbf16>, vector<128x286xf32> -> vector<128x286xf32>
    %57 = arith.addf %51, %56 : vector<128x286xf32>
    %58 = vector.broadcast %2 : vector<128x1xf32> to vector<128x286xf32>
    %59 = arith.addf %57, %58 : vector<128x286xf32>
    %cst_52 = arith.constant 0.000000e+00 : f32
    %60 = vector.broadcast %cst_52 : f32 to vector<128x286xf32>
    %61 = arith.maximumf %59, %60 : vector<128x286xf32>
    %c0_53 = arith.constant 0 : index
    %c0_54 = arith.constant 0 : index
    %62 = vector.load %arg4[%c0_53, %c0_54] : memref<1x286xf32, #tpu.memory_space<vmem>>, vector<1x286xf32>
    %63 = vector.broadcast %62 : vector<1x286xf32> to vector<128x286xf32>
    %64 = arith.mulf %61, %63 : vector<128x286xf32>
    %cst_55 = arith.constant dense<0xFF800000> : vector<128xf32>
    %65 = vector.multi_reduction <maximumf>, %64, %cst_55 [1] : vector<128x286xf32> to vector<128xf32>
    %66 = vector.shape_cast %65 : vector<128xf32> to vector<128x1xf32>
    %67 = arith.maximumf %0, %66 : vector<128x1xf32>
    %cst_56 = arith.constant dense<0.000000e+00> : vector<128xf32>
    %68 = vector.multi_reduction <add>, %64, %cst_56 [1] : vector<128x286xf32> to vector<128xf32>
    %69 = vector.shape_cast %68 : vector<128xf32> to vector<128x1xf32>
    %70 = arith.addf %1, %69 : vector<128x1xf32>
    %cst_57 = arith.constant 3.906250e-03 : f32
    %71 = vector.broadcast %cst_57 : f32 to vector<128x1xf32>
    %72 = arith.mulf %70, %71 : vector<128x1xf32>
    %c0_58 = arith.constant 0 : index
    %c0_59 = arith.constant 0 : index
    %73 = vector.load %arg5[%c0_58, %c0_59] : memref<32x128xf32, #tpu.memory_space<vmem>>, vector<32x128xf32>
    %cst_60 = arith.constant dense<0.000000e+00> : vector<32x1xf32>
    %74 = tpu.matmul %73, %67, %cst_60 {dimension_numbers = #tpu.dot_dimension_numbers<[1], [0], [0], [1], [0, 0, 1, 1], [], []>} : vector<32x128xf32>, vector<128x1xf32>, vector<32x1xf32> -> vector<32x1xf32>
    %c0_61 = arith.constant 0 : index
    %c0_62 = arith.constant 0 : index
    %75 = vector.load %arg6[%c0_61, %c0_62] : memref<32x128xf32, #tpu.memory_space<vmem>>, vector<32x128xf32>
    %cst_63 = arith.constant dense<0.000000e+00> : vector<32x1xf32>
    %76 = tpu.matmul %75, %72, %cst_63 {dimension_numbers = #tpu.dot_dimension_numbers<[1], [0], [0], [1], [0, 0, 1, 1], [], []>} : vector<32x128xf32>, vector<128x1xf32>, vector<32x1xf32> -> vector<32x1xf32>
    %77 = arith.addf %74, %76 : vector<32x1xf32>
    %c0_64 = arith.constant 0 : index
    %c0_65 = arith.constant 0 : index
    %78 = vector.load %arg7[%c0_64, %c0_65] : memref<32x1xf32, #tpu.memory_space<vmem>>, vector<32x1xf32>
    %79 = arith.addf %77, %78 : vector<32x1xf32>
    %cst_66 = arith.constant 0.000000e+00 : f32
    %80 = vector.broadcast %cst_66 : f32 to vector<32x1xf32>
    %81 = arith.maximumf %79, %80 : vector<32x1xf32>
    %c0_67 = arith.constant 0 : index
    %c0_68 = arith.constant 0 : index
    %82 = vector.load %arg8[%c0_67, %c0_68] : memref<32x1xf32, #tpu.memory_space<vmem>>, vector<32x1xf32>
    %83 = arith.mulf %81, %82 : vector<32x1xf32>
    %cst_69 = arith.constant dense<0.000000e+00> : vector<1xf32>
    %84 = vector.multi_reduction <add>, %83, %cst_69 [0] : vector<32x1xf32> to vector<1xf32>
    %85 = vector.shape_cast %84 : vector<1xf32> to vector<1x1xf32>
    %c0_70 = arith.constant 0 : index
    %c0_71 = arith.constant 0 : index
    %86 = memref.load %arg9[%c0_70, %c0_71] : memref<1x1xf32, #tpu.memory_space<smem>>
    %87 = vector.broadcast %86 : f32 to vector<1x1xf32>
    %88 = arith.addf %85, %87 : vector<1x1xf32>
    %cst_72 = arith.constant 1.000000e+02 : f32
    %89 = vector.broadcast %cst_72 : f32 to vector<1x1xf32>
    %90 = arith.subf %89, %88 : vector<1x1xf32>
    %91 = arith.mulf %90, %90 : vector<1x1xf32>
    %92 = vector.shape_cast %91 : vector<1x1xf32> to vector<1x1xf32>
    %93 = vector.broadcast %92 : vector<1x1xf32> to vector<1x128xf32>
    %c0_73 = arith.constant 0 : index
    %c0_74 = arith.constant 0 : index
    %c0_75 = arith.constant 0 : index
    %94 = vector.load %arg10[%c0_73, %c0_74, %c0_75] : memref<1x1x128xf32, #tpu.memory_space<vmem>>, vector<1x1x128xf32>
    %95 = vector.shape_cast %94 : vector<1x1x128xf32> to vector<1x128xf32>
    %96 = vector.shape_cast %93 : vector<1x128xf32> to vector<1x1x128xf32>
    tpu.vector_store %arg10[%c0_73, %c0_74, %c0_75], %96 {strides = array<i32>} : memref<1x1x128xf32, #tpu.memory_space<vmem>>, vector<1x1x128xf32>,
    return
  }
  func.func @transform_0(%arg0: i32) -> (i32, i32, i32) {
    %c0_i32 = arith.constant 0 : i32
    %c0_i32_0 = arith.constant 0 : i32
    %c0_i32_1 = arith.constant 0 : i32
    return %arg0, %c0_i32, %c0_i32_0 : i32, i32, i32
  }
  func.func @transform_1(%arg0: i32) -> (i32, i32, i32) {
    %c0_i32 = arith.constant 0 : i32
    %c0_i32_0 = arith.constant 0 : i32
    %c0_i32_1 = arith.constant 0 : i32
    %c0_i32_2 = arith.constant 0 : i32
    return %c0_i32, %c0_i32_0, %c0_i32_1 : i32, i32, i32
  }
  func.func @transform_2(%arg0: i32) -> (i32, i32) {
    %c0_i32 = arith.constant 0 : i32
    %c0_i32_0 = arith.constant 0 : i32
    %c0_i32_1 = arith.constant 0 : i32
    return %c0_i32, %c0_i32_0 : i32, i32
  }
  func.func @transform_3(%arg0: i32) -> (i32, i32) {
    %c0_i32 = arith.constant 0 : i32
    %c0_i32_0 = arith.constant 0 : i32
    %c0_i32_1 = arith.constant 0 : i32
    return %c0_i32, %c0_i32_0 : i32, i32
  }
  func.func @transform_4(%arg0: i32) -> (i32, i32) {
    %c0_i32 = arith.constant 0 : i32
    %c0_i32_0 = arith.constant 0 : i32
    %c0_i32_1 = arith.constant 0 : i32
    return %c0_i32, %c0_i32_0 : i32, i32
  }
  func.func @transform_5(%arg0: i32) -> (i32, i32) {
    %c0_i32 = arith.constant 0 : i32
    %c0_i32_0 = arith.constant 0 : i32
    %c0_i32_1 = arith.constant 0 : i32
    return %c0_i32, %c0_i32_0 : i32, i32
  }
  func.func @transform_6(%arg0: i32) -> (i32, i32) {
    %c0_i32 = arith.constant 0 : i32
    %c0_i32_0 = arith.constant 0 : i32
    %c0_i32_1 = arith.constant 0 : i32
    return %c0_i32, %c0_i32_0 : i32, i32
  }
  func.func @transform_7(%arg0: i32) -> (i32, i32) {
    %c0_i32 = arith.constant 0 : i32
    %c0_i32_0 = arith.constant 0 : i32
    %c0_i32_1 = arith.constant 0 : i32
    return %c0_i32, %c0_i32_0 : i32, i32
  }
  func.func @transform_8(%arg0: i32) -> (i32, i32) {
    %c0_i32 = arith.constant 0 : i32
    %c0_i32_0 = arith.constant 0 : i32
    %c0_i32_1 = arith.constant 0 : i32
    return %c0_i32, %c0_i32_0 : i32, i32
  }
  func.func @transform_9(%arg0: i32) -> (i32, i32, i32) {
    %c0_i32 = arith.constant 0 : i32
    %c0_i32_0 = arith.constant 0 : i32
    %c0_i32_1 = arith.constant 0 : i32
    return %arg0, %c0_i32, %c0_i32_0 : i32, i32, i32
  }
}

</mosaic_0001>

<bundles_post_ra>
// kernel: iqa_loss.1
= control target key start
LH: loop header
LB: loop body
LE: loop exit
PB: predicated region body
PF: predicated region fallthrough
CT: control target
= control target key end

     0   :  { %s5210_s11 = smov 0   ;;  %s7513_s0 = inlined_call_operand.vmem [shape: bf16[2,3,324], index: 0, kind: input, shape index: {}]   ;;  %s7514_s1 = inlined_call_operand.vmem [shape: bf16[9,128,3], index: 1, kind: input, shape index: {}]   ;;  %s7515_s2 = inlined_call_operand.vmem [shape: f32[128,1], index: 2, kind: input, shape index: {}]   ;;  %s7516_s3 = inlined_call_operand.vmem [shape: f32[1,286], index: 3, kind: input, shape index: {}]   ;;  %s7517_s4 = inlined_call_operand.vmem [shape: f32[32,128], index: 4, kind: input, shape index: {}]   ;;  %s7518_s5 = inlined_call_operand.vmem [shape: f32[32,128], index: 5, kind: input, shape index: {}]   ;;  %s7519_s6 = inlined_call_operand.vmem [shape: f32[32,1], index: 6, kind: input, shape index: {}]   ;;  %s7520_s7 = inlined_call_operand.vmem [shape: f32[32,1], index: 7, kind: input, shape index: {}]   ;;  %s7521_s8 = inlined_call_operand.<no memory space> [shape: f32[1,1], index: 8, kind: input, shape index: {}]   ;;  %s7522_s9 = inlined_call_operand.vmem [shape: f32[2,1,128], index: 9, kind: output, shape index: {}]  }
   0x1   :  { %14 = sst [smem:[#allocation2]] %s7521_s8 }
   0x2 LB: > { %s4323_s12 = sadd.s32 4294967295, %s5144_s11   ;;  %p4327_p0 = scmp.ge.s32.totalorder %s5144_s11, 1  ;;  %s5144_s11 = sphi %s5210_s11, %s20_s11  }
   0x3   : > { %p288_p1 = scmp.lt.s32.totalorder %s5144_s11, 3 }
   0x5   : > { %p289_p2 = pnand %p4327_p0, %p288_p1 }
   0x7   : > { %292 = sbr.rel (%p289_p2) target bundleno = 1335 (0x537), region = 56 }
   0xc   : > { %p322_p3 = scmp.lt.s32.totalorder %s4323_s12, 1  ;;  %v426_v0 = vlaneseq  ;;  %v5146_v1 = vmov 1983009808   ;;  %s5147_s16 = smov 127   ;;  %v7523_v14 = vmov 0   ;;  %vm472_vm0 = vcmask 1040384  }
   0xd   : > { %v424_v2 = vunpack.c.l.s4 %v5146_v1  ;;  %517 = vmatprep.mubr.bf16.mxu0 %v7523_v14  ;;  %577 = vmatprep.mubr.bf16.mxu1 %v7523_v14  ;;  %s5149_s17 = smov 126   ;;  %s5150_s18 = smov 110   ;;  %vm473_vm1 = vcmask 1041408   ;;  %v5153_v33 = vmov 65535   ;;  %vm444_vm2 = vcmask 1039360   ;;  %v5061_v44 = vld [vmem:[%s7514_s1 + $0x40] sm:$0xff]  }
   0xe   : > { %s7674_s12 = smov (!%p322_p3, %s4323_s12), 1  ;;  %v5220_v3 = vshrl.u32 %v426_v0, 7  ;;  %5057 = vset.pattern.permute.xlu1 %v7523_v14  ;;  %5056 = vset.pattern.permute.xlu0 %v7523_v14  ;;  %s5151_s19 = smov 109   ;;  %v474_v34 = vsel %vm472_vm0, 4294967295, %v5153_v33  ;;  %vm1059_vm3 = vcmask 1031168   ;;  %v5062_v45 = vld [vmem:[%s7514_s1 + $0x70] sm:$0xff]  }
   0xf   : > { %v425_v4 = vunpack.c.0.s8 %v424_v2  ;;  %s5036_s8 = smul.u32 6, %s7674_s12  ;;  %s5152_s20 = smov 108   ;;  %v5258_v36 = vsel %vm473_vm1, %v474_v34, 0  ;;  %vm447_vm4 = vcmask 23552   ;;  %v5063_v51 = vld [vmem:[%s7514_s1 + $0x48] sm:$0xff]   ;;  %v5064_v52 = vld [vmem:[%s7514_s1 + $0x78] sm:$0xff]  }
  0x10   : > { %7548 = vst [vmem:[#allocation3_spill] sm:$0xff] %v5220_v3  ;;  %v5065_v53 = vld [vmem:[%s7514_s1 + $0x50] sm:$0xff]   ;;  %s5154_s10 = smov 92   ;;  %v5066_v61 = vld [vmem:[%s7514_s1 + $0x58] sm:$0xff]   ;;  %v5067_v62 = vld [vmem:[%s7514_s1 + $0x60] sm:$0xff]   ;;  %vm1434_vm5 = vcmask 900096  }
  0x11   : > { %v5224_v5 = vsub.s32 %v425_v4, %v5220_v3  ;;  %s5229_s15 = scalar_lea.vmem %s7513_s0, %s5036_s8  ;;  %v5068_v63 = vld [vmem:[%s7514_s1 + $0x68] sm:$0xff]   ;;  %v5069_v0 = vld [vmem:[%s7514_s1] sm:$0xff]   ;;  %s5155_s13 = smov 91   ;;  %vm1809_vm6 = vcmask 891904   ;;  %vm2184_vm7 = vcmask 883712   ;;  %vm2559_vm8 = vcmask 752640  }
  0x12   : > { %v363_v6 = vld [vmem:[%s5229_s15] sm:$0x3f]  ;;  %s5156_s27 = smov 90   ;;  %vm2934_vm9 = vcmask 744448   ;;  %vm3309_vm10 = vcmask 736256   ;;  %vm3845_vm11 = vcmask 244736  }
  0x13   : > { %v995_v7 = vld [vmem:[%s5229_s15] sm:$0x3f]  ;;  %v5234_v8 = vrot.slane %v363_v6, %v5224_v5  ;;  %v422_v9 = vcombine.high %v363_v6, %v363_v6  ;;  %vm4251_vm12 = vcmask 7168  }
  0x14   : > { %v1044_v10 = vrot.slane %v995_v7, %v5224_v5  ;;  %v1370_v11 = vld [vmem:[%s5229_s15] sm:$0x3f]  ;;  %v1037_v16 = vcombine.high %v995_v7, %v995_v7  ;;  %v5070_v7 = vld [vmem:[%s7514_s1 + $0x8] sm:$0xff]  }
  0x15   : > { %438 = vrot.lane.b32.xlu1 %v5234_v8, %s5147_s16  ;;  %v5241_v12 = vcombine.high %v5234_v8, %v5234_v8  ;;  %v436_v15 = vrot.slane %v422_v9, %v5224_v5  ;;  %v1419_v17 = vrot.slane %v1370_v11, %v5224_v5  ;;  %v1412_v19 = vcombine.high %v1370_v11, %v1370_v11  ;;  %v1745_v22 = vld [vmem:[%s5229_s15] sm:$0x3f]  ;;  %v5072_v9 = vld [vmem:[%s7514_s1 + $0x10] sm:$0xff]  }
  0x16   : > { %v1052_v13 = vcombine.high %v1044_v10, %v1044_v10  ;;  %v1051_v18 = vrot.slane %v1037_v16, %v5224_v5  ;;  %v1794_v23 = vrot.slane %v1745_v22, %v5224_v5  ;;  %v1787_v24 = vcombine.high %v1745_v22, %v1745_v22  ;;  %v2120_v27 = vld [vmem:[%s5229_s15] sm:$0x3f]  ;;  %v5076_v22 = vld [vmem:[%s7514_s1 + $0x30] sm:$0xff]  }
  0x17   : > { %440 = vrot.lane.b32.xlu0 %v5241_v12, %s5147_s16  ;;  %v1427_v20 = vcombine.high %v1419_v17, %v1419_v17  ;;  %v1426_v21 = vrot.slane %v1412_v19, %v5224_v5  ;;  %v2162_v28 = vcombine.high %v2120_v27, %v2120_v27  ;;  %v2169_v29 = vrot.slane %v2120_v27, %v5224_v5  ;;  %v2495_v55 = vld [vmem:[%s5229_s15] sm:$0x3f] }
  0x18   : > { %v1802_v25 = vcombine.high %v1794_v23, %v1794_v23  ;;  %v1801_v26 = vrot.slane %v1787_v24, %v5224_v5  ;;  %v766_v41 = vand.u32 %v5258_v36, %v436_v15  ;;  %v763_v49 = vand.u32 %v5258_v36, %v5241_v12  ;;  %v2870_v16 = vld [vmem:[%s5229_s15] sm:$0x3f] }
  0x19   : > { %1055 = vrot.lane.b32.xlu1 %v1052_v13, %s5149_s17  ;;  %v2176_v30 = vrot.slane %v2162_v28, %v5224_v5  ;;  %v2177_v31 = vcombine.high %v2169_v29, %v2169_v29  ;;  %v760_v54 = vand.u32 %v5258_v36, %v5234_v8  ;;  %v2544_v57 = vrot.slane %v2495_v55, %v5224_v5  ;;  %v5073_v13 = vld [vmem:[%s7514_s1 + $0x18] sm:$0xff]   ;;  %v5078_v27 = vld [vmem:[%s7514_s1 + $0x80] sm:$0xff]  }
  0x1a   : > { %v2537_v58 = vcombine.high %v2495_v55, %v2495_v55  ;;  %v5083_v34 = vld [vmem:[%s7514_s1 + $0xa0] sm:$0xff]  }
  0x1b   : > { %442 = vrot.lane.b32.xlu0 %v436_v15, %s5147_s16  ;;  %v2552_v59 = vcombine.high %v2544_v57, %v2544_v57  ;;  %v5074_v15 = vld [vmem:[%s7514_s1 + $0x20] sm:$0xff]   ;;  %s4265_s16 = sld [smem:[#allocation2]] }
  0x1c   : > { %v2551_v60 = vrot.slane %v2537_v58, %v5224_v5  ;;  %v5093_v58 = vld [vmem:[%s7514_s1 + $0xe8] sm:$0xff]  }
  0x1d   : > { %1053 = vrot.lane.b32.xlu1 %v1044_v10, %s5149_s17 }
  0x1f   : > { %1057 = vrot.lane.b32.xlu0 %v1051_v18, %s5149_s17  ;;  %v2919_v18 = vrot.slane %v2870_v16, %v5224_v5 }
  0x21   : > { %1430 = vrot.lane.b32.xlu1 %v1427_v20, %s5150_s18  ;;  %v2927_v20 = vcombine.high %v2919_v18, %v2919_v18 }
  0x23   : > { %1432 = vrot.lane.b32.xlu0 %v1426_v21, %s5150_s18  ;;  %v5075_v21 = vld [vmem:[%s7514_s1 + $0x28] sm:$0xff]  }
  0x25   : > { %1805 = vrot.lane.b32.xlu1 %v1802_v25, %s5151_s19 }
  0x27   : > { %1428 = vrot.lane.b32.xlu0 %v1419_v17, %s5150_s18  ;;  %v2912_v17 = vcombine.high %v2870_v16, %v2870_v16 }
  0x29   : > { %1803 = vrot.lane.b32.xlu1 %v1794_v23, %s5151_s19  ;;  %v2926_v19 = vrot.slane %v2912_v17, %v5224_v5  ;;  %v5077_v23 = vld [vmem:[%s7514_s1 + $0x38] sm:$0xff]  }
  0x2b   : > { %1807 = vrot.lane.b32.xlu0 %v1801_v26, %s5151_s19  ;;  %s329_s19 = scalar_lea.vmem %s7522_s9, %s7674_s12 }
  0x2d   : > { %2180 = vrot.lane.b32.xlu1 %v2177_v31, %s5152_s20  ;;  %v5081_v31 = vld [vmem:[%s7514_s1 + $0x90] sm:$0xff]  }
  0x2f   : > { %2182 = vrot.lane.b32.xlu0 %v2176_v30, %s5152_s20  ;;  %v5079_v30 = vld [vmem:[%s7514_s1 + $0x88] sm:$0xff]  }
  0x31   : > { %2555 = vrot.lane.b32.xlu1 %v2552_v59, %s5154_s10  ;;  %v5094_v59 = vld [vmem:[%s7514_s1 + $0xf0] sm:$0xff]  }
  0x33   : > { %2178 = vrot.lane.b32.xlu0 %v2169_v29, %s5152_s20 }
  0x35   : > { %2553 = vrot.lane.b32.xlu1 %v2544_v57, %s5154_s10  ;;  %v5092_v57 = vld [vmem:[%s7514_s1 + $0xe0] sm:$0xff]  }
  0x37   : > { %2557 = vrot.lane.b32.xlu0 %v2551_v60, %s5154_s10  ;;  %v5095_v60 = vld [vmem:[%s7514_s1 + $0xf8] sm:$0xff]  }
  0x39   : > { %2930 = vrot.lane.b32.xlu1 %v2927_v20, %s5155_s13 }
  0x3b   : > { %2932 = vrot.lane.b32.xlu0 %v2926_v19, %s5155_s13 }
  0x3f   : > { %2928 = vrot.lane.b32.xlu0 %v2919_v18, %s5155_s13 }
  0x87   : > { %v439_v35 = vpop.permute.xlu1 %438 }
  0x89   : > { %v441_v32 = vpop.permute.xlu0 %440 }
  0x8a   : > { %v445_v37 = vsel %vm444_vm2, %v439_v35, %v441_v32 }
  0x8b   : > { %v477_v42 = vand.u32 %v5258_v36, %v445_v37  ;;  %v5270_v46 = vpop.permute.xlu1 %1055  ;;  %v3245_v37 = vld [vmem:[%s5229_s15] sm:$0x3f] }
  0x8d   : > { %v443_v38 = vpop.permute.xlu0 %442 }
  0x8e   : > { %v446_v39 = vsel %vm444_vm2, %v441_v32, %v443_v38  ;;  %v483_v43 = vand.u32 %v5258_v36, %v443_v38  ;;  %v5082_v32 = vld [vmem:[%s7514_s1 + $0x98] sm:$0xff]  }
  0x8f   : > { %v480_v40 = vand.u32 %v5258_v36, %v446_v39  ;;  %v1054_v1 = vpop.permute.xlu1 %1053  ;;  %v3294_v39 = vrot.slane %v3245_v37, %v5224_v5 }
  0x90   : > { %v1060_v6 = vsel %vm1059_vm3, %v1054_v1, %v5270_v46 }
  0x91   : > { %499 = vmatprep.subr.bf16.mxu0 %v480_v40  ;;  %5034 = vmatprep.subr.bf16.mxu1 %v480_v40  ;;  %v1058_v47 = vpop.permute.xlu0 %1057  ;;  %v1087_v10 = vand.u32 %v1060_v6, %v5258_v36  ;;  %v3302_v40 = vcombine.high %v3294_v39, %v3294_v39  ;;  %v5099_v6 = vld [vmem:[%s7514_s1 + $0x110] sm:$0xff]  }
  0x92   : > { %500 = vmatpush1.bf16.msra.mxu0 %v477_v42  ;;  %5035 = vmatpush1.bf16.msra.mxu1 %v477_v42  ;;  %v1061_v48 = vsel %vm1059_vm3, %v5270_v46, %v1058_v47  ;;  %v1093_v56 = vand.u32 %v1058_v47, %v5258_v36  ;;  %v5084_v42 = vld [vmem:[%s7514_s1 + $0xa8] sm:$0xff]  }
  0x93   : > { %4796 = vmatprep.subr.bf16.mxu1 %v483_v43  ;;  %4814 = vmatprep.subr.bf16.mxu0 %v766_v41  ;;  %v1090_v50 = vand.u32 %v1061_v48, %v5258_v36  ;;  %v5328_v4 = vpop.permute.xlu1 %1430 }
  0x94   : > { %3305 = vrot.lane.b32.xlu1 %v3302_v40, %s5156_s27 }
  0x95   : > { %4353 = vmatmul.mubr.msk.bf16.vlgmr.msra.gmra.mxu0 %vm447_vm4, %v5061_v44  ;;  %4359 = vmatmul.mubr.msk.bf16.vlgmr.msra.gmra.mxu1 %vm447_vm4, %v5062_v45  ;;  %v1433_v2 = vpop.permute.xlu0 %1432 }
  0x96   : > { %4797 = vmatpush3.bf16.msra.mxu1 %v483_v43  ;;  %527 = vmatprep.mubr.bf16.mxu0 %v7523_v14  ;;  %v1436_v8 = vsel %vm1434_vm5, %v5328_v4, %v1433_v2  ;;  %v1468_v11 = vand.u32 %v1433_v2, %v5258_v36 }
  0x97   : > { %587 = vmatprep.mubr.bf16.mxu1 %v7523_v14  ;;  %4815 = vmatpush3.bf16.msra.mxu0 %v766_v41  ;;  %v1465_v12 = vand.u32 %v1436_v8, %v5258_v36  ;;  %v5377_v26 = vpop.permute.xlu1 %1805  ;;  %v3287_v41 = vcombine.high %v3245_v37, %v3245_v37 }
  0x98   : > { %782 = vmatprep.subr.bf16.mxu1 %v763_v49  ;;  %1109 = vmatprep.subr.bf16.mxu0 %v1090_v50  ;;  %v5088_v50 = vld [vmem:[%s7514_s1 + $0xc8] sm:$0xff]  }
  0x99   : > { %v1429_v24 = vpop.permute.xlu0 %1428  ;;  %v3301_v43 = vrot.slane %v3287_v41, %v5224_v5  ;;  %3303 = vrot.lane.b32.xlu1 %v3294_v39, %s5156_s27  ;;  %v5086_v5 = vld [vmem:[%s7514_s1 + $0xb8] sm:$0xff]  }
  0x9a   : > { %v1435_v33 = vsel %vm1434_vm5, %v1429_v24, %v5328_v4  ;;  %v5097_v4 = vld [vmem:[%s7514_s1 + $0x108] sm:$0xff]   ;;  %v5101_v24 = vld [vmem:[%s7514_s1 + $0x120] sm:$0xff]  }
  0x9b   : > { %v1462_v35 = vand.u32 %v1435_v33, %v5258_v36  ;;  %3307 = vrot.lane.b32.xlu0 %v3301_v43, %s5156_s27  ;;  %v1804_v46 = vpop.permute.xlu1 %1803 }
  0x9c   : > { %v1810_v49 = vsel %vm1809_vm6, %v1804_v46, %v5377_v26 }
  0x9d   : > { %4354 = vmatmul.mubr.msk.bf16.gmra.mxu0 %vm447_vm4, %v5063_v51  ;;  %4360 = vmatmul.mubr.msk.bf16.gmra.mxu1 %vm447_vm4, %v5064_v52  ;;  %v1808_v25 = vpop.permute.xlu0 %1807 }
  0x9e   : > { %537 = vmatprep.mubr.bf16.mxu0 %v7523_v14  ;;  %4798 = vmatprep.mubr.msk.bf16.mxu1 %vm447_vm4, %v5061_v44  ;;  %v1811_v28 = vsel %vm1809_vm6, %v5377_v26, %v1808_v25  ;;  %v1843_v38 = vand.u32 %v1808_v25, %v5258_v36  ;;  %v5085_v44 = vld [vmem:[%s7514_s1 + $0xb0] sm:$0xff]  }
  0x9f   : > { %v1840_v29 = vand.u32 %v1811_v28, %v5258_v36  ;;  %v5448_v48 = vpop.permute.xlu1 %2180 }
  0xa1   : > { %v2183_v47 = vpop.permute.xlu0 %2182 }
  0xa5   : > { %4355 = vmatmul.mubr.msk.bf16.gmra.mxu0 %vm447_vm4, %v5065_v53  ;;  %4799 = vmatmul.mubr.msk.bf16.vlgmr.msra.gmra.mxu1 %vm447_vm4, %v5063_v51  ;;  %v2186_v51 = vsel %vm2184_vm7, %v5448_v48, %v2183_v47 }
  0xa6   : > { %547 = vmatprep.mubr.bf16.mxu0 %v7523_v14  ;;  %4802 = vmatprep.mubr.msk.bf16.mxu1 %vm447_vm4, %v5065_v53  ;;  %v1837_v53 = vand.u32 %v1810_v49, %v5258_v36  ;;  %v2215_v55 = vand.u32 %v2186_v51, %v5258_v36 }
  0xa7   : > { %783 = vmatpush1.bf16.msra.mxu1 %v760_v54  ;;  %v2218_v54 = vand.u32 %v2183_v47, %v5258_v36 }
  0xa8   : > { %4832 = vmatprep.subr.bf16.mxu1 %v1093_v56 }
  0xad   : > { %4356 = vmatmul.mubr.msk.bf16.gmra.mxu0 %vm447_vm4, %v5066_v61  ;;  %4803 = vmatmul.mubr.msk.bf16.gmra.mxu1 %vm447_vm4, %v5066_v61  ;;  %v2179_v61 = vpop.permute.xlu0 %2178 }
  0xae   : > { %557 = vmatprep.mubr.bf16.mxu0 %v7523_v14  ;;  %4806 = vmatprep.mubr.msk.bf16.mxu1 %vm447_vm4, %v5067_v62 }
  0xb5   : > { %4357 = vmatmul.mubr.msk.bf16.gmra.mxu0 %vm447_vm4, %v5067_v62  ;;  %4807 = vmatmul.mubr.msk.bf16.gmra.mxu1 %vm447_vm4, %v5068_v63  ;;  %v2558_v62 = vpop.permute.xlu0 %2557 }
  0xb6   : > { %567 = vmatprep.mubr.bf16.mxu0 %v7523_v14  ;;  %4810 = vmatprep.mubr.msk.bf16.mxu1 %vm447_vm4, %v5062_v45  ;;  %v5087_v45 = vld [vmem:[%s7514_s1 + $0xc0] sm:$0xff]   ;;  %v5566_v28 = vand.u32 %v2558_v62, %v5258_v36 }
  0xbd   : > { %4358 = vmatmul.mubr.msk.bf16.gmra.mxu0 %vm447_vm4, %v5068_v63  ;;  %4811 = vmatmul.mubr.msk.bf16.gmra.mxu1 %vm447_vm4, %v5064_v52  ;;  %v5090_v52 = vld [vmem:[%s7514_s1 + $0xd0] sm:$0xff]   ;;  %v5494_v63 = vpop.permute.xlu1 %2555 }
  0xbe   : > { %800 = vmatprep.mubr.bf16.mxu1 %v7523_v14  ;;  %4816 = vmatprep.mubr.msk.bf16.mxu0 %vm447_vm4, %v5069_v0  ;;  %v2561_v1 = vsel %vm2559_vm8, %v5494_v63, %v2558_v62 }
  0xbf   : > { %v2590_v2 = vand.u32 %v2561_v1, %v5258_v36 }
  0xc5   : > { %4377 = vmatmul.mubr.msk.bf16.vlgmr.msra.gmra.mxu1 %vm447_vm4, %v5069_v0  ;;  %4817 = vmatmul.mubr.msk.bf16.vlgmr.msra.gmra.mxu0 %vm447_vm4, %v5070_v7  ;;  %v5096_v0 = vld [vmem:[%s7514_s1 + $0x100] sm:$0xff]  }
  0xc6   : > { %810 = vmatprep.mubr.bf16.mxu1 %v7523_v14  ;;  %4820 = vmatprep.mubr.msk.bf16.mxu0 %vm447_vm4, %v5072_v9 }
  0xc7   : > { %1110 = vmatpush1.bf16.msra.mxu0 %v1087_v10  ;;  %4833 = vmatpush3.bf16.msra.mxu1 %v1093_v56  ;;  %v5091_v56 = vld [vmem:[%s7514_s1 + $0xd8] sm:$0xff]  }
  0xc8   : > { %4850 = vmatprep.subr.bf16.mxu0 %v1468_v11  ;;  %1484 = vmatprep.subr.bf16.mxu1 %v1465_v12 }
  0xcd   : > { %4378 = vmatmul.mubr.msk.bf16.gmra.mxu1 %vm447_vm4, %v5070_v7  ;;  %4821 = vmatmul.mubr.msk.bf16.gmra.mxu0 %vm447_vm4, %v5073_v13 }
  0xce   : > { %820 = vmatprep.mubr.bf16.mxu1 %v7523_v14  ;;  %4824 = vmatprep.mubr.msk.bf16.mxu0 %vm447_vm4, %v5074_v15 }
  0xd5   : > { %4379 = vmatmul.mubr.msk.bf16.gmra.mxu1 %vm447_vm4, %v5072_v9  ;;  %4825 = vmatmul.mubr.msk.bf16.gmra.mxu0 %vm447_vm4, %v5075_v21 }
  0xd6   : > { %830 = vmatprep.mubr.bf16.mxu1 %v7523_v14  ;;  %4828 = vmatprep.mubr.msk.bf16.mxu0 %vm447_vm4, %v5076_v22 }
  0xdd   : > { %4380 = vmatmul.mubr.msk.bf16.gmra.mxu1 %vm447_vm4, %v5073_v13  ;;  %4829 = vmatmul.mubr.msk.bf16.gmra.mxu0 %vm447_vm4, %v5077_v23  ;;  %v5100_v13 = vld [vmem:[%s7514_s1 + $0x118] sm:$0xff]  }
  0xde   : > { %840 = vmatprep.mubr.bf16.mxu1 %v7523_v14  ;;  %1127 = vmatprep.mubr.bf16.mxu0 %v7523_v14 }
  0xe5   : > { %4381 = vmatmul.mubr.msk.bf16.gmra.mxu1 %vm447_vm4, %v5074_v15  ;;  %4417 = vmatmul.mubr.msk.bf16.vlgmr.msra.gmra.mxu0 %vm447_vm4, %v5078_v27 }
  0xe6   : > { %850 = vmatprep.mubr.bf16.mxu1 %v7523_v14  ;;  %1137 = vmatprep.mubr.bf16.mxu0 %v7523_v14 }
  0xe7   : > { %4851 = vmatpush3.bf16.msra.mxu0 %v1468_v11 }
  0xe8   : > { %1859 = vmatprep.subr.bf16.mxu0 %v1840_v29 }
  0xed   : > { %4382 = vmatmul.mubr.msk.bf16.gmra.mxu1 %vm447_vm4, %v5075_v21  ;;  %4418 = vmatmul.mubr.msk.bf16.gmra.mxu0 %vm447_vm4, %v5079_v30  ;;  %v2185_v21 = vsel %vm2184_vm7, %v2179_v61, %v5448_v48 }
  0xee   : > { %860 = vmatprep.mubr.bf16.mxu1 %v7523_v14  ;;  %1147 = vmatprep.mubr.bf16.mxu0 %v7523_v14 }
  0xf5   : > { %4383 = vmatmul.mubr.msk.bf16.gmra.mxu1 %vm447_vm4, %v5076_v22  ;;  %4419 = vmatmul.mubr.msk.bf16.gmra.mxu0 %vm447_vm4, %v5081_v31 }
  0xf6   : > { %870 = vmatprep.mubr.bf16.mxu1 %v7523_v14  ;;  %1157 = vmatprep.mubr.bf16.mxu0 %v7523_v14 }
  0xfd   : > { %4384 = vmatmul.mubr.msk.bf16.gmra.mxu1 %vm447_vm4, %v5077_v23  ;;  %4420 = vmatmul.mubr.msk.bf16.gmra.mxu0 %vm447_vm4, %v5082_v32 }
  0xfe   : > { %4834 = vmatprep.mubr.msk.bf16.mxu1 %vm447_vm4, %v5078_v27  ;;  %1167 = vmatprep.mubr.bf16.mxu0 %v7523_v14  ;;  %v2212_v27 = vand.u32 %v2185_v21, %v5258_v36  ;;  %v5108_v21 = vld [vmem:[%s7514_s1 + $0x150] sm:$0xff]  }
 0x105   : > { %4421 = vmatmul.mubr.msk.bf16.gmra.mxu0 %vm447_vm4, %v5083_v34  ;;  %4835 = vmatmul.mubr.msk.bf16.vlgmr.msra.gmra.mxu1 %vm447_vm4, %v5079_v30 }
 0x106   : > { %1177 = vmatprep.mubr.bf16.mxu0 %v7523_v14  ;;  %4838 = vmatprep.mubr.msk.bf16.mxu1 %vm447_vm4, %v5081_v31 }
 0x107   : > { %1485 = vmatpush1.bf16.msra.mxu1 %v1462_v35  ;;  %v5102_v35 = vld [vmem:[%s7514_s1 + $0x128] sm:$0xff]  }
 0x108   : > { %4868 = vmatprep.subr.bf16.mxu1 %v1843_v38 }
 0x10d   : > { %4422 = vmatmul.mubr.msk.bf16.gmra.mxu0 %vm447_vm4, %v5084_v42  ;;  %4839 = vmatmul.mubr.msk.bf16.gmra.mxu1 %vm447_vm4, %v5082_v32 }
 0x10e   : > { %1187 = vmatprep.mubr.bf16.mxu0 %v7523_v14  ;;  %4842 = vmatprep.mubr.msk.bf16.mxu1 %vm447_vm4, %v5083_v34 }
 0x115   : > { %4423 = vmatmul.mubr.msk.bf16.gmra.mxu0 %vm447_vm4, %v5085_v44  ;;  %4843 = vmatmul.mubr.msk.bf16.gmra.mxu1 %vm447_vm4, %v5084_v42 }
 0x116   : > { %1197 = vmatprep.mubr.bf16.mxu0 %v7523_v14  ;;  %4846 = vmatprep.mubr.msk.bf16.mxu1 %vm447_vm4, %v5085_v44 }
 0x11d   : > { %4847 = vmatmul.mubr.msk.bf16.gmra.mxu1 %vm447_vm4, %v5086_v5  ;;  %4424 = vmatmul.mubr.msk.bf16.gmra.mxu0 %vm447_vm4, %v5086_v5  ;;  %v5103_v5 = vld [vmem:[%s7514_s1 + $0x130] sm:$0xff]  }
 0x11e   : > { %1502 = vmatprep.mubr.bf16.mxu1 %v7523_v14  ;;  %4852 = vmatprep.mubr.msk.bf16.mxu0 %vm447_vm4, %v5087_v45 }
 0x125   : > { %4457 = vmatmul.mubr.msk.bf16.vlgmr.msra.gmra.mxu1 %vm447_vm4, %v5087_v45  ;;  %4853 = vmatmul.mubr.msk.bf16.vlgmr.msra.gmra.mxu0 %vm447_vm4, %v5088_v50 }
 0x126   : > { %1512 = vmatprep.mubr.bf16.mxu1 %v7523_v14  ;;  %4856 = vmatprep.mubr.msk.bf16.mxu0 %vm447_vm4, %v5090_v52 }
 0x127   : > { %1860 = vmatpush1.bf16.msra.mxu0 %v1837_v53  ;;  %4869 = vmatpush3.bf16.msra.mxu1 %v1843_v38  ;;  %v5104_v53 = vld [vmem:[%s7514_s1 + $0x138] sm:$0xff]  }
 0x128   : > { %4886 = vmatprep.subr.bf16.mxu0 %v2218_v54  ;;  %2234 = vmatprep.subr.bf16.mxu1 %v2215_v55  ;;  %v2554_v55 = vpop.permute.xlu1 %2553 }
 0x129   : > { %v2560_v1 = vsel %vm2559_vm8, %v2554_v55, %v5494_v63 }
 0x12a   : > { %v2587_v63 = vand.u32 %v2560_v1, %v5258_v36 }
 0x12c   : > { %v5649_v61 = vpop.permute.xlu1 %2930 }
 0x12d   : > { %4458 = vmatmul.mubr.msk.bf16.gmra.mxu1 %vm447_vm4, %v5088_v50  ;;  %4857 = vmatmul.mubr.msk.bf16.gmra.mxu0 %vm447_vm4, %v5091_v56 }
 0x12e   : > { %1522 = vmatprep.mubr.bf16.mxu1 %v7523_v14  ;;  %4860 = vmatprep.mubr.msk.bf16.mxu0 %vm447_vm4, %v5092_v57 }
 0x135   : > { %4459 = vmatmul.mubr.msk.bf16.gmra.mxu1 %vm447_vm4, %v5090_v52  ;;  %4861 = vmatmul.mubr.msk.bf16.gmra.mxu0 %vm447_vm4, %v5093_v58 }
 0x136   : > { %1532 = vmatprep.mubr.bf16.mxu1 %v7523_v14  ;;  %4864 = vmatprep.mubr.msk.bf16.mxu0 %vm447_vm4, %v5094_v59 }
 0x13d   : > { %4460 = vmatmul.mubr.msk.bf16.gmra.mxu1 %vm447_vm4, %v5091_v56  ;;  %4865 = vmatmul.mubr.msk.bf16.gmra.mxu0 %vm447_vm4, %v5095_v60 }
 0x13e   : > { %1542 = vmatprep.mubr.bf16.mxu1 %v7523_v14  ;;  %1877 = vmatprep.mubr.bf16.mxu0 %v7523_v14 }
 0x145   : > { %4461 = vmatmul.mubr.msk.bf16.gmra.mxu1 %vm447_vm4, %v5092_v57  ;;  %4497 = vmatmul.mubr.msk.bf16.vlgmr.msra.gmra.mxu0 %vm447_vm4, %v5096_v0 }
 0x146   : > { %1552 = vmatprep.mubr.bf16.mxu1 %v7523_v14  ;;  %1887 = vmatprep.mubr.bf16.mxu0 %v7523_v14 }
 0x147   : > { %4887 = vmatpush3.bf16.msra.mxu0 %v2218_v54  ;;  %v5105_v54 = vld [vmem:[%s7514_s1 + $0x140] sm:$0xff]  }
 0x148   : > { %2609 = vmatprep.subr.bf16.mxu0 %v2590_v2 }
 0x14d   : > { %4462 = vmatmul.mubr.msk.bf16.gmra.mxu1 %vm447_vm4, %v5093_v58  ;;  %4498 = vmatmul.mubr.msk.bf16.gmra.mxu0 %vm447_vm4, %v5097_v4 }
 0x14e   : > { %1562 = vmatprep.mubr.bf16.mxu1 %v7523_v14  ;;  %1897 = vmatprep.mubr.bf16.mxu0 %v7523_v14 }
 0x155   : > { %v5516_v7 = vpop.f32.mrf.mxu0  ;;  %v5518_v8 = vpop.f32.mrf.mxu1  ;;  %4463 = vmatmul.mubr.msk.bf16.gmra.mxu1 %vm447_vm4, %v5094_v59  ;;  %4499 = vmatmul.mubr.msk.bf16.gmra.mxu0 %vm447_vm4, %v5099_v6 }
 0x156   : > { %1572 = vmatprep.mubr.bf16.mxu1 %v7523_v14  ;;  %1907 = vmatprep.mubr.bf16.mxu0 %v7523_v14 }
 0x157   : > { %v5524_v9 = vpop.f32.mrf.mxu0  ;;  %v5526_v10 = vpop.f32.mrf.mxu1 }
 0x159   : > { %v5528_v11 = vpop.f32.mrf.mxu0  ;;  %v5530_v12 = vpop.f32.mrf.mxu1 }
 0x15b   : > { %v5535_v15 = vpop.f32.mrf.mxu0  ;;  %v5537_v16 = vpop.f32.mrf.mxu1 }
 0x15d   : > { %v5539_v17 = vpop.f32.mrf.mxu0  ;;  %v5541_v18 = vpop.f32.mrf.mxu1  ;;  %4464 = vmatmul.mubr.msk.bf16.gmra.mxu1 %vm447_vm4, %v5095_v60  ;;  %4500 = vmatmul.mubr.msk.bf16.gmra.mxu0 %vm447_vm4, %v5100_v13 }
 0x15e   : > { %7549 = vst [vmem:[#allocation4_spill] sm:$0xff] %v5541_v18  ;;  %4870 = vmatprep.mubr.msk.bf16.mxu1 %vm447_vm4, %v5096_v0  ;;  %1917 = vmatprep.mubr.bf16.mxu0 %v7523_v14  ;;  %v2933_v60 = vpop.permute.xlu0 %2932 }
 0x15f   : > { %v5547_v19 = vpop.f32.mrf.mxu0  ;;  %v5549_v20 = vpop.f32.mrf.mxu1 }
 0x160   : > { %7550 = vst [vmem:[#allocation5_spill] sm:$0xff] %v5549_v20 }
 0x161   : > { %v5553_v22 = vpop.f32.mrf.mxu0  ;;  %v5555_v23 = vpop.f32.mrf.mxu1 }
 0x162   : > { %7551 = vst [vmem:[#allocation6_spill] sm:$0xff] %v5555_v23 }
 0x163   : > { %v5560_v25 = vpop.f32.mrf.mxu0  ;;  %v5562_v26 = vpop.f32.mrf.mxu1 }
 0x164   : > { %7552 = vst [vmem:[#allocation7_spill] sm:$0xff] %v5562_v26  ;;  %v7553_v26 = vmov 0  }
 0x165   : > { %v5568_v29 = vpop.f32.mrf.mxu0  ;;  %v5570_v30 = vpop.f32.mrf.mxu1  ;;  %4501 = vmatmul.mubr.msk.bf16.gmra.mxu0 %vm447_vm4, %v5101_v24  ;;  %4871 = vmatmul.mubr.msk.bf16.vlgmr.msra.gmra.mxu1 %vm447_vm4, %v5097_v4 }
 0x166   : > { %1927 = vmatprep.mubr.bf16.mxu0 %v7523_v14  ;;  %4874 = vmatprep.mubr.msk.bf16.mxu1 %vm447_vm4, %v5099_v6  ;;  %v5106_v6 = vld [vmem:[%s7514_s1 + $0x148] sm:$0xff]  }
 0x167   : > { %v5576_v31 = vpop.f32.mrf.mxu0  ;;  %v5578_v32 = vpop.f32.mrf.mxu1  ;;  %2235 = vmatpush1.bf16.msra.mxu1 %v2212_v27 }
 0x168   : > { %4904 = vmatprep.subr.bf16.mxu1 %v5566_v28 }
 0x169   : > { %v5581_v33 = vpop.f32.mrf.mxu0  ;;  %v5583_v34 = vpop.f32.mrf.mxu1 }
 0x16b   : > { %v5588_v37 = vpop.f32.mrf.mxu0  ;;  %v5590_v38 = vpop.f32.mrf.mxu1 }
 0x16d   : > { %v5592_v39 = vpop.f32.mrf.mxu0  ;;  %v5594_v40 = vpop.f32.mrf.mxu1  ;;  %4502 = vmatmul.mubr.msk.bf16.gmra.mxu0 %vm447_vm4, %v5102_v35  ;;  %4875 = vmatmul.mubr.msk.bf16.gmra.mxu1 %vm447_vm4, %v5100_v13  ;;  %v2936_v13 = vsel %vm2934_vm9, %v5649_v61, %v2933_v60 }
 0x16e   : > { %1937 = vmatprep.mubr.bf16.mxu0 %v7523_v14  ;;  %4878 = vmatprep.mubr.msk.bf16.mxu1 %vm447_vm4, %v5101_v24 }
 0x16f   : > { %v5600_v41 = vpop.f32.mrf.mxu0  ;;  %v5602_v42 = vpop.f32.mrf.mxu1 }
 0x171   : > { %v5604_v43 = vpop.f32.mrf.mxu0  ;;  %v5606_v44 = vpop.f32.mrf.mxu1 }
 0x173   : > { %v5611_v45 = vpop.f32.mrf.mxu0  ;;  %v5613_v46 = vpop.f32.mrf.mxu1 }
 0x175   : > { %v5615_v47 = vpop.f32.mrf.mxu0  ;;  %v5617_v48 = vpop.f32.mrf.mxu1  ;;  %4503 = vmatmul.mubr.msk.bf16.gmra.mxu0 %vm447_vm4, %v5103_v5  ;;  %4879 = vmatmul.mubr.msk.bf16.gmra.mxu1 %vm447_vm4, %v5102_v35  ;;  %v5675_v35 = vand.u32 %v2933_v60, %v5258_v36 }
 0x176   : > { %1947 = vmatprep.mubr.bf16.mxu0 %v7523_v14  ;;  %4882 = vmatprep.mubr.msk.bf16.mxu1 %vm447_vm4, %v5103_v5  ;;  %v2965_v5 = vand.u32 %v2936_v13, %v5258_v36 }
 0x177   : > { %v5623_v49 = vpop.f32.mrf.mxu0  ;;  %v5625_v50 = vpop.f32.mrf.mxu1 }
 0x179   : > { %v5627_v51 = vpop.f32.mrf.mxu0  ;;  %v5629_v52 = vpop.f32.mrf.mxu1 }
 0x17b   : > { %v5637_v56 = vpop.f32.mrf.mxu0  ;;  %v5639_v57 = vpop.f32.mrf.mxu1 }
 0x17d   : > { %v5641_v58 = vpop.f32.mrf.mxu0  ;;  %v5643_v59 = vpop.f32.mrf.mxu1  ;;  %4883 = vmatmul.mubr.msk.bf16.gmra.mxu1 %vm447_vm4, %v5104_v53  ;;  %4504 = vmatmul.mubr.msk.bf16.gmra.mxu0 %vm447_vm4, %v5104_v53 }
 0x17e   : > { %2252 = vmatprep.mubr.bf16.mxu1 %v7523_v14  ;;  %4888 = vmatprep.mubr.msk.bf16.mxu0 %vm447_vm4, %v5105_v54 }
 0x17f   : > { %v5651_v62 = vpop.f32.mrf.mxu0  ;;  %v5653_v0 = vpop.f32.mrf.mxu1 }
 0x181   : > { %v5657_v2 = vpop.f32.mrf.mxu0  ;;  %v5659_v4 = vpop.f32.mrf.mxu1 }
 0x183   : > { %v5669_v24 = vpop.f32.mrf.mxu0  ;;  %v5671_v27 = vpop.f32.mrf.mxu1 }
 0x185   : > { %v802_v53 = vpop.f32.mrf.mxu1  ;;  %v4818_v55 = vpop.f32.mrf.mxu0  ;;  %4537 = vmatmul.mubr.msk.bf16.vlgmr.msra.gmra.mxu1 %vm447_vm4, %v5105_v54  ;;  %4889 = vmatmul.mubr.msk.bf16.vlgmr.msra.gmra.mxu0 %vm447_vm4, %v5106_v6 }
 0x186   : > { %v5681_v14 = vadd.f32 %v802_v53, %v5516_v7  ;;  %v5684_v3 = vadd.f32 %v4818_v55, %v5570_v30  ;;  %2262 = vmatprep.mubr.bf16.mxu1 %v7553_v26  ;;  %4892 = vmatprep.mubr.msk.bf16.mxu0 %vm447_vm4, %v5108_v21  ;;  %v5109_v53 = vld [vmem:[%s7514_s1 + $0x158] sm:$0xff]  }
 0x187   : > { %v804_v60 = vpop.f32.mrf.mxu1  ;;  %v915_v1 = vpop.f32.mrf.mxu0  ;;  %2610 = vmatpush1.bf16.msra.mxu0 %v2587_v63  ;;  %4905 = vmatpush3.bf16.msra.mxu1 %v5566_v28 }
 0x188   : > { %v5690_v13 = vadd.f32 %v804_v60, %v5524_v9  ;;  %v5693_v54 = vadd.f32 %v915_v1, %v5578_v32  ;;  %4922 = vmatprep.subr.bf16.mxu0 %v5675_v35  ;;  %2984 = vmatprep.subr.bf16.mxu1 %v2965_v5  ;;  %v5708_v9 = vld [vmem:[%s7514_s1 + $0x160] sm:$0xff]  }
 0x189   : > { %v806_v7 = vpop.f32.mrf.mxu1  ;;  %v4819_v30 = vpop.f32.mrf.mxu0 }
 0x18a   : > { %v5700_v55 = vadd.f32 %v806_v7, %v5528_v11  ;;  %v5703_v28 = vadd.f32 %v4819_v30, %v5583_v34 }
 0x18b   : > { %v808_v32 = vpop.f32.mrf.mxu1  ;;  %v918_v63 = vpop.f32.mrf.mxu0 }
 0x18c   : > { %v5711_v5 = vadd.f32 %v808_v32, %v5535_v15  ;;  %v5714_v60 = vadd.f32 %v918_v63, %v5590_v38 }
 0x18d   : > { %v812_v1 = vpop.f32.mrf.mxu1  ;;  %v4822_v23 = vpop.f32.mrf.mxu0  ;;  %4538 = vmatmul.mubr.msk.bf16.gmra.mxu1 %vm447_vm4, %v5106_v6  ;;  %4893 = vmatmul.mubr.msk.bf16.gmra.mxu0 %vm447_vm4, %v5109_v53 }
 0x18e   : > { %v5719_v11 = vadd.f32 %v812_v1, %v5539_v17  ;;  %v5722_v34 = vadd.f32 %v4822_v23, %v5594_v40  ;;  %2272 = vmatprep.mubr.bf16.mxu1 %v7553_v26  ;;  %4896 = vmatprep.mubr.msk.bf16.mxu0 %vm447_vm4, %v5708_v9  ;;  %v5736_v17 = vld [vmem:[%s7514_s1 + $0x168] sm:$0xff]  }
 0x18f   : > { %v814_v15 = vpop.f32.mrf.mxu1  ;;  %v931_v38 = vpop.f32.mrf.mxu0 }
 0x190   : > { %v5728_v7 = vadd.f32 %v814_v15, %v5547_v19  ;;  %v5731_v6 = vadd.f32 %v931_v38, %v5602_v42  ;;  %v5747_v19 = vld [vmem:[%s7514_s1 + $0x170] sm:$0xff]  }
 0x191   : > { %v816_v30 = vpop.f32.mrf.mxu1  ;;  %v4823_v32 = vpop.f32.mrf.mxu0 }
 0x192   : > { %v5739_v23 = vadd.f32 %v816_v30, %v5553_v22  ;;  %v5742_v40 = vadd.f32 %v4823_v32, %v5606_v44 }
 0x193   : > { %v818_v42 = vpop.f32.mrf.mxu1  ;;  %v934_v63 = vpop.f32.mrf.mxu0 }
 0x194   : > { %v5750_v1 = vadd.f32 %v818_v42, %v5560_v25  ;;  %v5753_v15 = vadd.f32 %v934_v63, %v5613_v46  ;;  %v5784_v63 = vpop.permute.xlu0 %2928 }
 0x195   : > { %v822_v38 = vpop.f32.mrf.mxu1  ;;  %v4826_v20 = vpop.f32.mrf.mxu0  ;;  %4539 = vmatmul.mubr.msk.bf16.gmra.mxu1 %vm447_vm4, %v5108_v21  ;;  %4897 = vmatmul.mubr.msk.bf16.gmra.mxu0 %vm447_vm4, %v5736_v17 }
 0x196   : > { %v5759_v22 = vadd.f32 %v822_v38, %v5568_v29  ;;  %v5762_v44 = vadd.f32 %v4826_v20, %v5617_v48  ;;  %2282 = vmatprep.mubr.bf16.mxu1 %v7553_v26  ;;  %4900 = vmatprep.mubr.msk.bf16.mxu0 %vm447_vm4, %v5747_v19  ;;  %v5776_v20 = vld [vmem:[%s7514_s1 + $0x178] sm:$0xff]  }
 0x197   : > { %v824_v25 = vpop.f32.mrf.mxu1  ;;  %v947_v46 = vpop.f32.mrf.mxu0 }
 0x198   : > { %v5768_v30 = vadd.f32 %v824_v25, %v5576_v31  ;;  %v5771_v21 = vadd.f32 %v947_v46, %v5625_v50 }
 0x199   : > { %v826_v32 = vpop.f32.mrf.mxu1  ;;  %v4827_v42 = vpop.f32.mrf.mxu0 }
 0x19a   : > { %v5779_v29 = vadd.f32 %v826_v32, %v5581_v33  ;;  %v5782_v48 = vadd.f32 %v4827_v42, %v5629_v52 }
 0x19b   : > { %v828_v31 = vpop.f32.mrf.mxu1  ;;  %v950_v38 = vpop.f32.mrf.mxu0 }
 0x19c   : > { %7554 = vst [vmem:[#allocation8_spill] sm:$0xff] %v5782_v48  ;;  %v5787_v50 = vadd.f32 %v828_v31, %v5588_v37  ;;  %v5790_v25 = vadd.f32 %v950_v38, %v5639_v57  ;;  %v5803_v37 = vpop.permute.xlu0 %3307 }
 0x19d   : > { %v832_v46 = vpop.f32.mrf.mxu1  ;;  %4540 = vmatmul.mubr.msk.bf16.gmra.mxu1 %vm447_vm4, %v5109_v53  ;;  %v4830_v18 = vpop.f32.mrf.mxu0  ;;  %4901 = vmatmul.mubr.msk.bf16.gmra.mxu0 %vm447_vm4, %v5776_v20 }
 0x19e   : > { %7555 = vst [vmem:[#allocation9_spill] sm:$0xff] %v5790_v25  ;;  %v5796_v33 = vadd.f32 %v832_v46, %v5592_v39  ;;  %v5799_v52 = vadd.f32 %v4830_v18, %v5643_v59  ;;  %2292 = vmatprep.mubr.bf16.mxu1 %v7553_v26  ;;  %2627 = vmatprep.mubr.bf16.mxu0 %v7553_v26  ;;  %v5811_v39 = vpop.permute.xlu1 %3305  ;;  %v5816_v59 = vld [vmem:[%s7514_s1 + $0x180] sm:$0xff]  }
 0x19f   : > { %v834_v57 = vpop.f32.mrf.mxu1  ;;  %v963_v32 = vpop.f32.mrf.mxu0  ;;  %v3311_v38 = vsel %vm3309_vm10, %v5811_v39, %v5803_v37 }
 0x1a0   : > { %7556 = vst [vmem:[#allocation10_spill] sm:$0xff] %v5799_v52  ;;  %v5806_v53 = vadd.f32 %v834_v57, %v5600_v41  ;;  %v5809_v42 = vadd.f32 %v963_v32, %v5653_v0  ;;  %v3340_v52 = vand.u32 %v3311_v38, %v5258_v36 }
 0x1a1   : > { %v836_v31 = vpop.f32.mrf.mxu1  ;;  %v4831_v18 = vpop.f32.mrf.mxu0 }
 0x1a2   : > { %7557 = vst [vmem:[#allocation11_spill] sm:$0xff] %v5809_v42  ;;  %v5822_v46 = vadd.f32 %v836_v31, %v5604_v43  ;;  %v5825_v41 = vadd.f32 %v4831_v18, %v5659_v4 }
 0x1a3   : > { %v838_v0 = vpop.f32.mrf.mxu1  ;;  %v966_v57 = vpop.f32.mrf.mxu0 }
 0x1a4   : > { %v5828_v32 = vadd.f32 %v838_v0, %v5611_v45  ;;  %v5831_v42 = vadd.f32 %v966_v57, %v5671_v27  ;;  %v346_v57 = vld [vmem:[%s7515_s2 + $0x78] sm:$0xff] }
 0x1a5   : > { %v842_v25 = vpop.f32.mrf.mxu1  ;;  %v1129_v48 = vpop.f32.mrf.mxu0  ;;  %4541 = vmatmul.mubr.msk.bf16.gmra.mxu1 %vm447_vm4, %v5708_v9  ;;  %4577 = vmatmul.mubr.msk.bf16.vlgmr.msra.gmra.mxu0 %vm447_vm4, %v5816_v59 }
 0x1a6   : > { %v5839_v43 = vadd.f32 %v842_v25, %v5615_v47  ;;  %v5842_v4 = vadd.f32 %v1129_v48, %v5681_v14  ;;  %2302 = vmatprep.mubr.bf16.mxu1 %v7553_v26  ;;  %2637 = vmatprep.mubr.bf16.mxu0 %v7553_v26  ;;  %v5856_v14 = vld [vmem:[%s7514_s1 + $0x188] sm:$0xff]  }
 0x1a7   : > { %v844_v45 = vpop.f32.mrf.mxu1  ;;  %v1131_v27 = vpop.f32.mrf.mxu0  ;;  %4923 = vmatpush3.bf16.msra.mxu0 %v5675_v35  ;;  %3680 = vperm.xlu0 %5056, %v346_v57  }
 0x1a8   : > { %v5848_v31 = vadd.f32 %v844_v45, %v5623_v49  ;;  %v5851_v9 = vadd.f32 %v1131_v27, %v5690_v13  ;;  %3359 = vmatprep.subr.bf16.mxu0 %v3340_v52  ;;  %v5894_v27 = vld [vmem:[%s7514_s1 + $0x190] sm:$0xff]  }
 0x1a9   : > { %v846_v47 = vpop.f32.mrf.mxu1  ;;  %v1133_v25 = vpop.f32.mrf.mxu0 }
 0x1aa   : > { %v5859_v48 = vadd.f32 %v846_v47, %v5627_v51  ;;  %v5862_v18 = vadd.f32 %v1133_v25, %v5700_v55 }
 0x1ab   : > { %v848_v35 = vpop.f32.mrf.mxu1  ;;  %v1135_v49 = vpop.f32.mrf.mxu0 }
 0x1ac   : > { %v5865_v38 = vadd.f32 %v848_v35, %v5637_v56  ;;  %v5868_v13 = vadd.f32 %v1135_v49, %v5711_v5  ;;  %v343_v49 = vld [vmem:[%s7515_s2 + $0x60] sm:$0xff] }
 0x1ad   : > { %v852_v52 = vpop.f32.mrf.mxu1  ;;  %v1139_v0 = vpop.f32.mrf.mxu0  ;;  %4542 = vmatmul.mubr.msk.bf16.gmra.mxu1 %vm447_vm4, %v5736_v17  ;;  %4578 = vmatmul.mubr.msk.bf16.gmra.mxu0 %vm447_vm4, %v5856_v14 }
 0x1ae   : > { %v5875_v51 = vadd.f32 %v852_v52, %v5641_v58  ;;  %v5878_v55 = vadd.f32 %v1139_v0, %v5719_v11  ;;  %2312 = vmatprep.mubr.bf16.mxu1 %v7553_v26  ;;  %2647 = vmatprep.mubr.bf16.mxu0 %v7553_v26 }
 0x1af   : > { %v854_v56 = vpop.f32.mrf.mxu1  ;;  %v1141_v5 = vpop.f32.mrf.mxu0  ;;  %3665 = vperm.xlu0 %5056, %v343_v49   ;;  %v339_v49 = vld [vmem:[%s7515_s2 + $0x40] sm:$0xff] }
 0x1b0   : > { %v5886_v17 = vadd.f32 %v854_v56, %v5651_v62  ;;  %v5889_v45 = vadd.f32 %v1141_v5, %v5728_v7  ;;  %v345_v7 = vld [vmem:[%s7515_s2 + $0x70] sm:$0xff]  ;;  %v344_v5 = vld [vmem:[%s7515_s2 + $0x68] sm:$0xff] }
 0x1b1   : > { %v856_v58 = vpop.f32.mrf.mxu1  ;;  %v1143_v11 = vpop.f32.mrf.mxu0  ;;  %3675 = vperm.xlu1 %5057, %v345_v7  }
 0x1b2   : > { %v5897_v47 = vadd.f32 %v856_v58, %v5657_v2  ;;  %v5900_v25 = vadd.f32 %v1143_v11, %v5739_v23  ;;  %v5941_v11 = vld [vmem:[%s7514_s1 + $0x198] sm:$0xff]  }
 0x1b3   : > { %v858_v35 = vpop.f32.mrf.mxu1  ;;  %v1145_v62 = vpop.f32.mrf.mxu0 }
 0x1b4   : > { %v5909_v52 = vadd.f32 %v858_v35, %v5669_v24  ;;  %v5912_v0 = vadd.f32 %v1145_v62, %v5750_v1 }
 0x1b5   : > { %v5914_v2 = vpop.f32.mrf.mxu1  ;;  %v1149_v23 = vpop.f32.mrf.mxu0  ;;  %4543 = vmatmul.mubr.msk.bf16.gmra.mxu1 %vm447_vm4, %v5747_v19  ;;  %4579 = vmatmul.mubr.msk.bf16.gmra.mxu0 %vm447_vm4, %v5894_v27  ;;  %v341_v19 = vld [vmem:[%s7515_s2 + $0x50] sm:$0xff] }
 0x1b6   : > { %v5921_v56 = vadd.f32 %v1149_v23, %v5759_v22  ;;  %2322 = vmatprep.mubr.bf16.mxu1 %v7553_v26  ;;  %2657 = vmatprep.mubr.bf16.mxu0 %v7553_v26 }
 0x1b7   : > { %v5925_v24 = vpop.f32.mrf.mxu1  ;;  %v1151_v1 = vpop.f32.mrf.mxu0  ;;  %3670 = vperm.xlu1 %5057, %v344_v5   ;;  %3655 = vperm.xlu0 %5056, %v341_v19  }
 0x1b8   : > { %v5934_v57 = vadd.f32 %v1151_v1, %v5768_v30  ;;  %v342_v30 = vld [vmem:[%s7515_s2 + $0x58] sm:$0xff] }
 0x1b9   : > { %v5936_v22 = vpop.f32.mrf.mxu1  ;;  %v1153_v58 = vpop.f32.mrf.mxu0 }
 0x1ba   : > { %v5944_v35 = vadd.f32 %v1153_v58, %v5779_v29  ;;  %v340_v58 = vld [vmem:[%s7515_s2 + $0x48] sm:$0xff] }
 0x1bb   : > { %v5946_v62 = vpop.f32.mrf.mxu1  ;;  %v1155_v7 = vpop.f32.mrf.mxu0  ;;  %3660 = vperm.xlu1 %5057, %v342_v30   ;;  %3645 = vperm.xlu0 %5056, %v339_v49   ;;  %v5118_v49 = vld [vmem:[%s7514_s1 + $0x1a0] sm:$0xff]  }
 0x1bc   : > { %v5955_v23 = vadd.f32 %v1155_v7, %v5787_v50 }
 0x1bd   : > { %v5957_v1 = vpop.f32.mrf.mxu1  ;;  %v1159_v29 = vpop.f32.mrf.mxu0  ;;  %4544 = vmatmul.mubr.msk.bf16.gmra.mxu1 %vm447_vm4, %v5776_v20  ;;  %4580 = vmatmul.mubr.msk.bf16.gmra.mxu0 %vm447_vm4, %v5941_v11  ;;  %v337_v20 = vld [vmem:[%s7515_s2 + $0x30] sm:$0xff] }
 0x1be   : > { %v5964_v5 = vadd.f32 %v1159_v29, %v5796_v33  ;;  %4906 = vmatprep.mubr.msk.bf16.mxu1 %vm447_vm4, %v5816_v59  ;;  %2667 = vmatprep.mubr.bf16.mxu0 %v7553_v26  ;;  %v2935_v33 = vsel %vm2934_vm9, %v5784_v63, %v5649_v61  ;;  %v338_v61 = vld [vmem:[%s7515_s2 + $0x38] sm:$0xff]  ;;  %v335_v63 = vld [vmem:[%s7515_s2 + $0x20] sm:$0xff] }
 0x1bf   : > { %v5969_v50 = vpop.f32.mrf.mxu1  ;;  %v1161_v19 = vpop.f32.mrf.mxu0  ;;  %3650 = vperm.xlu1 %5057, %v340_v58   ;;  %3635 = vperm.xlu0 %5056, %v337_v20  }
 0x1c0   : > { %7558 = vst [vmem:[#allocation12_spill] sm:$0xff] %v5964_v5  ;;  %v5978_v7 = vadd.f32 %v1161_v19, %v5806_v53  ;;  %v2962_v19 = vand.u32 %v2935_v33, %v5258_v36 }
 0x1c1   : > { %v5983_v59 = vpop.f32.mrf.mxu1  ;;  %v1163_v30 = vpop.f32.mrf.mxu0 }
 0x1c2   : > { %v5989_v29 = vadd.f32 %v1163_v30, %v5822_v46  ;;  %v6005_v46 = vand.u32 %v5803_v37, %v5258_v36 }
 0x1c3   : > { %v5991_v5 = vpop.f32.mrf.mxu1  ;;  %v1165_v53 = vpop.f32.mrf.mxu0  ;;  %3640 = vperm.xlu1 %5057, %v338_v61   ;;  %3625 = vperm.xlu0 %5056, %v335_v63  }
 0x1c4   : > { %7559 = vst [vmem:[#allocation13_spill] sm:$0xff] %v5989_v29  ;;  %v6001_v58 = vadd.f32 %v1165_v53, %v5828_v32  ;;  %v336_v53 = vld [vmem:[%s7515_s2 + $0x28] sm:$0xff] }
 0x1c5   : > { %v1169_v20 = vpop.f32.mrf.mxu0  ;;  %v4836_v30 = vpop.f32.mrf.mxu1  ;;  %4581 = vmatmul.mubr.msk.bf16.gmra.mxu0 %vm447_vm4, %v5118_v49  ;;  %4907 = vmatmul.mubr.msk.bf16.vlgmr.msra.gmra.mxu1 %vm447_vm4, %v5856_v14 }
 0x1c6   : > { %v6011_v33 = vadd.f32 %v1169_v20, %v5839_v43  ;;  %v6014_v29 = vadd.f32 %v4836_v30, %v5684_v3  ;;  %2677 = vmatprep.mubr.bf16.mxu0 %v7553_v26  ;;  %4910 = vmatprep.mubr.msk.bf16.mxu1 %vm447_vm4, %v5894_v27  ;;  %v333_v43 = vld [vmem:[%s7515_s2 + $0x10] sm:$0xff] }
 0x1c7   : > { %v1171_v37 = vpop.f32.mrf.mxu0  ;;  %v1242_v32 = vpop.f32.mrf.mxu1  ;;  %2985 = vmatpush1.bf16.msra.mxu1 %v2962_v19  ;;  %3630 = vperm.xlu1 %5057, %v336_v53   ;;  %v5119_v19 = vld [vmem:[%s7514_s1 + $0x1a8] sm:$0xff]  }
 0x1c8   : > { %v6026_v14 = vadd.f32 %v1171_v37, %v5848_v31  ;;  %v6029_v3 = vadd.f32 %v1242_v32, %v5693_v54  ;;  %4940 = vmatprep.subr.bf16.mxu1 %v6005_v46  ;;  %3615 = vperm.xlu0 %5056, %v333_v43   ;;  %v334_v54 = vld [vmem:[%s7515_s2 + $0x18] sm:$0xff] }
 0x1c9   : > { %v1173_v27 = vpop.f32.mrf.mxu0  ;;  %v4837_v61 = vpop.f32.mrf.mxu1 }
 0x1ca   : > { %v6036_v63 = vadd.f32 %v1173_v27, %v5859_v48  ;;  %v6039_v20 = vadd.f32 %v4837_v61, %v5703_v28  ;;  %v331_v48 = vld [vmem:[%s7515_s2] sm:$0xff]  ;;  %v332_v61 = vld [vmem:[%s7515_s2 + $0x8] sm:$0xff] }
 0x1cb   : > { %v1175_v31 = vpop.f32.mrf.mxu0  ;;  %v1245_v30 = vpop.f32.mrf.mxu1  ;;  %3620 = vperm.xlu1 %5057, %v334_v54  }
 0x1cc   : > { %v6045_v37 = vadd.f32 %v1175_v31, %v5865_v38  ;;  %v6048_v32 = vadd.f32 %v1245_v30, %v5714_v60  ;;  %3605 = vperm.xlu0 %5056, %v331_v48  }
 0x1cd   : > { %v1179_v53 = vpop.f32.mrf.mxu0  ;;  %v4840_v28 = vpop.f32.mrf.mxu1  ;;  %4582 = vmatmul.mubr.msk.bf16.gmra.mxu0 %vm447_vm4, %v5119_v19  ;;  %4911 = vmatmul.mubr.msk.bf16.gmra.mxu1 %vm447_vm4, %v5941_v11 }
 0x1ce   : > { %v6057_v43 = vadd.f32 %v1179_v53, %v5875_v51  ;;  %v6060_v38 = vadd.f32 %v4840_v28, %v5722_v34  ;;  %2687 = vmatprep.mubr.bf16.mxu0 %v7553_v26  ;;  %4914 = vmatprep.mubr.msk.bf16.mxu1 %vm447_vm4, %v5118_v49  ;;  %v5120_v49 = vld [vmem:[%s7514_s1 + $0x1b0] sm:$0xff]  }
 0x1cf   : > { %v1181_v60 = vpop.f32.mrf.mxu0  ;;  %v1258_v27 = vpop.f32.mrf.mxu1  ;;  %3610 = vperm.xlu1 %5057, %v332_v61  }
 0x1d0   : > { %v6068_v31 = vadd.f32 %v1181_v60, %v5886_v17  ;;  %v6071_v51 = vadd.f32 %v1258_v27, %v5731_v6  ;;  %v863_v17 = vadd.f32 %v5914_v2, %v5518_v8 }
 0x1d1   : > { %v1183_v34 = vpop.f32.mrf.mxu0  ;;  %v4841_v11 = vpop.f32.mrf.mxu1 }
 0x1d2   : > { %v6077_v30 = vadd.f32 %v1183_v34, %v5897_v47  ;;  %v6080_v54 = vadd.f32 %v4841_v11, %v5742_v40  ;;  %v865_v40 = vadd.f32 %v5925_v24, %v5526_v10  ;;  %v869_v34 = vadd.f32 %v5946_v62, %v5537_v16  ;;  %v3304_v16 = vpop.permute.xlu1 %3303 }
 0x1d3   : > { %v1185_v48 = vpop.f32.mrf.mxu0  ;;  %v1261_v53 = vpop.f32.mrf.mxu1 }
 0x1d4   : > { %v6085_v6 = vadd.f32 %v1185_v48, %v5909_v52  ;;  %v6088_v28 = vadd.f32 %v1261_v53, %v5753_v15  ;;  %v867_v52 = vadd.f32 %v5936_v22, %v5530_v12  ;;  %v5122_v12 = vld [vmem:[%s7514_s1 + $0x1c0] sm:$0xff]   ;;  %v7561_v53 = vld [vmem:[#allocation4_spill] sm:$0xff] }
 0x1d5   : > { %v1189_v60 = vpop.f32.mrf.mxu0  ;;  %v4844_v27 = vpop.f32.mrf.mxu1  ;;  %4583 = vmatmul.mubr.msk.bf16.gmra.mxu0 %vm447_vm4, %v5120_v49  ;;  %4915 = vmatmul.mubr.msk.bf16.gmra.mxu1 %vm447_vm4, %v5119_v19 }
 0x1d6   : > { %v6094_v47 = vadd.f32 %v1189_v60, %v863_v17  ;;  %v6097_v61 = vadd.f32 %v4844_v27, %v5762_v44  ;;  %2697 = vmatprep.mubr.bf16.mxu0 %v7553_v26  ;;  %4918 = vmatprep.mubr.msk.bf16.mxu1 %vm447_vm4, %v5120_v49  ;;  %v5121_v44 = vld [vmem:[%s7514_s1 + $0x1b8] sm:$0xff]   ;;  %v7560_v49 = vld [vmem:[#allocation8_spill] sm:$0xff]  ;;  %v873_v17 = vadd.f32 %v5957_v1, %v7561_v53  ;;  %v7562_v27 = vld [vmem:[#allocation9_spill] sm:$0xff] }
 0x1d7   : > { %v1191_v8 = vpop.f32.mrf.mxu0  ;;  %v1274_v15 = vpop.f32.mrf.mxu1 }
 0x1d8   : > { %v6103_v2 = vadd.f32 %v1191_v8, %v865_v40  ;;  %v6106_v19 = vadd.f32 %v1274_v15, %v5771_v21  ;;  %v7563_v15 = vld [vmem:[#allocation5_spill] sm:$0xff] }
 0x1d9   : > { %v1193_v10 = vpop.f32.mrf.mxu0  ;;  %v4845_v24 = vpop.f32.mrf.mxu1 }
 0x1da   : > { %v6113_v11 = vadd.f32 %v1193_v10, %v867_v52  ;;  %v6116_v48 = vadd.f32 %v4845_v24, %v7560_v49  ;;  %v875_v52 = vadd.f32 %v5969_v50, %v7563_v15  ;;  %v7564_v10 = vld [vmem:[#allocation10_spill] sm:$0xff]  ;;  %v3310_v50 = vsel %vm3309_vm10, %v3304_v16, %v5811_v39  ;;  %v7568_v15 = vld [vmem:[#allocation7_spill] sm:$0xff] }
 0x1db   : > { %v1195_v21 = vpop.f32.mrf.mxu0  ;;  %v1277_v22 = vpop.f32.mrf.mxu1  ;;  %v3337_v16 = vand.u32 %v3310_v50, %v5258_v36 }
 0x1dc   : > { %v6123_v60 = vadd.f32 %v1195_v21, %v869_v34  ;;  %v6126_v40 = vadd.f32 %v1277_v22, %v7562_v27  ;;  %v7566_v21 = vld [vmem:[#allocation6_spill] sm:$0xff] }
 0x1dd   : > { %v4848_v62 = vpop.f32.mrf.mxu1  ;;  %4919 = vmatmul.mubr.msk.bf16.gmra.mxu1 %vm447_vm4, %v5121_v44  ;;  %v1199_v8 = vpop.f32.mrf.mxu0  ;;  %4584 = vmatmul.mubr.msk.bf16.gmra.mxu0 %vm447_vm4, %v5121_v44  ;;  %v877_v22 = vadd.f32 %v5983_v59, %v7566_v21  ;;  %v7567_v44 = vld [vmem:[#allocation11_spill] sm:$0xff] }
 0x1de   : > { %v6133_v24 = vadd.f32 %v4848_v62, %v7564_v10  ;;  %v6135_v49 = vadd.f32 %v1199_v8, %v873_v17  ;;  %3002 = vmatprep.mubr.bf16.mxu1 %v7553_v26  ;;  %4924 = vmatprep.mubr.msk.bf16.mxu0 %vm447_vm4, %v5122_v12  ;;  %v5123_v8 = vld [vmem:[%s7514_s1 + $0x1c8] sm:$0xff]   ;;  %v879_v10 = vadd.f32 %v5991_v5, %v7568_v15 }
 0x1df   : > { %v1201_v1 = vpop.f32.mrf.mxu0  ;;  %v1290_v34 = vpop.f32.mrf.mxu1 }
 0x1e0   : > { %7565 = vst [vmem:[#allocation8_spill] sm:$0xff] %v6135_v49  ;;  %v6141_v53 = vadd.f32 %v1201_v1, %v875_v52  ;;  %v6144_v27 = vadd.f32 %v1290_v34, %v7567_v44  ;;  %v5124_v52 = vld [vmem:[%s7514_s1 + $0x1d0] sm:$0xff]  }
 0x1e1   : > { %v1203_v62 = vpop.f32.mrf.mxu0  ;;  %v4849_v17 = vpop.f32.mrf.mxu1 }
 0x1e2   : > { %v6153_v49 = vadd.f32 %v1203_v62, %v877_v22  ;;  %v6156_v59 = vadd.f32 %v4849_v17, %v5825_v41 }
 0x1e3   : > { %v1205_v1 = vpop.f32.mrf.mxu0  ;;  %v1293_v39 = vpop.f32.mrf.mxu1 }
 0x1e4   : > { %v6162_v34 = vadd.f32 %v1205_v1, %v879_v10  ;;  %v6165_v21 = vadd.f32 %v1293_v39, %v5831_v42 }
 0x1e5   : > { %v1504_v44 = vpop.f32.mrf.mxu1  ;;  %v4854_v5 = vpop.f32.mrf.mxu0  ;;  %4617 = vmatmul.mubr.msk.bf16.vlgmr.msra.gmra.mxu1 %vm447_vm4, %v5122_v12  ;;  %4925 = vmatmul.mubr.msk.bf16.vlgmr.msra.gmra.mxu0 %vm447_vm4, %v5123_v8 }
 0x1e6   : > { %v6170_v41 = vadd.f32 %v1504_v44, %v5842_v4  ;;  %v6173_v22 = vadd.f32 %v4854_v5, %v6014_v29  ;;  %3012 = vmatprep.mubr.bf16.mxu1 %v7553_v26  ;;  %4928 = vmatprep.mubr.msk.bf16.mxu0 %vm447_vm4, %v5124_v52  ;;  %v5125_v29 = vld [vmem:[%s7514_s1 + $0x1d8] sm:$0xff]  }
 0x1e7   : > { %v1506_v36 = vpop.f32.mrf.mxu1  ;;  %v1617_v50 = vpop.f32.mrf.mxu0  ;;  %3360 = vmatpush1.bf16.msra.mxu0 %v3337_v16  ;;  %4941 = vmatpush3.bf16.msra.mxu1 %v6005_v46 }
 0x1e8   : > { %v6179_v42 = vadd.f32 %v1506_v36, %v5851_v9  ;;  %v6182_v12 = vadd.f32 %v1617_v50, %v6029_v3  ;;  %v6196_v9 = vld [vmem:[%s7514_s1 + $0x1e0] sm:$0xff]  }
 0x1e9   : > { %v1508_v4 = vpop.f32.mrf.mxu1  ;;  %v4855_v62 = vpop.f32.mrf.mxu0 }
 0x1ea   : > { %v6188_v17 = vadd.f32 %v1508_v4, %v5862_v18  ;;  %v6191_v15 = vadd.f32 %v4855_v62, %v6039_v20 }
 0x1eb   : > { %v1510_v46 = vpop.f32.mrf.mxu1  ;;  %v1620_v3 = vpop.f32.mrf.mxu0 }
 0x1ec   : > { %v6199_v10 = vadd.f32 %v1510_v46, %v5868_v13  ;;  %v6202_v1 = vadd.f32 %v1620_v3, %v6048_v32 }
 0x1ed   : > { %v1514_v39 = vpop.f32.mrf.mxu1  ;;  %v4858_v16 = vpop.f32.mrf.mxu0  ;;  %4618 = vmatmul.mubr.msk.bf16.gmra.mxu1 %vm447_vm4, %v5123_v8  ;;  %4929 = vmatmul.mubr.msk.bf16.gmra.mxu0 %vm447_vm4, %v5125_v29 }
 0x1ee   : > { %v6207_v18 = vadd.f32 %v1514_v39, %v5878_v55  ;;  %v6210_v20 = vadd.f32 %v4858_v16, %v6060_v38  ;;  %3022 = vmatprep.mubr.bf16.mxu1 %v7553_v26  ;;  %4932 = vmatprep.mubr.msk.bf16.mxu0 %vm447_vm4, %v6196_v9  ;;  %v6224_v55 = vld [vmem:[%s7514_s1 + $0x1e8] sm:$0xff]  }
 0x1ef   : > { %v1516_v13 = vpop.f32.mrf.mxu1  ;;  %v1633_v32 = vpop.f32.mrf.mxu0 }
 0x1f0   : > { %v6216_v44 = vadd.f32 %v1516_v13, %v5889_v45  ;;  %v6219_v8 = vadd.f32 %v1633_v32, %v6071_v51  ;;  %v6235_v45 = vld [vmem:[%s7514_s1 + $0x1f0] sm:$0xff]  }
 0x1f1   : > { %v1518_v5 = vpop.f32.mrf.mxu1  ;;  %v4859_v36 = vpop.f32.mrf.mxu0 }
 0x1f2   : > { %v6227_v38 = vadd.f32 %v1518_v5, %v5900_v25  ;;  %v6230_v50 = vadd.f32 %v4859_v36, %v6080_v54 }
 0x1f3   : > { %v1520_v51 = vpop.f32.mrf.mxu1  ;;  %v1636_v4 = vpop.f32.mrf.mxu0 }
 0x1f4   : > { %v6238_v62 = vadd.f32 %v1520_v51, %v5912_v0  ;;  %v6241_v46 = vadd.f32 %v1636_v4, %v6088_v28 }
 0x1f5   : > { %v1524_v3 = vpop.f32.mrf.mxu1  ;;  %v4862_v39 = vpop.f32.mrf.mxu0  ;;  %4619 = vmatmul.mubr.msk.bf16.gmra.mxu1 %vm447_vm4, %v5124_v52  ;;  %4933 = vmatmul.mubr.msk.bf16.gmra.mxu0 %vm447_vm4, %v6224_v55 }
 0x1f6   : > { %v6247_v25 = vadd.f32 %v1524_v3, %v5921_v56  ;;  %v6250_v54 = vadd.f32 %v4862_v39, %v6097_v61  ;;  %3032 = vmatprep.mubr.bf16.mxu1 %v7553_v26  ;;  %4936 = vmatprep.mubr.msk.bf16.mxu0 %vm447_vm4, %v6235_v45  ;;  %v6264_v56 = vld [vmem:[%s7514_s1 + $0x1f8] sm:$0xff]  }
 0x1f7   : > { %v1526_v0 = vpop.f32.mrf.mxu1  ;;  %v1649_v28 = vpop.f32.mrf.mxu0 }
 0x1f8   : > { %v6256_v16 = vadd.f32 %v1526_v0, %v5934_v57  ;;  %v6259_v52 = vadd.f32 %v1649_v28, %v6106_v19 }
 0x1f9   : > { %v1528_v13 = vpop.f32.mrf.mxu1  ;;  %v4863_v32 = vpop.f32.mrf.mxu0 }
 0x1fa   : > { %v6267_v61 = vadd.f32 %v1528_v13, %v5944_v35  ;;  %v6270_v5 = vadd.f32 %v4863_v32, %v6116_v48  ;;  %v7569_v35 = vld [vmem:[#allocation12_spill] sm:$0xff]  ;;  %v6298_v32 = vld [vmem:[%s7514_s1 + $0x200] sm:$0xff]  }
 0x1fb   : > { %v1530_v36 = vpop.f32.mrf.mxu1  ;;  %v1652_v51 = vpop.f32.mrf.mxu0 }
 0x1fc   : > { %v6273_v57 = vadd.f32 %v1530_v36, %v5955_v23  ;;  %v6276_v19 = vadd.f32 %v1652_v51, %v6126_v40 }
 0x1fd   : > { %v1534_v4 = vpop.f32.mrf.mxu1  ;;  %4620 = vmatmul.mubr.msk.bf16.gmra.mxu1 %vm447_vm4, %v5125_v29  ;;  %v4866_v3 = vpop.f32.mrf.mxu0  ;;  %4937 = vmatmul.mubr.msk.bf16.gmra.mxu0 %vm447_vm4, %v6264_v56 }
 0x1fe   : > { %v6282_v39 = vadd.f32 %v1534_v4, %v7569_v35  ;;  %v6285_v48 = vadd.f32 %v4866_v3, %v6133_v24  ;;  %3042 = vmatprep.mubr.bf16.mxu1 %v7553_v26  ;;  %3377 = vmatprep.mubr.bf16.mxu0 %v7553_v26  ;;  %v7570_v24 = vld [vmem:[#allocation13_spill] sm:$0xff] }
 0x1ff   : > { %v1536_v23 = vpop.f32.mrf.mxu1  ;;  %v1665_v40 = vpop.f32.mrf.mxu0 }
 0x200   : > { %v6290_v0 = vadd.f32 %v1536_v23, %v5978_v7  ;;  %v6293_v29 = vadd.f32 %v1665_v40, %v6144_v27 }
 0x201   : > { %v1538_v28 = vpop.f32.mrf.mxu1  ;;  %v4867_v13 = vpop.f32.mrf.mxu0 }
 0x202   : > { %v6301_v36 = vadd.f32 %v1538_v28, %v7570_v24  ;;  %v6304_v51 = vadd.f32 %v4867_v13, %v6156_v59 }
 0x203   : > { %v1540_v4 = vpop.f32.mrf.mxu1  ;;  %v1668_v3 = vpop.f32.mrf.mxu0 }
 0x204   : > { %v6307_v7 = vadd.f32 %v1540_v4, %v6001_v58  ;;  %v6310_v27 = vadd.f32 %v1668_v3, %v6165_v21 }
 0x205   : > { %v1544_v35 = vpop.f32.mrf.mxu1  ;;  %v1879_v23 = vpop.f32.mrf.mxu0  ;;  %4621 = vmatmul.mubr.msk.bf16.gmra.mxu1 %vm447_vm4, %v6196_v9  ;;  %4657 = vmatmul.mubr.msk.bf16.vlgmr.msra.gmra.mxu0 %vm447_vm4, %v6298_v32 }
 0x206   : > { %v6317_v40 = vadd.f32 %v1544_v35, %v6011_v33  ;;  %v6320_v59 = vadd.f32 %v1879_v23, %v6170_v41  ;;  %3052 = vmatprep.mubr.bf16.mxu1 %v7553_v26  ;;  %3387 = vmatprep.mubr.bf16.mxu0 %v7553_v26  ;;  %v6333_v33 = vld [vmem:[%s7514_s1 + $0x208] sm:$0xff]  }
 0x207   : > { %v1546_v58 = vpop.f32.mrf.mxu1  ;;  %v1881_v21 = vpop.f32.mrf.mxu0 }
 0x208   : > { %v6325_v28 = vadd.f32 %v1546_v58, %v6026_v14  ;;  %v6328_v9 = vadd.f32 %v1881_v21, %v6179_v42 }
 0x209   : > { %v1548_v13 = vpop.f32.mrf.mxu1  ;;  %v1883_v24 = vpop.f32.mrf.mxu0 }
 0x20a   : > { %v6336_v41 = vadd.f32 %v1548_v13, %v6036_v63  ;;  %v6339_v4 = vadd.f32 %v1883_v24, %v6188_v17 }
 0x20b   : > { %v1550_v3 = vpop.f32.mrf.mxu1  ;;  %v1885_v35 = vpop.f32.mrf.mxu0 }
 0x20c   : > { %v6342_v14 = vadd.f32 %v1550_v3, %v6045_v37  ;;  %v6345_v42 = vadd.f32 %v1885_v35, %v6199_v10 }
 0x20d   : > { %v1554_v23 = vpop.f32.mrf.mxu1  ;;  %v1889_v58 = vpop.f32.mrf.mxu0  ;;  %4622 = vmatmul.mubr.msk.bf16.gmra.mxu1 %vm447_vm4, %v6224_v55  ;;  %4658 = vmatmul.mubr.msk.bf16.gmra.mxu0 %vm447_vm4, %v6333_v33 }
 0x20e   : > { %v6352_v63 = vadd.f32 %v1554_v23, %v6057_v43  ;;  %v6355_v17 = vadd.f32 %v1889_v58, %v6207_v18  ;;  %3062 = vmatprep.mubr.bf16.mxu1 %v7553_v26  ;;  %3397 = vmatprep.mubr.bf16.mxu0 %v7553_v26  ;;  %v5132_v43 = vld [vmem:[%s7514_s1 + $0x210] sm:$0xff]  }
 0x20f   : > { %v1556_v37 = vpop.f32.mrf.mxu1  ;;  %v1891_v10 = vpop.f32.mrf.mxu0 }
 0x210   : > { %v6360_v21 = vadd.f32 %v1556_v37, %v6068_v31  ;;  %v6363_v55 = vadd.f32 %v1891_v10, %v6216_v44 }
 0x211   : > { %v1558_v13 = vpop.f32.mrf.mxu1  ;;  %v1893_v24 = vpop.f32.mrf.mxu0 }
 0x212   : > { %v6369_v18 = vadd.f32 %v1558_v13, %v6077_v30  ;;  %v6372_v3 = vadd.f32 %v1893_v24, %v6227_v38 }
 0x213   : > { %v1560_v35 = vpop.f32.mrf.mxu1  ;;  %v1895_v23 = vpop.f32.mrf.mxu0 }
 0x214   : > { %v6375_v31 = vadd.f32 %v1560_v35, %v6085_v6  ;;  %v6378_v44 = vadd.f32 %v1895_v23, %v6238_v62 }
 0x215   : > { %v1564_v58 = vpop.f32.mrf.mxu1  ;;  %v1899_v37 = vpop.f32.mrf.mxu0  ;;  %4623 = vmatmul.mubr.msk.bf16.gmra.mxu1 %vm447_vm4, %v6235_v45  ;;  %4659 = vmatmul.mubr.msk.bf16.gmra.mxu0 %vm447_vm4, %v5132_v43 }
 0x216   : > { %v6384_v30 = vadd.f32 %v1564_v58, %v6094_v47  ;;  %v6387_v38 = vadd.f32 %v1899_v37, %v6247_v25  ;;  %3072 = vmatprep.mubr.bf16.mxu1 %v7553_v26  ;;  %3407 = vmatprep.mubr.bf16.mxu0 %v7553_v26  ;;  %v5133_v47 = vld [vmem:[%s7514_s1 + $0x218] sm:$0xff]  }
 0x217   : > { %v1566_v6 = vpop.f32.mrf.mxu1  ;;  %v1901_v62 = vpop.f32.mrf.mxu0 }
 0x218   : > { %v6392_v10 = vadd.f32 %v1566_v6, %v6103_v2  ;;  %v6395_v13 = vadd.f32 %v1901_v62, %v6256_v16 }
 0x219   : > { %v1568_v45 = vpop.f32.mrf.mxu1  ;;  %v1903_v24 = vpop.f32.mrf.mxu0 }
 0x21a   : > { %v6401_v25 = vadd.f32 %v1568_v45, %v6113_v11  ;;  %v6404_v35 = vadd.f32 %v1903_v24, %v6267_v61  ;;  %v7571_v11 = vld [vmem:[#allocation8_spill] sm:$0xff] }
 0x21b   : > { %v1570_v23 = vpop.f32.mrf.mxu1  ;;  %v1905_v58 = vpop.f32.mrf.mxu0 }
 0x21c   : > { %v6407_v2 = vadd.f32 %v1570_v23, %v6123_v60  ;;  %v6410_v16 = vadd.f32 %v1905_v58, %v6273_v57 }
 0x21d   : > { %v1574_v37 = vpop.f32.mrf.mxu1  ;;  %v1909_v6 = vpop.f32.mrf.mxu0  ;;  %4624 = vmatmul.mubr.msk.bf16.gmra.mxu1 %vm447_vm4, %v6264_v56  ;;  %4660 = vmatmul.mubr.msk.bf16.gmra.mxu0 %vm447_vm4, %v5133_v47 }
 0x21e   : > { %v6416_v62 = vadd.f32 %v1574_v37, %v7571_v11  ;;  %v6419_v61 = vadd.f32 %v1909_v6, %v6282_v39  ;;  %3417 = vmatprep.mubr.bf16.mxu0 %v7553_v26  ;;  %4942 = vmatprep.mubr.msk.bf16.mxu1 %vm447_vm4, %v6298_v32  ;;  %v5134_v39 = vld [vmem:[%s7514_s1 + $0x220] sm:$0xff]  }
 0x21f   : > { %v1576_v60 = vpop.f32.mrf.mxu1  ;;  %v1911_v57 = vpop.f32.mrf.mxu0 }
 0x220   : > { %v6425_v45 = vadd.f32 %v1576_v60, %v6141_v53  ;;  %v6428_v56 = vadd.f32 %v1911_v57, %v6290_v0 }
 0x221   : > { %v1578_v24 = vpop.f32.mrf.mxu1  ;;  %v1913_v23 = vpop.f32.mrf.mxu0 }
 0x222   : > { %v6434_v58 = vadd.f32 %v1578_v24, %v6153_v49  ;;  %v6437_v37 = vadd.f32 %v1913_v23, %v6301_v36 }
 0x223   : > { %v1580_v32 = vpop.f32.mrf.mxu1  ;;  %v1915_v6 = vpop.f32.mrf.mxu0 }
 0x224   : > { %v6440_v53 = vadd.f32 %v1580_v32, %v6162_v34  ;;  %v6443_v0 = vadd.f32 %v1915_v6, %v6307_v7 }
 0x225   : > { %v1919_v11 = vpop.f32.mrf.mxu0  ;;  %v4872_v60 = vpop.f32.mrf.mxu1  ;;  %4661 = vmatmul.mubr.msk.bf16.gmra.mxu0 %vm447_vm4, %v5134_v39  ;;  %4943 = vmatmul.mubr.msk.bf16.vlgmr.msra.gmra.mxu1 %vm447_vm4, %v6333_v33  ;;  %v5135_v33 = vld [vmem:[%s7514_s1 + $0x228] sm:$0xff]  }
 0x226   : > { %v6449_v49 = vadd.f32 %v1919_v11, %v6317_v40  ;;  %v6452_v36 = vadd.f32 %v4872_v60, %v6173_v22  ;;  %3427 = vmatprep.mubr.bf16.mxu0 %v7553_v26  ;;  %4946 = vmatprep.mubr.msk.bf16.mxu1 %vm447_vm4, %v5132_v43 }
 0x227   : > { %v6456_v34 = vpop.f32.mrf.mxu0  ;;  %v6458_v7 = vpop.f32.mrf.mxu1 }
 0x229   : > { %v1923_v57 = vpop.f32.mrf.mxu0  ;;  %v4873_v24 = vpop.f32.mrf.mxu1 }
 0x22a   : > { %v6464_v40 = vadd.f32 %v1923_v57, %v6336_v41  ;;  %v6467_v22 = vadd.f32 %v4873_v24, %v6191_v15 }
 0x22b   : > { %v6469_v23 = vpop.f32.mrf.mxu0  ;;  %v6471_v32 = vpop.f32.mrf.mxu1 }
 0x22c   : > { %7572 = vst [vmem:[#allocation4_spill] sm:$0xff] %v6464_v40 }
 0x22d   : > { %v1929_v43 = vpop.f32.mrf.mxu0  ;;  %v4876_v6 = vpop.f32.mrf.mxu1  ;;  %4662 = vmatmul.mubr.msk.bf16.gmra.mxu0 %vm447_vm4, %v5135_v33  ;;  %4947 = vmatmul.mubr.msk.bf16.gmra.mxu1 %vm447_vm4, %v5133_v47 }
 0x22e   : > { %v6476_v11 = vadd.f32 %v1929_v43, %v6352_v63  ;;  %v6479_v60 = vadd.f32 %v4876_v6, %v6210_v20  ;;  %3437 = vmatprep.mubr.bf16.mxu0 %v7553_v26  ;;  %4950 = vmatprep.mubr.msk.bf16.mxu1 %vm447_vm4, %v5134_v39  ;;  %v5136_v63 = vld [vmem:[%s7514_s1 + $0x230] sm:$0xff]  }
 0x22f   : > { %v1931_v15 = vpop.f32.mrf.mxu0  ;;  %v2008_v41 = vpop.f32.mrf.mxu1 }
 0x230   : > { %v6484_v57 = vadd.f32 %v1931_v15, %v6360_v21  ;;  %v6487_v24 = vadd.f32 %v2008_v41, %v6219_v8 }
 0x231   : > { %v1933_v40 = vpop.f32.mrf.mxu0  ;;  %v4877_v47 = vpop.f32.mrf.mxu1 }
 0x232   : > { %v6493_v20 = vadd.f32 %v1933_v40, %v6369_v18  ;;  %v6496_v43 = vadd.f32 %v4877_v47, %v6230_v50 }
 0x233   : > { %v1935_v39 = vpop.f32.mrf.mxu0  ;;  %v2011_v6 = vpop.f32.mrf.mxu1 }
 0x234   : > { %v6499_v21 = vadd.f32 %v1935_v39, %v6375_v31  ;;  %v6502_v8 = vadd.f32 %v2011_v6, %v6241_v46 }
 0x235   : > { %v1939_v15 = vpop.f32.mrf.mxu0  ;;  %v4880_v41 = vpop.f32.mrf.mxu1  ;;  %4663 = vmatmul.mubr.msk.bf16.gmra.mxu0 %vm447_vm4, %v5136_v63  ;;  %4951 = vmatmul.mubr.msk.bf16.gmra.mxu1 %vm447_vm4, %v5135_v33 }
 0x236   : > { %v6507_v18 = vadd.f32 %v1939_v15, %v6384_v30  ;;  %v6510_v50 = vadd.f32 %v4880_v41, %v6250_v54  ;;  %3447 = vmatprep.mubr.bf16.mxu0 %v7553_v26  ;;  %4954 = vmatprep.mubr.msk.bf16.mxu1 %vm447_vm4, %v5136_v63  ;;  %v5137_v30 = vld [vmem:[%s7514_s1 + $0x238] sm:$0xff]  }
 0x237   : > { %v1941_v31 = vpop.f32.mrf.mxu0  ;;  %v2024_v40 = vpop.f32.mrf.mxu1 }
 0x238   : > { %v6515_v46 = vadd.f32 %v1941_v31, %v6392_v10  ;;  %v6518_v47 = vadd.f32 %v2024_v40, %v6259_v52 }
 0x239   : > { %v1943_v39 = vpop.f32.mrf.mxu0  ;;  %v4881_v33 = vpop.f32.mrf.mxu1 }
 0x23a   : > { %v6524_v54 = vadd.f32 %v1943_v39, %v6401_v25  ;;  %v6527_v26 = vadd.f32 %v4881_v33, %v6270_v5 }
 0x23b   : > { %v1945_v63 = vpop.f32.mrf.mxu0  ;;  %v2027_v6 = vpop.f32.mrf.mxu1 }
 0x23c   : > { %v6530_v10 = vadd.f32 %v1945_v63, %v6407_v2  ;;  %v6533_v52 = vadd.f32 %v2027_v6, %v6276_v19 }
 0x23d   : > { %v1949_v15 = vpop.f32.mrf.mxu0  ;;  %v4884_v41 = vpop.f32.mrf.mxu1  ;;  %4664 = vmatmul.mubr.msk.bf16.gmra.mxu0 %vm447_vm4, %v5137_v30  ;;  %4955 = vmatmul.mubr.msk.bf16.gmra.mxu1 %vm447_vm4, %v5137_v30 }
 0x23e   : > { %v6538_v25 = vadd.f32 %v1949_v15, %v6416_v62  ;;  %v6541_v5 = vadd.f32 %v4884_v41, %v6285_v48 }
 0x23f   : > { %v1951_v31 = vpop.f32.mrf.mxu0  ;;  %v2040_v40 = vpop.f32.mrf.mxu1 }
 0x240   : > { %v6544_v2 = vadd.f32 %v1951_v31, %v6425_v45  ;;  %v6547_v19 = vadd.f32 %v2040_v40, %v6293_v29  ;;  %v2057_v29 = vadd.f32 %v6458_v7, %v6182_v12 }
 0x241   : > { %v1953_v39 = vpop.f32.mrf.mxu0  ;;  %v4885_v33 = vpop.f32.mrf.mxu1 }
 0x242   : > { %v6550_v63 = vadd.f32 %v1953_v39, %v6434_v58  ;;  %v6553_v30 = vadd.f32 %v4885_v33, %v6304_v51 }
 0x243   : > { %v1955_v62 = vpop.f32.mrf.mxu0  ;;  %v2043_v6 = vpop.f32.mrf.mxu1 }
 0x244   : > { %v6556_v48 = vadd.f32 %v1955_v62, %v6440_v53  ;;  %v6559_v15 = vadd.f32 %v2043_v6, %v6310_v27  ;;  %v2060_v62 = vadd.f32 %v6471_v32, %v6202_v1 }
 0x245   : > { %v2254_v45 = vpop.f32.mrf.mxu1  ;;  %v4890_v41 = vpop.f32.mrf.mxu0 }
 0x246   : > { %v6564_v31 = vadd.f32 %v2254_v45, %v6320_v59  ;;  %v6567_v58 = vadd.f32 %v4890_v41, %v6452_v36 }
 0x247   : > { %v2256_v51 = vpop.f32.mrf.mxu1  ;;  %v2367_v40 = vpop.f32.mrf.mxu0 }
 0x248   : > { %v6570_v39 = vadd.f32 %v2256_v51, %v6328_v9  ;;  %v6572_v53 = vadd.f32 %v2367_v40, %v2057_v29 }
 0x249   : > { %v2258_v27 = vpop.f32.mrf.mxu1  ;;  %v4891_v33 = vpop.f32.mrf.mxu0 }
 0x24a   : > { %v6577_v12 = vadd.f32 %v2258_v27, %v6339_v4  ;;  %v6580_v59 = vadd.f32 %v4891_v33, %v6467_v22 }
 0x24b   : > { %v2260_v36 = vpop.f32.mrf.mxu1  ;;  %v2370_v7 = vpop.f32.mrf.mxu0 }
 0x24c   : > { %v6583_v6 = vadd.f32 %v2260_v36, %v6345_v42  ;;  %v6585_v9 = vadd.f32 %v2370_v7, %v2060_v62 }
 0x24d   : > { %v2264_v45 = vpop.f32.mrf.mxu1  ;;  %v4894_v41 = vpop.f32.mrf.mxu0 }
 0x24e   : > { %v6588_v29 = vadd.f32 %v2264_v45, %v6355_v17  ;;  %v6591_v1 = vadd.f32 %v4894_v41, %v6479_v60 }
 0x24f   : > { %v2266_v4 = vpop.f32.mrf.mxu1  ;;  %v2383_v32 = vpop.f32.mrf.mxu0 }
 0x250   : > { %v6594_v22 = vadd.f32 %v2266_v4, %v6363_v55  ;;  %v6597_v51 = vadd.f32 %v2383_v32, %v6487_v24 }
 0x251   : > { %v2268_v42 = vpop.f32.mrf.mxu1  ;;  %v4895_v40 = vpop.f32.mrf.mxu0 }
 0x252   : > { %v6600_v27 = vadd.f32 %v2268_v42, %v6372_v3  ;;  %v6603_v33 = vadd.f32 %v4895_v40, %v6496_v43 }
 0x253   : > { %v2270_v17 = vpop.f32.mrf.mxu1  ;;  %v2386_v62 = vpop.f32.mrf.mxu0 }
 0x254   : > { %v6606_v60 = vadd.f32 %v2270_v17, %v6378_v44  ;;  %v6609_v36 = vadd.f32 %v2386_v62, %v6502_v8 }
 0x255   : > { %v2274_v55 = vpop.f32.mrf.mxu1  ;;  %v4898_v7 = vpop.f32.mrf.mxu0 }
 0x256   : > { %v6612_v24 = vadd.f32 %v2274_v55, %v6387_v38  ;;  %v6615_v45 = vadd.f32 %v4898_v7, %v6510_v50 }
 0x257   : > { %v2276_v3 = vpop.f32.mrf.mxu1  ;;  %v2399_v41 = vpop.f32.mrf.mxu0 }
 0x258   : > { %v6618_v43 = vadd.f32 %v2276_v3, %v6395_v13  ;;  %v6621_v4 = vadd.f32 %v2399_v41, %v6518_v47 }
 0x259   : > { %v2278_v44 = vpop.f32.mrf.mxu1  ;;  %v4899_v32 = vpop.f32.mrf.mxu0 }
 0x25a   : > { %v6624_v8 = vadd.f32 %v2278_v44, %v6404_v35  ;;  %v6627_v42 = vadd.f32 %v4899_v32, %v6527_v26 }
 0x25b   : > { %v2280_v38 = vpop.f32.mrf.mxu1  ;;  %v2402_v40 = vpop.f32.mrf.mxu0 }
 0x25c   : > { %v6630_v50 = vadd.f32 %v2280_v38, %v6410_v16  ;;  %v6633_v17 = vadd.f32 %v2402_v40, %v6533_v52 }
 0x25d   : > { %v2284_v13 = vpop.f32.mrf.mxu1  ;;  %v4902_v62 = vpop.f32.mrf.mxu0 }
 0x25e   : > { %v6636_v47 = vadd.f32 %v2284_v13, %v6419_v61  ;;  %v6639_v55 = vadd.f32 %v4902_v62, %v6541_v5 }
 0x25f   : > { %v2286_v35 = vpop.f32.mrf.mxu1  ;;  %v2415_v7 = vpop.f32.mrf.mxu0 }
 0x260   : > { %v6642_v26 = vadd.f32 %v2286_v35, %v6428_v56  ;;  %v6645_v3 = vadd.f32 %v2415_v7, %v6547_v19  ;;  %v2080_v19 = vadd.f32 %v6456_v34, %v6325_v28 }
 0x261   : > { %v2288_v16 = vpop.f32.mrf.mxu1  ;;  %v4903_v41 = vpop.f32.mrf.mxu0 }
 0x262   : > { %v6648_v52 = vadd.f32 %v2288_v16, %v6437_v37  ;;  %v6651_v44 = vadd.f32 %v4903_v41, %v6553_v30  ;;  %v2083_v16 = vadd.f32 %v6469_v23, %v6342_v14  ;;  %v7573_v41 = vld [vmem:[#allocation4_spill] sm:$0xff] }
 0x263   : > { %v2290_v61 = vpop.f32.mrf.mxu1  ;;  %v2418_v32 = vpop.f32.mrf.mxu0 }
 0x264   : > { %v6654_v5 = vadd.f32 %v2290_v61, %v6443_v0  ;;  %v6657_v38 = vadd.f32 %v2418_v32, %v6559_v15 }
 0x265   : > { %v2294_v56 = vpop.f32.mrf.mxu1  ;;  %v2629_v40 = vpop.f32.mrf.mxu0 }
 0x266   : > { %v6662_v13 = vadd.f32 %v2294_v56, %v6449_v49  ;;  %v6665_v37 = vadd.f32 %v2629_v40, %v6564_v31 }
 0x267   : > { %v2296_v30 = vpop.f32.mrf.mxu1  ;;  %v2631_v62 = vpop.f32.mrf.mxu0 }
 0x268   : > { %v6667_v35 = vadd.f32 %v2296_v30, %v2080_v19  ;;  %v6670_v0 = vadd.f32 %v2631_v62, %v6570_v39 }
 0x269   : > { %v2298_v15 = vpop.f32.mrf.mxu1  ;;  %v2633_v7 = vpop.f32.mrf.mxu0 }
 0x26a   : > { %v6675_v28 = vadd.f32 %v2298_v15, %v7573_v41  ;;  %v6678_v49 = vadd.f32 %v2633_v7, %v6577_v12 }
 0x26b   : > { %v2300_v34 = vpop.f32.mrf.mxu1  ;;  %v2635_v31 = vpop.f32.mrf.mxu0 }
 0x26c   : > { %v6680_v61 = vadd.f32 %v2300_v34, %v2083_v16  ;;  %v6683_v32 = vadd.f32 %v2635_v31, %v6583_v6 }
 0x26d   : > { %v2304_v39 = vpop.f32.mrf.mxu1  ;;  %v2639_v56 = vpop.f32.mrf.mxu0 }
 0x26e   : > { %v6686_v40 = vadd.f32 %v2304_v39, %v6476_v11  ;;  %v6689_v14 = vadd.f32 %v2639_v56, %v6588_v29 }
 0x26f   : > { %v2306_v23 = vpop.f32.mrf.mxu1  ;;  %v2641_v19 = vpop.f32.mrf.mxu0 }
 0x270   : > { %v6692_v12 = vadd.f32 %v2306_v23, %v6484_v57  ;;  %v6695_v30 = vadd.f32 %v2641_v19, %v6594_v22 }
 0x271   : > { %v2308_v62 = vpop.f32.mrf.mxu1  ;;  %v2643_v15 = vpop.f32.mrf.mxu0 }
 0x272   : > { %v6698_v6 = vadd.f32 %v2308_v62, %v6493_v20  ;;  %v6701_v7 = vadd.f32 %v2643_v15, %v6600_v27 }
 0x273   : > { %v2310_v11 = vpop.f32.mrf.mxu1  ;;  %v2645_v16 = vpop.f32.mrf.mxu0 }
 0x274   : > { %v6704_v29 = vadd.f32 %v2310_v11, %v6499_v21  ;;  %v6707_v41 = vadd.f32 %v2645_v16, %v6606_v60 }
 0x275   : > { %v2314_v57 = vpop.f32.mrf.mxu1  ;;  %v2649_v34 = vpop.f32.mrf.mxu0 }
 0x276   : > { %v6710_v22 = vadd.f32 %v2314_v57, %v6507_v18  ;;  %v6713_v31 = vadd.f32 %v2649_v34, %v6612_v24 }
 0x277   : > { %v2316_v20 = vpop.f32.mrf.mxu1  ;;  %v2651_v39 = vpop.f32.mrf.mxu0 }
 0x278   : > { %v6716_v27 = vadd.f32 %v2316_v20, %v6515_v46  ;;  %v6719_v56 = vadd.f32 %v2651_v39, %v6618_v43 }
 0x279   : > { %v2318_v21 = vpop.f32.mrf.mxu1  ;;  %v2653_v23 = vpop.f32.mrf.mxu0 }
 0x27a   : > { %v6722_v60 = vadd.f32 %v2318_v21, %v6524_v54  ;;  %v6725_v19 = vadd.f32 %v2653_v23, %v6624_v8 }
 0x27b   : > { %v2320_v18 = vpop.f32.mrf.mxu1  ;;  %v2655_v62 = vpop.f32.mrf.mxu0 }
 0x27c   : > { %v6728_v24 = vadd.f32 %v2320_v18, %v6530_v10  ;;  %v6731_v15 = vadd.f32 %v2655_v62, %v6630_v50 }
 0x27d   : > { %v2324_v46 = vpop.f32.mrf.mxu1  ;;  %v2659_v11 = vpop.f32.mrf.mxu0 }
 0x27e   : > { %v6734_v43 = vadd.f32 %v2324_v46, %v6538_v25  ;;  %v6737_v16 = vadd.f32 %v2659_v11, %v6636_v47 }
 0x27f   : > { %v2326_v54 = vpop.f32.mrf.mxu1  ;;  %v2661_v57 = vpop.f32.mrf.mxu0 }
 0x280   : > { %v6740_v8 = vadd.f32 %v2326_v54, %v6544_v2  ;;  %v6743_v34 = vadd.f32 %v2661_v57, %v6642_v26 }
 0x281   : > { %v2328_v10 = vpop.f32.mrf.mxu1  ;;  %v2663_v20 = vpop.f32.mrf.mxu0 }
 0x282   : > { %v6746_v50 = vadd.f32 %v2328_v10, %v6550_v63  ;;  %v6749_v39 = vadd.f32 %v2663_v20, %v6648_v52 }
 0x283   : > { %v2330_v25 = vpop.f32.mrf.mxu1  ;;  %v2665_v21 = vpop.f32.mrf.mxu0 }
 0x284   : > { %v6752_v47 = vadd.f32 %v2330_v25, %v6556_v48  ;;  %v6755_v23 = vadd.f32 %v2665_v21, %v6654_v5 }
 0x285   : > { %v2669_v2 = vpop.f32.mrf.mxu0  ;;  %v4908_v18 = vpop.f32.mrf.mxu1 }
 0x286   : > { %v6758_v26 = vadd.f32 %v2669_v2, %v6662_v13  ;;  %v6761_v62 = vadd.f32 %v4908_v18, %v6567_v58 }
 0x287   : > { %v2671_v63 = vpop.f32.mrf.mxu0  ;;  %v2742_v46 = vpop.f32.mrf.mxu1 }
 0x288   : > { %v6764_v52 = vadd.f32 %v2671_v63, %v6667_v35  ;;  %v6767_v11 = vadd.f32 %v2742_v46, %v6572_v53 }
 0x289   : > { %v2673_v48 = vpop.f32.mrf.mxu0  ;;  %v4909_v54 = vpop.f32.mrf.mxu1 }
 0x28a   : > { %v6770_v5 = vadd.f32 %v2673_v48, %v6675_v28  ;;  %v6773_v57 = vadd.f32 %v4909_v54, %v6580_v59 }
 0x28b   : > { %v2675_v13 = vpop.f32.mrf.mxu0  ;;  %v2745_v10 = vpop.f32.mrf.mxu1 }
 0x28c   : > { %v6776_v58 = vadd.f32 %v2675_v13, %v6680_v61  ;;  %v6779_v20 = vadd.f32 %v2745_v10, %v6585_v9 }
 0x28d   : > { %v2679_v35 = vpop.f32.mrf.mxu0  ;;  %v4912_v25 = vpop.f32.mrf.mxu1 }
 0x28e   : > { %v6782_v53 = vadd.f32 %v2679_v35, %v6686_v40  ;;  %v6785_v21 = vadd.f32 %v4912_v25, %v6591_v1 }
 0x28f   : > { %v2681_v28 = vpop.f32.mrf.mxu0  ;;  %v2758_v2 = vpop.f32.mrf.mxu1 }
 0x290   : > { %v6788_v59 = vadd.f32 %v2681_v28, %v6692_v12  ;;  %v6791_v18 = vadd.f32 %v2758_v2, %v6597_v51 }
 0x291   : > { %v2683_v61 = vpop.f32.mrf.mxu0  ;;  %v4913_v63 = vpop.f32.mrf.mxu1 }
 0x292   : > { %v6794_v9 = vadd.f32 %v2683_v61, %v6698_v6  ;;  %v6797_v46 = vadd.f32 %v4913_v63, %v6603_v33 }
 0x293   : > { %v2685_v40 = vpop.f32.mrf.mxu0  ;;  %v2761_v48 = vpop.f32.mrf.mxu1 }
 0x294   : > { %v6800_v1 = vadd.f32 %v2685_v40, %v6704_v29  ;;  %v6803_v54 = vadd.f32 %v2761_v48, %v6609_v36 }
 0x295   : > { %v2689_v12 = vpop.f32.mrf.mxu0  ;;  %v4916_v13 = vpop.f32.mrf.mxu1 }
 0x296   : > { %v6806_v51 = vadd.f32 %v2689_v12, %v6710_v22  ;;  %v6809_v10 = vadd.f32 %v4916_v13, %v6615_v45  ;;  %v6823_v22 = vpop.permute.xlu0 %3680 }
 0x297   : > { %v2691_v6 = vpop.f32.mrf.mxu0  ;;  %v2774_v35 = vpop.f32.mrf.mxu1  ;;  %7574 = vst [vmem:[#allocation9_spill] sm:$0xff] %v6823_v22 }
 0x298   : > { %v6812_v33 = vadd.f32 %v2691_v6, %v6716_v27  ;;  %v6815_v25 = vadd.f32 %v2774_v35, %v6621_v4 }
 0x299   : > { %v2693_v29 = vpop.f32.mrf.mxu0  ;;  %v4917_v28 = vpop.f32.mrf.mxu1 }
 0x29a   : > { %v6818_v36 = vadd.f32 %v2693_v29, %v6722_v60  ;;  %v6821_v2 = vadd.f32 %v4917_v28, %v6627_v42  ;;  %v6837_v42 = vpop.permute.xlu1 %3675 }
 0x29b   : > { %v2695_v45 = vpop.f32.mrf.mxu0  ;;  %v2777_v61 = vpop.f32.mrf.mxu1  ;;  %7575 = vst [vmem:[#allocation5_spill] sm:$0xff] %v6837_v42 }
 0x29c   : > { %v6826_v63 = vadd.f32 %v2695_v45, %v6728_v24  ;;  %v6829_v27 = vadd.f32 %v2777_v61, %v6633_v17  ;;  %v6845_v17 = vpop.permute.xlu0 %3665 }
 0x29d   : > { %v2699_v4 = vpop.f32.mrf.mxu0  ;;  %v4920_v40 = vpop.f32.mrf.mxu1  ;;  %7576 = vst [vmem:[#allocation10_spill] sm:$0xff] %v6845_v17 }
 0x29e   : > { %v6832_v48 = vadd.f32 %v2699_v4, %v6734_v43  ;;  %v6835_v60 = vadd.f32 %v4920_v40, %v6639_v55 }
 0x29f   : > { %v2701_v12 = vpop.f32.mrf.mxu0  ;;  %v2790_v13 = vpop.f32.mrf.mxu1 }
 0x2a0   : > { %v6840_v6 = vadd.f32 %v2701_v12, %v6740_v8  ;;  %v6843_v24 = vadd.f32 %v2790_v13, %v6645_v3  ;;  %v6859_v3 = vpop.permute.xlu1 %3670 }
 0x2a1   : > { %v2703_v35 = vpop.f32.mrf.mxu0  ;;  %v4921_v29 = vpop.f32.mrf.mxu1  ;;  %7578 = vst [vmem:[#allocation11_spill] sm:$0xff] %v6859_v3 }
 0x2a2   : > { %v6848_v43 = vadd.f32 %v2703_v35, %v6746_v50  ;;  %v6851_v55 = vadd.f32 %v4921_v29, %v6651_v44  ;;  %v6867_v44 = vpop.permute.xlu0 %3655 }
 0x2a3   : > { %v2705_v28 = vpop.f32.mrf.mxu0  ;;  %v2793_v45 = vpop.f32.mrf.mxu1  ;;  %7580 = vst [vmem:[#allocation12_spill] sm:$0xff] %v6867_v44 }
 0x2a4   : > { %v6854_v61 = vadd.f32 %v2705_v28, %v6752_v47  ;;  %v6857_v8 = vadd.f32 %v2793_v45, %v6657_v38 }
 0x2a5   : > { %v3004_v4 = vpop.f32.mrf.mxu1  ;;  %v4926_v40 = vpop.f32.mrf.mxu0 }
 0x2a6   : > { %7577 = vst [vmem:[#allocation6_spill] sm:$0xff] %v6854_v61  ;;  %v6862_v12 = vadd.f32 %v3004_v4, %v6665_v37  ;;  %v6865_v50 = vadd.f32 %v4926_v40, %v6761_v62  ;;  %v6881_v62 = vpop.permute.xlu1 %3660 }
 0x2a7   : > { %v3006_v13 = vpop.f32.mrf.mxu1  ;;  %v3117_v35 = vpop.f32.mrf.mxu0  ;;  %7583 = vst [vmem:[#allocation4_spill] sm:$0xff] %v6881_v62 }
 0x2a8   : > { %7579 = vst [vmem:[#allocation7_spill] sm:$0xff] %v6865_v50  ;;  %v6870_v47 = vadd.f32 %v3006_v13, %v6670_v0  ;;  %v6873_v38 = vadd.f32 %v3117_v35, %v6767_v11  ;;  %v6889_v11 = vpop.permute.xlu0 %3645 }
 0x2a9   : > { %v3008_v29 = vpop.f32.mrf.mxu1  ;;  %v4927_v28 = vpop.f32.mrf.mxu0  ;;  %7585 = vst [vmem:[#allocation15_spill] sm:$0xff] %v6889_v11 }
 0x2aa   : > { %7581 = vst [vmem:[#allocation13_spill] sm:$0xff] %v6873_v38  ;;  %v6876_v45 = vadd.f32 %v3008_v29, %v6678_v49  ;;  %v6879_v37 = vadd.f32 %v4927_v28, %v6773_v57 }
 0x2ab   : > { %v3010_v4 = vpop.f32.mrf.mxu1  ;;  %v3120_v40 = vpop.f32.mrf.mxu0 }
 0x2ac   : > { %7582 = vst [vmem:[#allocation8_spill] sm:$0xff] %v6879_v37  ;;  %v6884_v22 = vadd.f32 %v3010_v4, %v6683_v32  ;;  %v6887_v0 = vadd.f32 %v3120_v40, %v6779_v20  ;;  %v6903_v20 = vpop.permute.xlu1 %3650 }
 0x2ad   : > { %v3014_v13 = vpop.f32.mrf.mxu1  ;;  %v4930_v35 = vpop.f32.mrf.mxu0  ;;  %7588 = vst [vmem:[#allocation18_spill] sm:$0xff] %v6903_v20 }
 0x2ae   : > { %7584 = vst [vmem:[#allocation14_spill] sm:$0xff] %v6887_v0  ;;  %v6892_v49 = vadd.f32 %v3014_v13, %v6689_v14  ;;  %v6895_v57 = vadd.f32 %v4930_v35, %v6785_v21  ;;  %v6911_v21 = vpop.permute.xlu0 %3635 }
 0x2af   : > { %v3016_v29 = vpop.f32.mrf.mxu1  ;;  %v3133_v28 = vpop.f32.mrf.mxu0 }
 0x2b0   : > { %7586 = vst [vmem:[#allocation16_spill] sm:$0xff] %v6895_v57  ;;  %v6898_v42 = vadd.f32 %v3016_v29, %v6695_v30  ;;  %v6901_v32 = vadd.f32 %v3133_v28, %v6791_v18 }
 0x2b1   : > { %v3018_v4 = vpop.f32.mrf.mxu1  ;;  %v4931_v40 = vpop.f32.mrf.mxu0 }
 0x2b2   : > { %7587 = vst [vmem:[#allocation17_spill] sm:$0xff] %v6901_v32  ;;  %v6906_v3 = vadd.f32 %v3018_v4, %v6701_v7  ;;  %v6909_v14 = vadd.f32 %v4931_v40, %v6797_v46  ;;  %v6924_v7 = vpop.permute.xlu1 %3640  ;;  %v6931_v62 = vpop.permute.xlu0 %3625 }
 0x2b3   : > { %v3020_v13 = vpop.f32.mrf.mxu1  ;;  %v3136_v35 = vpop.f32.mrf.mxu0 }
 0x2b4   : > { %7589 = vst [vmem:[#allocation19_spill] sm:$0xff] %v6909_v14  ;;  %v6914_v30 = vadd.f32 %v3020_v13, %v6707_v41  ;;  %v6917_v18 = vadd.f32 %v3136_v35, %v6803_v54 }
 0x2b5   : > { %v3024_v29 = vpop.f32.mrf.mxu1  ;;  %v6919_v28 = vpop.f32.mrf.mxu0 }
 0x2b6   : > { %7590 = vst [vmem:[#allocation20_spill] sm:$0xff] %v6917_v18  ;;  %v6922_v17 = vadd.f32 %v3024_v29, %v6713_v31 }
 0x2b7   : > { %v3026_v46 = vpop.f32.mrf.mxu1  ;;  %v6926_v4 = vpop.f32.mrf.mxu0 }
 0x2b8   : > { %v6929_v40 = vadd.f32 %v3026_v46, %v6719_v56  ;;  %v6945_v56 = vpop.permute.xlu1 %3630 }
 0x2b9   : > { %v3028_v41 = vpop.f32.mrf.mxu1  ;;  %v4935_v13 = vpop.f32.mrf.mxu0 }
 0x2ba   : > { %v6934_v54 = vadd.f32 %v3028_v41, %v6725_v19  ;;  %v6937_v35 = vadd.f32 %v4935_v13, %v6821_v2  ;;  %v6953_v2 = vpop.permute.xlu0 %3615 }
 0x2bb   : > { %v3030_v31 = vpop.f32.mrf.mxu1  ;;  %v3152_v29 = vpop.f32.mrf.mxu0 }
 0x2bc   : > { %7591 = vst [vmem:[#allocation21_spill] sm:$0xff] %v6937_v35  ;;  %v6940_v18 = vadd.f32 %v3030_v31, %v6731_v15  ;;  %v6943_v14 = vadd.f32 %v3152_v29, %v6829_v27 }
 0x2bd   : > { %v3034_v46 = vpop.f32.mrf.mxu1  ;;  %v4938_v32 = vpop.f32.mrf.mxu0 }
 0x2be   : > { %7592 = vst [vmem:[#allocation22_spill] sm:$0xff] %v6943_v14  ;;  %v6948_v44 = vadd.f32 %v3034_v46, %v6737_v16  ;;  %v6951_v19 = vadd.f32 %v4938_v32, %v6835_v60  ;;  %v6967_v60 = vpop.permute.xlu1 %3620 }
 0x2bf   : > { %v3036_v41 = vpop.f32.mrf.mxu1  ;;  %v3165_v13 = vpop.f32.mrf.mxu0 }
 0x2c0   : > { %7593 = vst [vmem:[#allocation23_spill] sm:$0xff] %v6951_v19  ;;  %v6956_v15 = vadd.f32 %v3036_v41, %v6743_v34  ;;  %v6959_v27 = vadd.f32 %v3165_v13, %v6843_v24  ;;  %v6975_v24 = vpop.permute.xlu0 %3605 }
 0x2c1   : > { %v3038_v31 = vpop.f32.mrf.mxu1  ;;  %v4939_v29 = vpop.f32.mrf.mxu0  ;;  %7597 = vst [vmem:[#allocation27_spill] sm:$0xff] %v6975_v24 }
 0x2c2   : > { %7594 = vst [vmem:[#allocation24_spill] sm:$0xff] %v6959_v27  ;;  %v6962_v14 = vadd.f32 %v3038_v31, %v6749_v39  ;;  %v6965_v16 = vadd.f32 %v4939_v29, %v6851_v55  ;;  %v7598_v39 = vld [vmem:[#allocation3_spill] sm:$0xff] }
 0x2c3   : > { %v3040_v32 = vpop.f32.mrf.mxu1  ;;  %v3168_v46 = vpop.f32.mrf.mxu0  ;;  %v3783_v31 = vsub.s32 0, %v7598_v39  ;;  %v6984_v29 = vld [vmem:[%s7516_s3] sm:$0x7] }
 0x2c4   : > { %7595 = vst [vmem:[#allocation25_spill] sm:$0xff] %v6965_v16  ;;  %v6970_v19 = vadd.f32 %v3040_v32, %v6755_v23  ;;  %v6973_v34 = vadd.f32 %v3168_v46, %v6857_v8  ;;  %v3787_v23 = vsub.s32 1, %v7598_v39  ;;  %v6991_v16 = vpop.permute.xlu1 %3610 }
 0x2c5   : > { %v6977_v41 = vpop.f32.mrf.mxu1  ;;  %v3379_v13 = vpop.f32.mrf.mxu0  ;;  %7599 = vst [vmem:[#allocation3_spill] sm:$0xff] %v6991_v16 }
 0x2c6   : > { %7596 = vst [vmem:[#allocation26_spill] sm:$0xff] %v6973_v34  ;;  %v3555_v55 = vadd.f32 %v3379_v13, %v6862_v12  ;;  %v6996_v12 = vrot.slane %v6984_v29, %v3783_v31  ;;  %v7000_v0 = vrot.slane %v6984_v29, %v3787_v23 }
 0x2c7   : > { %v6987_v32 = vpop.f32.mrf.mxu1  ;;  %v3381_v8 = vpop.f32.mrf.mxu0 }
 0x2c8   : > { %v3683_v46 = vadd.f32 %v6975_v24, %v3555_v55  ;;  %v3556_v34 = vadd.f32 %v3381_v8, %v6870_v47 }
 0x2c9   : > { %v6993_v27 = vpop.f32.mrf.mxu1  ;;  %v3383_v35 = vpop.f32.mrf.mxu0 }
 0x2ca   : > { %v3731_v13 = vmax.f32 %v3683_v46, 0.0  ;;  %v3684_v57 = vadd.f32 %v6975_v24, %v3556_v34  ;;  %v3558_v20 = vadd.f32 %v3383_v35, %v6876_v45 }
 0x2cb   : > { %v7003_v37 = vpop.f32.mrf.mxu1  ;;  %v3385_v55 = vpop.f32.mrf.mxu0 }
 0x2cc   : > { %v3732_v47 = vmax.f32 %v3684_v57, 0.0  ;;  %v3686_v8 = vadd.f32 %v6991_v16, %v3558_v20  ;;  %v3559_v38 = vadd.f32 %v3385_v55, %v6884_v22  ;;  %v7010_v46 = vmul.f32 %v6996_v12, %v3731_v13 }
 0x2cd   : > { %v7007_v11 = vpop.f32.mrf.mxu1  ;;  %v3389_v31 = vpop.f32.mrf.mxu0 }
 0x2ce   : > { %7600 = vst [vmem:[#allocation28_spill] sm:$0xff] %v7010_v46  ;;  %v7013_v34 = vmul.f32 %v7000_v0, %v3732_v47  ;;  %v3687_v23 = vadd.f32 %v6991_v16, %v3559_v38  ;;  %v3734_v45 = vmax.f32 %v3686_v8, 0.0  ;;  %v3561_v35 = vadd.f32 %v3389_v31, %v6892_v49 }
 0x2cf   : > { %v7017_v24 = vpop.f32.mrf.mxu1  ;;  %v3391_v57 = vpop.f32.mrf.mxu0 }
 0x2d0   : > { %7601 = vst [vmem:[#allocation29_spill] sm:$0xff] %v7013_v34  ;;  %v3735_v20 = vmax.f32 %v3687_v23, 0.0  ;;  %v3562_v22 = vadd.f32 %v3391_v57, %v6898_v42  ;;  %v3689_v55 = vadd.f32 %v6953_v2, %v3561_v35  ;;  %v7025_v47 = vadd.f32 %v7013_v34, %v7010_v46 }
 0x2d1   : > { %v7021_v61 = vpop.f32.mrf.mxu1  ;;  %v3393_v13 = vpop.f32.mrf.mxu0  ;;  %v7037_v57 = vmul.f32 %v6996_v12, %v3734_v45 }
 0x2d2   : > { %7602 = vst [vmem:[#allocation30_spill] sm:$0xff] %v7025_v47  ;;  %v7030_v49 = vmul.f32 %v7000_v0, %v3735_v20  ;;  %v3690_v8 = vadd.f32 %v6953_v2, %v3562_v22  ;;  %v3564_v31 = vadd.f32 %v3393_v13, %v6906_v3  ;;  %v3737_v42 = vmax.f32 %v3689_v55, 0.0 }
 0x2d3   : > { %v7034_v23 = vpop.f32.mrf.mxu1  ;;  %v3395_v35 = vpop.f32.mrf.mxu0  ;;  %7604 = vst [vmem:[#allocation32_spill] sm:$0xff] %v7037_v57 }
 0x2d4   : > { %7603 = vst [vmem:[#allocation31_spill] sm:$0xff] %v7030_v49  ;;  %v3738_v16 = vmax.f32 %v3690_v8, 0.0  ;;  %v3692_v47 = vadd.f32 %v6967_v60, %v3564_v31  ;;  %v3565_v50 = vadd.f32 %v3395_v35, %v6914_v30  ;;  %v7043_v20 = vadd.f32 %v7030_v49, %v7037_v57 }
 0x2d5   : > { %v3064_v38 = vpop.f32.mrf.mxu1  ;;  %v3399_v34 = vpop.f32.mrf.mxu0  ;;  %v7052_v55 = vmul.f32 %v6996_v12, %v3737_v42  ;;  %v3791_v35 = vsub.s32 2, %v7598_v39  ;;  %v7077_v57 = vadd.f32 %v6919_v28, %v6809_v10  ;;  %v3205_v28 = vadd.f32 %v6987_v32, %v6764_v52 }
 0x2d6   : > { %7605 = vst [vmem:[#allocation33_spill] sm:$0xff] %v7043_v20  ;;  %v7048_v22 = vmul.f32 %v7000_v0, %v3738_v16  ;;  %v3693_v45 = vadd.f32 %v6967_v60, %v3565_v50  ;;  %v3740_v13 = vmax.f32 %v3692_v47, 0.0  ;;  %v3567_v30 = vadd.f32 %v3399_v34, %v6922_v17 }
 0x2d7   : > { %7607 = vst [vmem:[#allocation35_spill] sm:$0xff] %v7052_v55  ;;  %v3066_v8 = vpop.f32.mrf.mxu1  ;;  %v3401_v31 = vpop.f32.mrf.mxu0 }
 0x2d8   : > { %7606 = vst [vmem:[#allocation34_spill] sm:$0xff] %v7048_v22  ;;  %v3741_v46 = vmax.f32 %v3693_v45, 0.0  ;;  %v3568_v20 = vadd.f32 %v3401_v31, %v6929_v40  ;;  %v3695_v3 = vadd.f32 %v6931_v62, %v3567_v30  ;;  %v7060_v50 = vadd.f32 %v7048_v22, %v7052_v55 }
 0x2d9   : > { %v3068_v49 = vpop.f32.mrf.mxu1  ;;  %v3403_v16 = vpop.f32.mrf.mxu0  ;;  %v7070_v40 = vmul.f32 %v6996_v12, %v3740_v13  ;;  %v7073_v31 = vrot.slane %v6984_v29, %v3791_v35 }
 0x2da   : > { %7608 = vst [vmem:[#allocation36_spill] sm:$0xff] %v7060_v50  ;;  %v7065_v17 = vmul.f32 %v7000_v0, %v3741_v46  ;;  %v3696_v34 = vadd.f32 %v6931_v62, %v3568_v20  ;;  %v3570_v39 = vadd.f32 %v3403_v16, %v6934_v54  ;;  %v3743_v42 = vmax.f32 %v3695_v3, 0.0  ;;  %v7632_v50 = vld [vmem:[#allocation11_spill] sm:$0xff] }
 0x2db   : > { %7610 = vst [vmem:[#allocation38_spill] sm:$0xff] %v7070_v40  ;;  %v3070_v45 = vpop.f32.mrf.mxu1  ;;  %v3405_v30 = vpop.f32.mrf.mxu0  ;;  %v7083_v54 = vadd.f32 %v6926_v4, %v6815_v25  ;;  %v3204_v3 = vadd.f32 %v6977_v41, %v6758_v26  ;;  %v7103_v4 = vadd.f32 %v7003_v37, %v6776_v58  ;;  %v7120_v37 = vadd.f32 %v7021_v61, %v6794_v9 }
 0x2dc   : > { %7609 = vst [vmem:[#allocation37_spill] sm:$0xff] %v7065_v17  ;;  %v3744_v47 = vmax.f32 %v3696_v34, 0.0  ;;  %v3698_v46 = vadd.f32 %v6945_v56, %v3570_v39  ;;  %v3571_v20 = vadd.f32 %v3405_v30, %v6940_v18  ;;  %v7089_v29 = vadd.f32 %v7065_v17, %v7070_v40 }
 0x2dd   : > { %v3074_v13 = vpop.f32.mrf.mxu1  ;;  %v3409_v16 = vpop.f32.mrf.mxu0  ;;  %v3207_v18 = vadd.f32 %v6993_v27, %v6770_v5  ;;  %v7106_v41 = vmul.f32 %v6996_v12, %v3743_v42  ;;  %v7111_v5 = vadd.f32 %v7007_v11, %v6782_v53  ;;  %v7115_v27 = vadd.f32 %v7017_v24, %v6788_v59 }
 0x2de   : > { %7611 = vst [vmem:[#allocation39_spill] sm:$0xff] %v7089_v29  ;;  %v7098_v25 = vmul.f32 %v7000_v0, %v3744_v47  ;;  %v3699_v26 = vadd.f32 %v6945_v56, %v3571_v20  ;;  %v3746_v35 = vmax.f32 %v3698_v46, 0.0  ;;  %v3573_v34 = vadd.f32 %v3409_v16, %v6948_v44  ;;  %v7637_v29 = vld [vmem:[#allocation25_spill] sm:$0xff] }
 0x2df   : > { %v3076_v39 = vpop.f32.mrf.mxu1  ;;  %v3411_v52 = vpop.f32.mrf.mxu0  ;;  %v7131_v59 = vadd.f32 %v7034_v23, %v6800_v1  ;;  %v7142_v24 = vadd.f32 %v3066_v8, %v6812_v33  ;;  %v7148_v23 = vadd.f32 %v3068_v49, %v6818_v36  ;;  %v7156_v33 = vadd.f32 %v3074_v13, %v6832_v48 }
 0x2e0   : > { %7612 = vst [vmem:[#allocation40_spill] sm:$0xff] %v7098_v25  ;;  %v3747_v32 = vmax.f32 %v3699_v26, 0.0  ;;  %v3574_v58 = vadd.f32 %v3411_v52, %v6956_v15  ;;  %v3701_v47 = vadd.f32 %v6911_v21, %v3573_v34  ;;  %v7125_v30 = vadd.f32 %v7098_v25, %v7106_v41 }
 0x2e1   : > { %v3078_v44 = vpop.f32.mrf.mxu1  ;;  %v3413_v42 = vpop.f32.mrf.mxu0  ;;  %v7139_v15 = vadd.f32 %v3064_v38, %v6806_v51  ;;  %v7145_v46 = vmul.f32 %v6996_v12, %v3746_v35  ;;  %v7153_v51 = vadd.f32 %v3070_v45, %v6826_v63  ;;  %v7165_v49 = vadd.f32 %v3076_v39, %v6840_v6 }
 0x2e2   : > { %v7134_v11 = vmul.f32 %v7000_v0, %v3747_v32  ;;  %v3702_v9 = vadd.f32 %v6911_v21, %v3574_v58  ;;  %v3576_v61 = vadd.f32 %v3413_v42, %v6962_v14  ;;  %v3749_v20 = vmax.f32 %v3701_v47, 0.0  ;;  %v7613_v32 = vld [vmem:[#allocation7_spill] sm:$0xff] }
 0x2e3   : > { %v3080_v16 = vpop.f32.mrf.mxu1  ;;  %v3415_v1 = vpop.f32.mrf.mxu0  ;;  %v7175_v13 = vadd.f32 %v3078_v44, %v6848_v43 }
 0x2e4   : > { %v3750_v26 = vmax.f32 %v3702_v9, 0.0  ;;  %v3704_v34 = vadd.f32 %v6924_v7, %v3576_v61  ;;  %v3577_v14 = vadd.f32 %v3415_v1, %v6970_v19  ;;  %v7160_v35 = vadd.f32 %v7134_v11, %v7145_v46  ;;  %v7614_v9 = vld [vmem:[#allocation6_spill] sm:$0xff]  ;;  %v7615_v61 = vld [vmem:[#allocation15_spill] sm:$0xff] }
 0x2e5   : > { %v3419_v38 = vpop.f32.mrf.mxu0  ;;  %v4944_v8 = vpop.f32.mrf.mxu1  ;;  %v7172_v48 = vmul.f32 %v6996_v12, %v3749_v20  ;;  %v7179_v6 = vadd.f32 %v3080_v16, %v7614_v9  ;;  %v7616_v20 = vld [vmem:[#allocation13_spill] sm:$0xff] }
 0x2e6   : > { %v7168_v19 = vmul.f32 %v7000_v0, %v3750_v26  ;;  %v3705_v63 = vadd.f32 %v6924_v7, %v3577_v14  ;;  %v3579_v45 = vadd.f32 %v3419_v38, %v3204_v3  ;;  %v3752_v52 = vmax.f32 %v3704_v34, 0.0 }
 0x2e7   : > { %v3563_v58 = vadd.f32 %v4944_v8, %v7613_v32  ;;  %v3421_v47 = vpop.f32.mrf.mxu0  ;;  %v3492_v42 = vpop.f32.mrf.mxu1  ;;  %v7617_v32 = vld [vmem:[#allocation27_spill] sm:$0xff] }
 0x2e8   : > { %v3753_v39 = vmax.f32 %v3705_v63, 0.0  ;;  %v3707_v1 = vadd.f32 %v7615_v61, %v3579_v45  ;;  %v3580_v26 = vadd.f32 %v3421_v47, %v3205_v28  ;;  %v3557_v14 = vadd.f32 %v3492_v42, %v7616_v20  ;;  %v7619_v47 = vld [vmem:[#allocation8_spill] sm:$0xff] }
 0x2e9   : > { %v7183_v3 = vadd.f32 %v6953_v2, %v3563_v58  ;;  %v3423_v38 = vpop.f32.mrf.mxu0  ;;  %v4945_v43 = vpop.f32.mrf.mxu1  ;;  %v7188_v44 = vadd.f32 %v7168_v19, %v7172_v48  ;;  %v7197_v2 = vmul.f32 %v6996_v12, %v3752_v52  ;;  %v7625_v45 = vld [vmem:[#allocation12_spill] sm:$0xff] }
 0x2ea   : > { %v7193_v16 = vmul.f32 %v7000_v0, %v3753_v39  ;;  %v3755_v8 = vmax.f32 %v3707_v1, 0.0  ;;  %v3708_v28 = vadd.f32 %v7615_v61, %v3580_v26  ;;  %v3582_v63 = vadd.f32 %v3423_v38, %v3207_v18  ;;  %v7620_v1 = vld [vmem:[#allocation18_spill] sm:$0xff] }
 0x2eb   : > { %v7201_v58 = vadd.f32 %v7617_v32, %v3557_v14  ;;  %v3566_v42 = vadd.f32 %v4945_v43, %v7619_v47  ;;  %v3425_v9 = vpop.f32.mrf.mxu0  ;;  %v3495_v20 = vpop.f32.mrf.mxu1  ;;  %v7621_v38 = vld [vmem:[#allocation14_spill] sm:$0xff] }
 0x2ec   : > { %v7205_v10 = vmul.f32 %v6996_v12, %v3755_v8  ;;  %v3756_v39 = vmax.f32 %v3708_v28, 0.0  ;;  %v3710_v53 = vadd.f32 %v7620_v1, %v3582_v63  ;;  %v3583_v18 = vadd.f32 %v3425_v9, %v7103_v4  ;;  %v7624_v9 = vld [vmem:[#allocation16_spill] sm:$0xff] }
 0x2ed   : > { %7618 = vst [vmem:[#allocation7_spill] sm:$0xff] %v7201_v58  ;;  %v7211_v26 = vadd.f32 %v6967_v60, %v3566_v42  ;;  %v3560_v14 = vadd.f32 %v3495_v20, %v7621_v38  ;;  %v3429_v32 = vpop.f32.mrf.mxu0  ;;  %v4948_v36 = vpop.f32.mrf.mxu1  ;;  %v7216_v43 = vadd.f32 %v7193_v16, %v7197_v2  ;;  %v7622_v60 = vld [vmem:[#allocation3_spill] sm:$0xff] }
 0x2ee   : > { %v7219_v8 = vmul.f32 %v7000_v0, %v3756_v39  ;;  %v3758_v28 = vmax.f32 %v3710_v53, 0.0  ;;  %v3711_v63 = vadd.f32 %v7620_v1, %v3583_v18  ;;  %v3585_v4 = vadd.f32 %v3429_v32, %v7111_v5 }
 0x2ef   : > { %v7225_v42 = vadd.f32 %v7622_v60, %v3560_v14  ;;  %v3575_v20 = vadd.f32 %v4948_v36, %v7624_v9  ;;  %v3431_v38 = vpop.f32.mrf.mxu0  ;;  %v3508_v52 = vpop.f32.mrf.mxu1  ;;  %v7626_v60 = vld [vmem:[#allocation17_spill] sm:$0xff] }
 0x2f0   : > { %v7231_v39 = vmul.f32 %v6996_v12, %v3758_v28  ;;  %v3759_v53 = vmax.f32 %v3711_v63, 0.0  ;;  %v3713_v18 = vadd.f32 %v7625_v45, %v3585_v4  ;;  %v3586_v5 = vadd.f32 %v3431_v38, %v7115_v27 }
 0x2f1   : > { %7623 = vst [vmem:[#allocation6_spill] sm:$0xff] %v7225_v42  ;;  %v7237_v14 = vadd.f32 %v6911_v21, %v3575_v20  ;;  %v3569_v36 = vadd.f32 %v3508_v52, %v7626_v60  ;;  %v3433_v9 = vpop.f32.mrf.mxu0  ;;  %v4949_v47 = vpop.f32.mrf.mxu1  ;;  %v7242_v34 = vadd.f32 %v7219_v8, %v7205_v10  ;;  %v7627_v52 = vld [vmem:[#allocation19_spill] sm:$0xff]  ;;  %v7628_v42 = vld [vmem:[#allocation4_spill] sm:$0xff] }
 0x2f2   : > { %v7245_v28 = vmul.f32 %v7000_v0, %v3759_v53  ;;  %v3761_v63 = vmax.f32 %v3713_v18, 0.0  ;;  %v3714_v4 = vadd.f32 %v7625_v45, %v3586_v5  ;;  %v3588_v27 = vadd.f32 %v3433_v9, %v7120_v37 }
 0x2f3   : > { %v7251_v21 = vadd.f32 %v6931_v62, %v3569_v36  ;;  %v3578_v20 = vadd.f32 %v4949_v47, %v7627_v52  ;;  %v3435_v60 = vpop.f32.mrf.mxu0  ;;  %v3511_v32 = vpop.f32.mrf.mxu1  ;;  %v7629_v36 = vld [vmem:[#allocation20_spill] sm:$0xff] }
 0x2f4   : > { %v7257_v53 = vmul.f32 %v6996_v12, %v3761_v63  ;;  %v3762_v18 = vmax.f32 %v3714_v4, 0.0  ;;  %v3716_v5 = vadd.f32 %v7628_v42, %v3588_v27  ;;  %v3589_v37 = vadd.f32 %v3435_v60, %v7131_v59 }
 0x2f5   : > { %v7263_v62 = vadd.f32 %v6924_v7, %v3578_v20  ;;  %v3572_v47 = vadd.f32 %v3511_v32, %v7629_v36  ;;  %v3439_v52 = vpop.f32.mrf.mxu0  ;;  %v4952_v38 = vpop.f32.mrf.mxu1  ;;  %v7268_v58 = vadd.f32 %v7245_v28, %v7231_v39 }
 0x2f6   : > { %v7271_v63 = vmul.f32 %v7000_v0, %v3762_v18  ;;  %v3764_v4 = vmax.f32 %v3716_v5, 0.0  ;;  %v3717_v27 = vadd.f32 %v7628_v42, %v3589_v37  ;;  %v3591_v59 = vadd.f32 %v3439_v52, %v7139_v15  ;;  %v7630_v37 = vld [vmem:[#allocation10_spill] sm:$0xff]  ;;  %v7631_v52 = vld [vmem:[#allocation21_spill] sm:$0xff] }
 0x2f7   : > { %v7277_v20 = vadd.f32 %v6945_v56, %v3572_v47  ;;  %v3587_v32 = vadd.f32 %v4952_v38, %v7077_v57  ;;  %v3441_v60 = vpop.f32.mrf.mxu0  ;;  %v3524_v36 = vpop.f32.mrf.mxu1 }
 0x2f8   : > { %v7283_v18 = vmul.f32 %v6996_v12, %v3764_v4  ;;  %v3765_v5 = vmax.f32 %v3717_v27, 0.0  ;;  %v3719_v22 = vadd.f32 %v7630_v37, %v3591_v59  ;;  %v3592_v15 = vadd.f32 %v3441_v60, %v7142_v24 }
 0x2f9   : > { %v3715_v56 = vadd.f32 %v7625_v45, %v3587_v32  ;;  %v3581_v47 = vadd.f32 %v3524_v36, %v7083_v54  ;;  %v3443_v57 = vpop.f32.mrf.mxu0  ;;  %v4953_v38 = vpop.f32.mrf.mxu1  ;;  %v3991_v7 = vadd.f32 %v7271_v63, %v7257_v53  ;;  %v3895_v36 = vmax.f32 %v7257_v53, %v7271_v63 }
 0x2fa   : > { %v7293_v9 = vmul.f32 %v7000_v0, %v3765_v5  ;;  %v3767_v4 = vmax.f32 %v3719_v22, 0.0  ;;  %v3720_v27 = vadd.f32 %v7630_v37, %v3592_v15  ;;  %v3594_v59 = vadd.f32 %v3443_v57, %v7148_v23 }
 0x2fb   : > { %v3763_v24 = vmax.f32 %v3715_v56, 0.0  ;;  %v3709_v60 = vadd.f32 %v7615_v61, %v3581_v47  ;;  %v3590_v45 = vadd.f32 %v4953_v38, %v7631_v52  ;;  %v3445_v32 = vpop.f32.mrf.mxu0  ;;  %v3527_v54 = vpop.f32.mrf.mxu1  ;;  %v7633_v56 = vld [vmem:[#allocation22_spill] sm:$0xff] }
 0x2fc   : > { %v7302_v55 = vmul.f32 %v6996_v12, %v3767_v4  ;;  %v3768_v5 = vmax.f32 %v3720_v27, 0.0  ;;  %v3722_v22 = vadd.f32 %v7632_v50, %v3594_v59  ;;  %v3595_v15 = vadd.f32 %v3445_v32, %v7153_v51  ;;  %v7634_v59 = vld [vmem:[#allocation23_spill] sm:$0xff] }
 0x2fd   : > { %v3757_v17 = vmax.f32 %v3709_v60, 0.0  ;;  %v3718_v23 = vadd.f32 %v7628_v42, %v3590_v45  ;;  %v3584_v61 = vadd.f32 %v3527_v54, %v7633_v56  ;;  %v3449_v47 = vpop.f32.mrf.mxu0  ;;  %v4956_v52 = vpop.f32.mrf.mxu1  ;;  %v3828_v57 = vmul.f32 %v7073_v31, %v3763_v24 }
 0x2fe   : > { %v7310_v38 = vmul.f32 %v7000_v0, %v3768_v5  ;;  %v3770_v53 = vmax.f32 %v3722_v22, 0.0  ;;  %v3723_v63 = vadd.f32 %v7632_v50, %v3595_v15  ;;  %v3597_v4 = vadd.f32 %v3449_v47, %v7156_v33  ;;  %v7635_v5 = vld [vmem:[#allocation5_spill] sm:$0xff] }
 0x2ff   : > { %v3766_v27 = vmax.f32 %v3718_v23, 0.0  ;;  %v3712_v51 = vadd.f32 %v7620_v1, %v3584_v61  ;;  %v3599_v60 = vadd.f32 %v4956_v52, %v7634_v59  ;;  %v3451_v42 = vpop.f32.mrf.mxu0  ;;  %v3540_v45 = vpop.f32.mrf.mxu1  ;;  %v3992_v32 = vsel %vm3845_vm11, %v3828_v57, 0.0  ;;  %v7636_v23 = vld [vmem:[#allocation24_spill] sm:$0xff] }
 0x300   : > { %v7318_v54 = vmul.f32 %v6996_v12, %v3770_v53  ;;  %v3771_v24 = vmax.f32 %v3723_v63, 0.0  ;;  %v3725_v56 = vadd.f32 %v7635_v5, %v3597_v4  ;;  %v3598_v22 = vadd.f32 %v3451_v42, %v7165_v49 }
 0x301   : > { %v3760_v15 = vmax.f32 %v3712_v51, 0.0  ;;  %v3727_v33 = vadd.f32 %v7635_v5, %v3599_v60  ;;  %v3593_v47 = vadd.f32 %v3540_v45, %v7636_v23  ;;  %v4957_v1 = vpop.f32.mrf.mxu1  ;;  %v3993_v61 = vadd.f32 %v3992_v32, %v3991_v7  ;;  %v3453_v52 = vpop.f32.mrf.mxu0  ;;  %v7638_v32 = vld [vmem:[#allocation9_spill] sm:$0xff] }
 0x302   : > { %v7325_v59 = vmul.f32 %v7000_v0, %v3771_v24  ;;  %v3773_v40 = vmax.f32 %v3725_v56, 0.0  ;;  %v3726_v53 = vadd.f32 %v7635_v5, %v3598_v22  ;;  %v3602_v63 = vadd.f32 %v4957_v1, %v7637_v29  ;;  %v7639_v22 = vld [vmem:[#allocation26_spill] sm:$0xff] }
 0x303   : > { %v3775_v25 = vmax.f32 %v3727_v33, 0.0  ;;  %v3721_v4 = vadd.f32 %v7630_v37, %v3593_v47  ;;  %3994 = vadd.xlane.f32.xlu1 %v3993_v61  ;;  %v3896_v49 = vsel %vm3845_vm11, %v3828_v57, -inf  ;;  %v3600_v51 = vadd.f32 %v3453_v52, %v7175_v13  ;;  %v3455_v60 = vpop.f32.mrf.mxu0  ;;  %v3543_v42 = vpop.f32.mrf.mxu1 }
 0x304   : > { %v3838_v7 = vmul.f32 %v6996_v12, %v3773_v40  ;;  %v3774_v45 = vmax.f32 %v3726_v53, 0.0  ;;  %v3730_v24 = vadd.f32 %v7638_v32, %v3602_v63  ;;  %v3897_v56 = vmax.f32 %v3895_v36, %v3896_v49 }
 0x305   : > { %v3769_v23 = vmax.f32 %v3721_v4, 0.0  ;;  %v3728_v5 = vadd.f32 %v7638_v32, %v3600_v51  ;;  %v3601_v29 = vadd.f32 %v3455_v60, %v7179_v6  ;;  %v3596_v37 = vadd.f32 %v3543_v42, %v7639_v22 }
 0x306   : > { %v3839_v33 = vmul.f32 %v7000_v0, %v3774_v45  ;;  %v3778_v57 = vmax.f32 %v3730_v24, 0.0  ;;  %3898 = vmax.xlane.f32.xlu0 %v3897_v56  ;;  %v3822_v13 = vmul.f32 %v7073_v31, %v3757_v17  ;;  %v3831_v47 = vmul.f32 %v7073_v31, %v3766_v27 }
 0x307   : > { %v3776_v40 = vmax.f32 %v3728_v5, 0.0  ;;  %v3729_v1 = vadd.f32 %v7638_v32, %v3601_v29  ;;  %v3724_v36 = vadd.f32 %v7632_v50, %v3596_v37  ;;  %v3996_v61 = vadd.f32 %v7293_v9, %v7283_v18 }
 0x308   : > { %v3982_v6 = vsel %vm3845_vm11, %v3822_v13, 0.0  ;;  %v3886_v52 = vsel %vm3845_vm11, %v3822_v13, -inf  ;;  %v3997_v53 = vsel %vm3845_vm11, %v3831_v47, 0.0  ;;  %v3900_v63 = vmax.f32 %v7283_v18, %v7293_v9 }
 0x309   : > { %v3841_v17 = vmul.f32 %v6996_v12, %v3776_v40  ;;  %v3777_v27 = vmax.f32 %v3729_v1, 0.0  ;;  %v3772_v4 = vmax.f32 %v3724_v36, 0.0  ;;  %v3983_v49 = vadd.f32 %v3982_v6, %v7242_v34 }
 0x30a   : > { %v7640_v50 = vmax.f32 %v7205_v10, %v7219_v8  ;;  %v3998_v60 = vadd.f32 %v3997_v53, %v3996_v61  ;;  %v3901_v42 = vsel %vm3845_vm11, %v3831_v47, -inf  ;;  %v3825_v45 = vmul.f32 %v7073_v31, %v3760_v15 }
 0x30b   : > { %v3842_v32 = vmul.f32 %v7000_v0, %v3777_v27  ;;  %3984 = vadd.xlane.f32.xlu1 %v3983_v49  ;;  %v3902_v24 = vmax.f32 %v3900_v63, %v3901_v42  ;;  %v3834_v9 = vmul.f32 %v7073_v31, %v3769_v23  ;;  %v4001_v12 = vadd.f32 %v7310_v38, %v7302_v55 }
 0x30c   : > { %v3887_v51 = vmax.f32 %v7640_v50, %v3886_v52  ;;  %v3987_v34 = vsel %vm3845_vm11, %v3825_v45, 0.0  ;;  %v3891_v10 = vsel %vm3845_vm11, %v3825_v45, -inf  ;;  %v3905_v8 = vmax.f32 %v7302_v55, %v7310_v38 }
 0x30d   : > { %v3840_v18 = vmul.f32 %v7073_v31, %v3775_v25  ;;  %v3988_v15 = vadd.f32 %v3987_v34, %v7268_v58  ;;  %v7641_v0 = vmax.f32 %v7231_v39, %v7245_v28  ;;  %v4002_v23 = vsel %vm3845_vm11, %v3834_v9, 0.0 }
 0x30e   : > { %3888 = vmax.xlane.f32.xlu0 %v3887_v51  ;;  %v3906_v5 = vsel %vm3845_vm11, %v3834_v9, -inf  ;;  %v4003_v29 = vadd.f32 %v4002_v23, %v4001_v12  ;;  %v4011_v37 = vadd.f32 %v3839_v33, %v3838_v7  ;;  %v3915_v47 = vmax.f32 %v3838_v7, %v3839_v33 }
 0x30f   : > { %v3892_v56 = vmax.f32 %v7641_v0, %v3891_v10  ;;  %v3907_v22 = vmax.f32 %v3905_v8, %v3906_v5  ;;  %v4012_v13 = vsel %vm3845_vm11, %v3840_v18, 0.0  ;;  %3999 = vadd.xlane.f32.xlu1 %v3998_v60  ;;  %v3916_v55 = vsel %vm3845_vm11, %v3840_v18, -inf }
 0x310   : > { %v3837_v25 = vmul.f32 %v7073_v31, %v3772_v4  ;;  %v4006_v58 = vadd.f32 %v7325_v59, %v7318_v54  ;;  %v4013_v39 = vadd.f32 %v4012_v13, %v4011_v37  ;;  %v3910_v28 = vmax.f32 %v7318_v54, %v7325_v59  ;;  %v7654_v37 = vld [vmem:[#allocation38_spill] sm:$0xff]  ;;  %v7655_v13 = vld [vmem:[#allocation37_spill] sm:$0xff] }
 0x311   : > { %v3843_v38 = vmul.f32 %v7073_v31, %v3778_v57  ;;  %v3920_v40 = vmax.f32 %v3841_v17, %v3842_v32  ;;  %v3917_v1 = vmax.f32 %v3915_v47, %v3916_v55  ;;  %v4016_v33 = vadd.f32 %v3842_v32, %v3841_v17  ;;  %v7657_v47 = vld [vmem:[#allocation36_spill] sm:$0xff]  ;;  %v7658_v55 = vld [vmem:[#allocation35_spill] sm:$0xff] }
 0x312   : > { %3903 = vmax.xlane.f32.xlu0 %v3902_v24  ;;  %v4007_v36 = vsel %vm3845_vm11, %v3837_v25, 0.0  ;;  %v3911_v7 = vsel %vm3845_vm11, %v3837_v25, -inf  ;;  %v7642_v54 = vmax.f32 %v7263_v62, 0.0  ;;  %v7643_v57 = vmax.f32 %v7237_v14, 0.0  ;;  %v7659_v25 = vld [vmem:[#allocation34_spill] sm:$0xff] }
 0x313   : > { %v4008_v61 = vadd.f32 %v4007_v36, %v4006_v58  ;;  %v3912_v6 = vmax.f32 %v3910_v28, %v3911_v7  ;;  %v3921_v52 = vsel %vm3845_vm11, %v3843_v38, -inf  ;;  %v4017_v53 = vsel %vm3845_vm11, %v3843_v38, 0.0  ;;  %3989 = vadd.xlane.f32.xlu1 %v3988_v15  ;;  %v7661_v28 = vld [vmem:[#allocation6_spill] sm:$0xff]  ;;  %v7663_v36 = vld [vmem:[#allocation7_spill] sm:$0xff] }
 0x314   : > { %v3922_v63 = vmax.f32 %v3920_v40, %v3921_v52  ;;  %v4018_v27 = vadd.f32 %v4017_v53, %v4016_v33  ;;  %v3819_v59 = vmul.f32 %v7073_v31, %v7642_v54  ;;  %v3816_v4 = vmul.f32 %v7073_v31, %v7643_v57  ;;  %v7665_v57 = vld [vmem:[#allocation33_spill] sm:$0xff] }
 0x315   : > { %v7644_v17 = vmax.f32 %v7277_v20, 0.0  ;;  %v7645_v50 = vmax.f32 %v7251_v21, 0.0  ;;  %v7646_v60 = vmax.f32 %v7211_v26, 0.0  ;;  %v7647_v62 = vmax.f32 %v7183_v3, 0.0 }
 0x316   : > { %3893 = vmax.xlane.f32.xlu0 %v3892_v56  ;;  %v3977_v14 = vsel %vm3845_vm11, %v3819_v59, 0.0  ;;  %v3881_v32 = vsel %vm3845_vm11, %v3819_v59, -inf  ;;  %v3972_v20 = vsel %vm3845_vm11, %v3816_v4, 0.0  ;;  %v3876_v24 = vsel %vm3845_vm11, %v3816_v4, -inf }
 0x317   : > { %v3813_v49 = vmul.f32 %v7073_v31, %v7644_v17  ;;  %v3810_v51 = vmul.f32 %v7073_v31, %v7645_v50  ;;  %v3807_v42 = vmul.f32 %v7073_v31, %v7646_v60  ;;  %v3804_v45 = vmul.f32 %v7073_v31, %v7647_v62  ;;  %4004 = vadd.xlane.f32.xlu1 %v4003_v29  ;;  %v7667_v17 = vld [vmem:[#allocation31_spill] sm:$0xff]  ;;  %v7671_v62 = vld [vmem:[#allocation29_spill] sm:$0xff] }
 0x318   : > { %v3978_v21 = vadd.f32 %v3977_v14, %v7216_v43  ;;  %v7648_v9 = vmax.f32 %v7197_v2, %v7193_v16  ;;  %v3973_v12 = vadd.f32 %v3972_v20, %v7188_v44  ;;  %v7649_v3 = vmax.f32 %v7172_v48, %v7168_v19  ;;  %v7651_v19 = vld [vmem:[#allocation40_spill] sm:$0xff] }
 0x319   : > { %v3967_v10 = vsel %vm3845_vm11, %v3813_v49, 0.0  ;;  %v3871_v8 = vsel %vm3845_vm11, %v3813_v49, -inf  ;;  %v3962_v18 = vsel %vm3845_vm11, %v3810_v51, 0.0  ;;  %v3866_v15 = vsel %vm3845_vm11, %v3810_v51, -inf  ;;  %v7669_v51 = vld [vmem:[#allocation30_spill] sm:$0xff] }
 0x31a   : > { %v3882_v26 = vmax.f32 %v7648_v9, %v3881_v32  ;;  %v3877_v34 = vmax.f32 %v7649_v3, %v3876_v24  ;;  %3908 = vmax.xlane.f32.xlu0 %v3907_v22  ;;  %v3968_v43 = vadd.f32 %v3967_v10, %v7160_v35  ;;  %v7650_v16 = vmax.f32 %v7145_v46, %v7134_v11  ;;  %v7653_v22 = vld [vmem:[#allocation39_spill] sm:$0xff] }
 0x31b   : > { %v3963_v2 = vadd.f32 %v3962_v18, %v7125_v30  ;;  %v7652_v48 = vmax.f32 %v7106_v41, %v7651_v19  ;;  %v3957_v56 = vsel %vm3845_vm11, %v3807_v42, 0.0  ;;  %v3861_v23 = vsel %vm3845_vm11, %v3807_v42, -inf  ;;  %4014 = vadd.xlane.f32.xlu1 %v4013_v39  ;;  %v7666_v39 = vld [vmem:[#allocation32_spill] sm:$0xff] }
 0x31c   : > { %v3872_v44 = vmax.f32 %v7650_v16, %v3871_v8  ;;  %v3952_v5 = vsel %vm3845_vm11, %v3804_v45, 0.0  ;;  %v3856_v29 = vsel %vm3845_vm11, %v3804_v45, -inf  ;;  %v3958_v35 = vadd.f32 %v3957_v56, %v7653_v22  ;;  %v7670_v42 = vld [vmem:[#allocation28_spill] sm:$0xff] }
 0x31d   : > { %v3867_v0 = vmax.f32 %v7652_v48, %v3866_v15  ;;  %v7656_v11 = vmax.f32 %v7654_v37, %v7655_v13  ;;  %v3953_v30 = vadd.f32 %v3952_v5, %v7657_v47  ;;  %v7660_v41 = vmax.f32 %v7658_v55, %v7659_v25 }
 0x31e   : > { %v7662_v38 = vmax.f32 %v7661_v28, 0.0  ;;  %v7664_v7 = vmax.f32 %v7663_v36, 0.0  ;;  %3918 = vmax.xlane.f32.xlu0 %v3917_v1  ;;  %v7668_v49 = vmax.f32 %v7666_v39, %v7667_v17 }
 0x31f   : > { %v3862_v46 = vmax.f32 %v7656_v11, %v3861_v23  ;;  %v3857_v58 = vmax.f32 %v7660_v41, %v3856_v29  ;;  %4009 = vadd.xlane.f32.xlu1 %v4008_v61  ;;  %v4057_v61 = vld [vmem:[%s7518_s5] sm:$0xff] }
 0x320   : > { %v3801_v40 = vmul.f32 %v7073_v31, %v7662_v38  ;;  %v3798_v33 = vmul.f32 %v7073_v31, %v7664_v7  ;;  %v7672_v31 = vmax.f32 %v7670_v42, %v7671_v62  ;;  %4990 = vmatprep.mubr.f32.mxu1 %v4057_v61 }
 0x322   : > { %v3947_v52 = vsel %vm3845_vm11, %v3801_v40, 0.0  ;;  %v3851_v53 = vsel %vm3845_vm11, %v3801_v40, -inf  ;;  %v3942_v54 = vsel %vm3845_vm11, %v3798_v33, 0.0  ;;  %v3846_v59 = vsel %vm3845_vm11, %v3798_v33, -inf  ;;  %3913 = vmax.xlane.f32.xlu0 %v3912_v6  ;;  %v4053_v6 = vld [vmem:[%s7517_s4] sm:$0xff] }
 0x323   : > { %v3948_v4 = vadd.f32 %v3947_v52, %v7665_v57  ;;  %v3852_v50 = vmax.f32 %v7668_v49, %v3851_v53  ;;  %v3943_v60 = vadd.f32 %v3942_v54, %v7669_v51  ;;  %v3847_v1 = vmax.f32 %v7672_v31, %v3846_v59  ;;  %3923 = vmax.xlane.f32.xlu1 %v3922_v63 }
 0x324   : > { %5028 = vmatprep.mubr.f32.mxu0 %v4053_v6 }
 0x326   : > { %4019 = vadd.xlane.f32.xlu0 %v4018_v27 }
 0x327   : > { %3979 = vadd.xlane.f32.xlu1 %v3978_v21 }
 0x32a   : > { %3883 = vmax.xlane.f32.xlu0 %v3882_v26 }
 0x32b   : > { %3974 = vadd.xlane.f32.xlu1 %v3973_v12 }
 0x32e   : > { %3878 = vmax.xlane.f32.xlu0 %v3877_v34 }
 0x32f   : > { %3969 = vadd.xlane.f32.xlu1 %v3968_v43 }
 0x332   : > { %3873 = vmax.xlane.f32.xlu0 %v3872_v44 }
 0x333   : > { %3964 = vadd.xlane.f32.xlu1 %v3963_v2 }
 0x336   : > { %3868 = vmax.xlane.f32.xlu0 %v3867_v0 }
 0x337   : > { %3959 = vadd.xlane.f32.xlu1 %v3958_v35 }
 0x33a   : > { %3863 = vmax.xlane.f32.xlu0 %v3862_v46 }
 0x33b   : > { %3954 = vadd.xlane.f32.xlu1 %v3953_v30 }
 0x33e   : > { %3858 = vmax.xlane.f32.xlu0 %v3857_v58 }
 0x33f   : > { %3949 = vadd.xlane.f32.xlu1 %v3948_v4 }
 0x342   : > { %3853 = vmax.xlane.f32.xlu0 %v3852_v50 }
 0x343   : > { %3944 = vadd.xlane.f32.xlu1 %v3943_v60 }
 0x346   : > { %3848 = vmax.xlane.f32.xlu0 %v3847_v1 }
 0x38c   : > { %v3995_v63 = vpop.xlane.xlu1 %3994 }
 0x38d   : > { %v4047_v13 = vmul.f32 0.00390625, %v3995_v63  ;;  %v4058_v63 = vld [vmem:[%s7518_s5 + $0x8] sm:$0xff] }
 0x38f   : > { %v3899_v27 = vpop.xlane.xlu0 %3898 }
 0x390   : > { %v3935_v37 = vmax.f32 %v3899_v27, 0.0  ;;  %v4054_v27 = vld [vmem:[%s7517_s4 + $0x8] sm:$0xff] }
 0x394   : > { %v3985_v45 = vpop.xlane.xlu1 %3984 }
 0x395   : > { %v4045_v25 = vmul.f32 0.00390625, %v3985_v45  ;;  %v4059_v45 = vld [vmem:[%s7518_s5 + $0x10] sm:$0xff] }
 0x397   : > { %v7461_v14 = vpop.xlane.xlu0 %3888 }
 0x398   : > { %v4000_v32 = vpop.xlane.xlu1 %3999  ;;  %v3933_v55 = vmax.f32 %v7461_v14, 0.0  ;;  %v4055_v14 = vld [vmem:[%s7517_s4 + $0x10] sm:$0xff] }
 0x399   : > { %v4048_v35 = vmul.f32 0.00390625, %v4000_v32  ;;  %v4060_v32 = vld [vmem:[%s7518_s5 + $0x18] sm:$0xff] }
 0x39b   : > { %v3904_v20 = vpop.xlane.xlu0 %3903 }
 0x39c   : > { %v3990_v24 = vpop.xlane.xlu1 %3989  ;;  %v3936_v29 = vmax.f32 %v3904_v20, 0.0  ;;  %v4056_v20 = vld [vmem:[%s7517_s4 + $0x18] sm:$0xff] }
 0x39d   : > { %v4046_v30 = vmul.f32 0.00390625, %v3990_v24 }
 0x39f   : > { %v3894_v21 = vpop.xlane.xlu0 %3893 }
 0x3a0   : > { %v4005_v9 = vpop.xlane.xlu1 %4004  ;;  %v3934_v46 = vmax.f32 %v3894_v21, 0.0 }
 0x3a1   : > { %v4049_v23 = vmul.f32 0.00390625, %v4005_v9  ;;  %v4232_v9 = vld [vmem:[%s7519_s6 + $0x8] sm:$0xff] }
 0x3a3   : > { %v3909_v26 = vpop.xlane.xlu0 %3908 }
 0x3a4   : > { %v4015_v12 = vpop.xlane.xlu1 %4014  ;;  %v3937_v56 = vmax.f32 %v3909_v26, 0.0 }
 0x3a5   : > { %v4051_v44 = vmul.f32 0.00390625, %v4015_v12 }
 0x3a7   : > { %v3919_v3 = vpop.xlane.xlu0 %3918 }
 0x3a8   : > { %v4010_v34 = vpop.xlane.xlu1 %4009  ;;  %v3939_v16 = vmax.f32 %v3919_v3, 0.0 }
 0x3a9   : > { %v4050_v0 = vmul.f32 0.00390625, %v4010_v34  ;;  %v4231_v34 = vld [vmem:[%s7519_s6] sm:$0xff] }
 0x3ab   : > { %v3914_v10 = vpop.xlane.xlu0 %3913 }
 0x3ac   : > { %v3924_v8 = vpop.xlane.xlu1 %3923  ;;  %v3938_v19 = vmax.f32 %v3914_v10, 0.0 }
 0x3ad   : > { %v3940_v18 = vmax.f32 %v3924_v8, 0.0 }
 0x3af   : > { %v4020_v15 = vpop.xlane.xlu0 %4019  ;;  %4996 = vmatprep.subr.mxu0 %v3940_v18 }
 0x3b0   : > { %v4052_v43 = vmul.f32 0.00390625, %v4020_v15  ;;  %4997 = vmatpush3.msra.mxu0 %v3940_v18  ;;  %v3980_v2 = vpop.xlane.xlu1 %3979 }
 0x3b1   : > { %4998 = vmatprep.subr.mxu0 %v3939_v16  ;;  %v4044_v38 = vmul.f32 0.00390625, %v3980_v2 }
 0x3b2   : > { %4958 = vmatprep.subr.mxu1 %v4052_v43  ;;  %4999 = vmatpush3.msra.mxu0 %v3939_v16 }
 0x3b3   : > { %4959 = vmatpush3.msra.mxu1 %v4052_v43  ;;  %v3884_v48 = vpop.xlane.xlu0 %3883  ;;  %5000 = vmatprep.subr.mxu0 %v3938_v19  ;;  %v4234_v43 = vld [vmem:[%s7519_s6 + $0x18] sm:$0xff] }
 0x3b4   : > { %4960 = vmatprep.subr.mxu1 %v4051_v44  ;;  %v3975_v5 = vpop.xlane.xlu1 %3974  ;;  %5001 = vmatpush3.msra.mxu0 %v3938_v19  ;;  %v3932_v58 = vmax.f32 %v3884_v48, 0.0  ;;  %v4244_v48 = vld [vmem:[%s7520_s7 + $0x8] sm:$0xff] }
 0x3b5   : > { %4961 = vmatpush3.msra.mxu1 %v4051_v44  ;;  %5002 = vmatprep.subr.mxu0 %v3937_v56  ;;  %v4043_v36 = vmul.f32 0.00390625, %v3975_v5 }
 0x3b6   : > { %4962 = vmatprep.subr.mxu1 %v4050_v0  ;;  %5003 = vmatpush3.msra.mxu0 %v3937_v56 }
 0x3b7   : > { %4963 = vmatpush3.msra.mxu1 %v4050_v0  ;;  %v3879_v22 = vpop.xlane.xlu0 %3878  ;;  %5004 = vmatprep.subr.mxu0 %v3936_v29  ;;  %v4243_v0 = vld [vmem:[%s7520_s7] sm:$0xff] }
 0x3b8   : > { %4964 = vmatprep.subr.mxu1 %v4049_v23  ;;  %5005 = vmatpush3.msra.mxu0 %v3936_v29  ;;  %v3970_v11 = vpop.xlane.xlu1 %3969  ;;  %v3931_v40 = vmax.f32 %v3879_v22, 0.0 }
 0x3b9   : > { %4965 = vmatpush3.msra.mxu1 %v4049_v23  ;;  %5006 = vmatprep.subr.mxu0 %v3935_v37  ;;  %v4042_v53 = vmul.f32 0.00390625, %v3970_v11  ;;  %v4233_v23 = vld [vmem:[%s7519_s6 + $0x10] sm:$0xff] }
 0x3ba   : > { %4966 = vmatprep.subr.mxu1 %v4048_v35  ;;  %5007 = vmatpush3.msra.mxu0 %v3935_v37 }
 0x3bb   : > { %4967 = vmatpush3.msra.mxu1 %v4048_v35  ;;  %v3874_v47 = vpop.xlane.xlu0 %3873  ;;  %5008 = vmatprep.subr.mxu0 %v3934_v46 }
 0x3bc   : > { %4968 = vmatprep.subr.mxu1 %v4047_v13  ;;  %5009 = vmatpush3.msra.mxu0 %v3934_v46  ;;  %v3965_v41 = vpop.xlane.xlu1 %3964  ;;  %v3930_v33 = vmax.f32 %v3874_v47, 0.0  ;;  %v4246_v46 = vld [vmem:[%s7520_s7 + $0x18] sm:$0xff]  ;;  %v4245_v47 = vld [vmem:[%s7520_s7 + $0x10] sm:$0xff] }
 0x3bd   : > { %4969 = vmatpush3.msra.mxu1 %v4047_v13  ;;  %5010 = vmatprep.subr.mxu0 %v3933_v55  ;;  %v4041_v59 = vmul.f32 0.00390625, %v3965_v41 }
 0x3be   : > { %4970 = vmatprep.subr.mxu1 %v4046_v30  ;;  %5011 = vmatpush3.msra.mxu0 %v3933_v55 }
 0x3bf   : > { %4971 = vmatpush3.msra.mxu1 %v4046_v30  ;;  %v3869_v28 = vpop.xlane.xlu0 %3868  ;;  %5012 = vmatprep.subr.mxu0 %v3932_v58 }
 0x3c0   : > { %4972 = vmatprep.subr.mxu1 %v4045_v25  ;;  %5013 = vmatpush3.msra.mxu0 %v3932_v58  ;;  %v3960_v7 = vpop.xlane.xlu1 %3959  ;;  %v3929_v54 = vmax.f32 %v3869_v28, 0.0 }
 0x3c1   : > { %4973 = vmatpush3.msra.mxu1 %v4045_v25  ;;  %5014 = vmatprep.subr.mxu0 %v3931_v40  ;;  %v4040_v17 = vmul.f32 0.00390625, %v3960_v7 }
 0x3c2   : > { %4974 = vmatprep.subr.mxu1 %v4044_v38  ;;  %5015 = vmatpush3.msra.mxu0 %v3931_v40 }
 0x3c3   : > { %4975 = vmatpush3.msra.mxu1 %v4044_v38  ;;  %v3864_v52 = vpop.xlane.xlu0 %3863  ;;  %5016 = vmatprep.subr.mxu0 %v3930_v33 }
 0x3c4   : > { %4976 = vmatprep.subr.mxu1 %v4043_v36  ;;  %5017 = vmatpush3.msra.mxu0 %v3930_v33  ;;  %v3955_v57 = vpop.xlane.xlu1 %3954  ;;  %v3928_v4 = vmax.f32 %v3864_v52, 0.0 }
 0x3c5   : > { %4977 = vmatpush3.msra.mxu1 %v4043_v36  ;;  %5018 = vmatprep.subr.mxu0 %v3929_v54  ;;  %v4039_v50 = vmul.f32 0.00390625, %v3955_v57  ;;  %v4266_v57 = vstv %s4265_s16 }
 0x3c6   : > { %4978 = vmatprep.subr.mxu1 %v4042_v53  ;;  %5019 = vmatpush3.msra.mxu0 %v3929_v54 }
 0x3c7   : > { %4979 = vmatpush3.msra.mxu1 %v4042_v53  ;;  %v3859_v39 = vpop.xlane.xlu0 %3858  ;;  %5020 = vmatprep.subr.mxu0 %v3928_v4 }
 0x3c8   : > { %4980 = vmatprep.subr.mxu1 %v4041_v59  ;;  %v3927_v49 = vmax.f32 %v3859_v39, 0.0  ;;  %5021 = vmatpush3.msra.mxu0 %v3928_v4  ;;  %v3950_v51 = vpop.xlane.xlu1 %3949 }
 0x3c9   : > { %4981 = vmatpush3.msra.mxu1 %v4041_v59  ;;  %v4038_v60 = vmul.f32 0.00390625, %v3950_v51 }
 0x3ca   : > { %4982 = vmatprep.subr.mxu1 %v4040_v17  ;;  %5022 = vmatprep.subr.mxu0 %v3927_v49 }
 0x3cb   : > { %4983 = vmatpush3.msra.mxu1 %v4040_v17  ;;  %v3854_v42 = vpop.xlane.xlu0 %3853  ;;  %5023 = vmatpush3.msra.mxu0 %v3927_v49 }
 0x3cc   : > { %v3926_v62 = vmax.f32 %v3854_v42, 0.0  ;;  %4984 = vmatprep.subr.mxu1 %v4039_v50  ;;  %v3945_v31 = vpop.xlane.xlu1 %3944 }
 0x3cd   : > { %4985 = vmatpush3.msra.mxu1 %v4039_v50  ;;  %v4037_v1 = vmul.f32 0.00390625, %v3945_v31 }
 0x3ce   : > { %4986 = vmatprep.subr.mxu1 %v4038_v60  ;;  %5024 = vmatprep.subr.mxu0 %v3926_v62 }
 0x3cf   : > { %4987 = vmatpush3.msra.mxu1 %v4038_v60  ;;  %5025 = vmatpush3.msra.mxu0 %v3926_v62  ;;  %v3849_v61 = vpop.xlane.xlu0 %3848 }
 0x3d0   : > { %v3925_v6 = vmax.f32 %v3849_v61, 0.0  ;;  %4988 = vmatprep.subr.mxu1 %v4037_v1 }
 0x3d1   : > { %4989 = vmatpush3.msra.mxu1 %v4037_v1 }
 0x3d2   : > { %5026 = vmatprep.subr.mxu0 %v3925_v6  ;;  %4991 = vmatmul.mubr.f32.vlgmr.msra.gmra.mxu1 %v4058_v63 }
 0x3d3   : > { %5027 = vmatpush3.msra.mxu0 %v3925_v6  ;;  %4993 = vmatprep.mubr.f32.mxu1 %v4059_v45 }
 0x3d4   : > { %5029 = vmatmul.mubr.f32.vlgmr.msra.gmra.mxu0 %v4054_v27 }
 0x3d5   : > { %5031 = vmatprep.mubr.f32.mxu0 %v4055_v14 }
 0x3d6   : > { %4994 = vmatmul.mubr.f32.gmra.mxu1 %v4060_v32 }
 0x3d8   : > { %5032 = vmatmul.mubr.f32.gmra.mxu0 %v4056_v20 }
 0x492   : > { %v4992_v24 = vpop.f32.mrf.mxu1 }
 0x494   : > { %v5030_v21 = vpop.f32.mrf.mxu0  ;;  %v4127_v12 = vpop.f32.mrf.mxu1 }
 0x495   : > { %v4218_v26 = vadd.f32 %v5030_v21, %v4992_v24 }
 0x496   : > { %v4212_v3 = vpop.f32.mrf.mxu0  ;;  %v4995_v18 = vpop.f32.mrf.mxu1 }
 0x497   : > { %v4236_v10 = vadd.f32 %v4232_v9, %v4218_v26  ;;  %v4213_v8 = vadd.f32 %v4212_v3, %v4127_v12 }
 0x498   : > { %v5033_v15 = vpop.f32.mrf.mxu0  ;;  %v4137_v19 = vpop.f32.mrf.mxu1 }
 0x499   : > { %v4240_v16 = vmax.f32 %v4236_v10, 0.0  ;;  %v4235_v44 = vadd.f32 %v4231_v34, %v4213_v8  ;;  %v4228_v2 = vadd.f32 %v5033_v15, %v4995_v18 }
 0x49a   : > { %v4222_v56 = vpop.f32.mrf.mxu0 }
 0x49b   : > { %v4239_v5 = vmax.f32 %v4235_v44, 0.0  ;;  %v4238_v29 = vadd.f32 %v4234_v43, %v4228_v2  ;;  %v4223_v22 = vadd.f32 %v4222_v56, %v4137_v19  ;;  %v4248_v35 = vmul.f32 %v4244_v48, %v4240_v16 }
 0x49d   : > { %v4247_v37 = vmul.f32 %v4243_v0, %v4239_v5  ;;  %v4242_v13 = vmax.f32 %v4238_v29, 0.0  ;;  %v4237_v11 = vadd.f32 %v4233_v23, %v4223_v22  ;;  %v4253_v25 = vsel %vm4251_vm12, %v4248_v35, 0.0 }
 0x49f   : > { %v4252_v30 = vsel %vm4251_vm12, %v4247_v37, 0.0  ;;  %v4241_v55 = vmax.f32 %v4237_v11, 0.0  ;;  %v4250_v41 = vmul.f32 %v4246_v46, %v4242_v13 }
 0x4a0   : > { %v4254_v28 = vadd.f32 %v4253_v25, %v4252_v30 }
 0x4a1   : > { %v4249_v58 = vmul.f32 %v4245_v47, %v4241_v55  ;;  %v4257_v36 = vsel %vm4251_vm12, %v4250_v41, 0.0 }
 0x4a3   : > { %v4255_v38 = vsel %vm4251_vm12, %v4249_v58, 0.0 }
 0x4a4   : > { %v4256_v40 = vadd.f32 %v4255_v38, %v4254_v28 }
 0x4a6   : > { %v4258_v7 = vadd.f32 %v4257_v36, %v4256_v40 }
 0x4a8   : > { %v4259_v33 = vrot.slane %v4258_v7, 4 }
 0x4aa   : > { %v4260_v52 = vadd.f32 %v4259_v33, %v4258_v7 }
 0x4ac   : > { %v4261_v53 = vrot.slane %v4260_v52, 2 }
 0x4ae   : > { %v4262_v54 = vadd.f32 %v4261_v53, %v4260_v52 }
 0x4b0   : > { %v4263_v59 = vrot.slane %v4262_v54, 1 }
 0x4b2   : > { %v4264_v4 = vadd.f32 %v4263_v59, %v4262_v54 }
 0x4b4   : > { %v4267_v39 = vadd.f32 %v4266_v57, %v4264_v4 }
 0x4b6   : > { %v4268_v17 = vsub.f32 100.0, %v4267_v39 }
 0x4b8   : > { %v4269_v49 = vmul.f32 %v4268_v17, %v4268_v17 }
 0x4ba   : > { %4272 = vperm.xlu0 %5056, %v4269_v49  }
 0x535   : > { %v4273_v50 = vpop.permute.xlu0 %4272 }
 0x536   : > { %4275 = vst [vmem:[%s329_s19] sm:$0x1] %v4273_v50 }
 0x537 PF: > { %s20_s11 = sadd.s32 1, %s5144_s11  }
 0x538   : > { %p17_p4 = scmp.ge.s32.totalorder %s20_s11, 4  }
 0x53a   :  { %19 = sbr.rel (!%p17_p4) target bundleno = 2 (0x2), region = 94 }

</bundles_post_ra>
